<compile_context>
chip_gen: v6e
topology: v6e:2x2x1
jax: 0.10.0
libtpu: 0.0.40
codegen_flags: <defaults>
</compile_context>

<pallas_src>
from functools import partial

import jax
import jax.numpy as jnp
from jax import lax
from jax.experimental import pallas as pl
from jax.experimental.pallas import tpu as pltpu


# ----------------------------- fused Pallas kernel ----------------------------- #

def _down_fused_kernel(x_ref, w1_ref, s1_ref, b1_ref, w2_ref, s2_ref, b2_ref,
                       o_ref, xp1_ref, xp2_ref):
    # x_ref  : (1, H, W*Cin)      f32   one batch element, NHWC with (W,C) folded into lanes
    # w1_ref : (9*Cin, Cm)        bf16  im2col weights, conv1 (Cm = mid channels padded to 128)
    # s1/b1  : (1, Cm)            f32   folded BN scale / bias, conv1
    # w2_ref : (9*Cm, Co)         bf16  im2col weights, conv2 (Co = out channels padded to 128)
    # s2/b2  : (1, Co)            f32
    # o_ref  : (1, Ho, Wo, Co)    f32
    # xp1_ref: (Ho+2, Wo+2, Cin)  bf16  zero-halo scratch (SAME padding) for conv1 input
    # xp2_ref: (Ho+2, Wo+2, Cm)   bf16  zero-halo scratch for conv2 input
    WC = x_ref.shape[2]
    Cin = xp1_ref.shape[2]
    Cm = xp2_ref.shape[2]
    Ho, Wo, Co = o_ref.shape[1], o_ref.shape[2], o_ref.shape[3]
    two_cin = 2 * Cin

    # ---- MaxPool2d(2), fully vectorized over whole rows (f32, exact) ----
    x = x_ref[0].reshape(Ho, 2, WC)                       # group row pairs
    a = jnp.maximum(x[:, 0:1, :], x[:, 1:2, :])           # (Ho, 1, W*Cin)
    a = a.reshape(Ho, Wo, two_cin)                        # group column pairs
    pooled = jnp.maximum(a[:, :, 0:Cin], a[:, :, Cin:two_cin])   # (Ho, Wo, Cin)

    def pad_into(xp_ref, interior, C):
        # Zero only the halo border; interior is overwritten every step.
        z_row = jnp.zeros((1, Wo + 2, C), xp_ref.dtype)
        z_col = jnp.zeros((Ho, 1, C), xp_ref.dtype)
        xp_ref[0:1, :, :] = z_row
        xp_ref[Ho + 1:Ho + 2, :, :] = z_row
        xp_ref[1:Ho + 1, 0:1, :] = z_col
        xp_ref[1:Ho + 1, Wo + 1:Wo + 2, :] = z_col
        xp_ref[1:Ho + 1, 1:Wo + 1, :] = interior.astype(xp_ref.dtype)

    def conv3x3_bn_relu(xp_ref, w_ref, s_ref, b_ref, C):
        # im2col: nine shifted (Ho, Wo, C) views concatenated along lanes,
        # then ONE MXU matmul with K = 9*C and f32 accumulation.
        cols = [xp_ref[dh:dh + Ho, dw:dw + Wo, :]
                for dh in range(3) for dw in range(3)]
        lhs = jnp.concatenate(cols, axis=-1).reshape(Ho * Wo, 9 * C)        # bf16
        y = jnp.dot(lhs, w_ref[...], preferred_element_type=jnp.float32)
        return jnp.maximum(y * s_ref[...] + b_ref[...], 0.0)                # BN + ReLU, f32

    # ---- conv1 -> BN -> ReLU ----
    pad_into(xp1_ref, pooled, Cin)
    a1 = conv3x3_bn_relu(xp1_ref, w1_ref, s1_ref, b1_ref, Cin)              # (Ho*Wo, Cm)

    # ---- conv2 -> BN -> ReLU ----
    pad_into(xp2_ref, a1.reshape(Ho, Wo, Cm), Cm)
    a2 = conv3x3_bn_relu(xp2_ref, w2_ref, s2_ref, b2_ref, Cm)               # (Ho*Wo, Co)

    o_ref[0] = a2.reshape(Ho, Wo, Co).astype(o_ref.dtype)   # lane-dense (Co = 128k) store


# --------------------------------- host wrapper -------------------------------- #

@partial(jax.jit, static_argnames=("out_channels",))
def down_forward(x_nchw, params, *, out_channels):
    """Pallas implementation of Down.forward: NCHW in, NCHW out."""
    N, Cin, H, W = x_nchw.shape
    assert H % 2 == 0 and W % 2 == 0, "MaxPool2d(2) demo path expects even H, W"
    Ho, Wo = H // 2, W // 2
    Cm = params["w1"].shape[1]           # mid channels, lane-padded
    Co = params["w2"].shape[1]           # out channels, lane-padded
    assert params["w1"].shape[0] == 9 * Cin

    # NCHW -> NHWC once (input layout conversion), then fold (W, C) into lanes.
    x = jnp.transpose(x_nchw, (0, 2, 3, 1)).reshape(N, H, W * Cin)

    out = pl.pallas_call(
        _down_fused_kernel,
        out_shape=jax.ShapeDtypeStruct((N, Ho, Wo, Co), jnp.float32),
        grid_spec=pltpu.PrefetchScalarGridSpec(
            num_scalar_prefetch=0,
            grid=(N,),
            in_specs=[
                pl.BlockSpec((1, H, W * Cin), lambda n: (n, 0, 0)),
                pl.BlockSpec((9 * Cin, Cm), lambda n: (0, 0)),
                pl.BlockSpec((1, Cm), lambda n: (0, 0)),
                pl.BlockSpec((1, Cm), lambda n: (0, 0)),
                pl.BlockSpec((9 * Cm, Co), lambda n: (0, 0)),
                pl.BlockSpec((1, Co), lambda n: (0, 0)),
                pl.BlockSpec((1, Co), lambda n: (0, 0)),
            ],
            out_specs=pl.BlockSpec((1, Ho, Wo, Co), lambda n: (n, 0, 0, 0)),
            scratch_shapes=[
                pltpu.VMEM((Ho + 2, Wo + 2, Cin), jnp.bfloat16),
                pltpu.VMEM((Ho + 2, Wo + 2, Cm), jnp.bfloat16),
            ],
        ),
        compiler_params=pltpu.CompilerParams(
            dimension_semantics=("parallel",),       # shard batch across v7x's 2 TCs
            vmem_limit_bytes=32 * 1024 * 1024,
        ),
    )(x, params["w1"], params["s1"], params["b1"],
      params["w2"], params["s2"], params["b2"])

    out = out[..., :out_channels]                    # drop lane padding
    return jnp.transpose(out, (0, 3, 1, 2))          # NHWC -> NCHW


# ------------------------------- parameter setup ------------------------------- #

def _round_up(x, m):
    return ((x + m - 1) // m) * m


def make_down_params(key, in_channels, out_channels, lane=128):
    """Returns (raw_params for the pure-JAX reference, kernel_params in im2col/bf16 layout)."""
    mid = out_channels
    ks = jax.random.split(key, 10)
    eps = 1e-5

    def bn_fold(kg, kb, km, kv, c):
        gamma = 1.0 + 0.1 * jax.random.normal(kg, (c,), jnp.float32)
        beta = 0.05 * jax.random.normal(kb, (c,), jnp.float32)
        mean = 0.1 * jax.random.normal(km, (c,), jnp.float32)
        var = jax.random.uniform(kv, (c,), jnp.float32, 0.5, 1.5)
        scale = gamma / jnp.sqrt(var + eps)
        bias = beta - mean * scale
        return scale, bias

    w1 = 0.1 * jax.random.normal(ks[0], (3, 3, in_channels, mid), jnp.float32)   # HWIO
    s1, b1 = bn_fold(ks[1], ks[2], ks[3], ks[4], mid)
    w2 = 0.1 * jax.random.normal(ks[5], (3, 3, mid, out_channels), jnp.float32)  # HWIO
    s2, b2 = bn_fold(ks[6], ks[7], ks[8], ks[9], out_channels)

    raw = dict(w1=w1, s1=s1, b1=b1, w2=w2, s2=s2, b2=b2)

    cm = _round_up(mid, lane)            # mid channels padded to lane width
    co = _round_up(out_channels, lane)   # out channels padded to lane width

    # conv1 weights: pad Cout -> cm, flatten (3,3,Cin) -> 9*Cin im2col rows, bf16.
    w1p = jnp.zeros((3, 3, in_channels, cm), jnp.float32).at[..., :mid].set(w1)
    w1k = w1p.reshape(9 * in_channels, cm).astype(jnp.bfloat16)
    s1k = jnp.zeros((1, cm), jnp.float32).at[0, :mid].set(s1)
    b1k = jnp.zeros((1, cm), jnp.float32).at[0, :mid].set(b1)   # padded bias = 0 -> ReLU(0) = 0

    # conv2 weights: pad Cin -> cm and Cout -> co, flatten, bf16.
    w2p = jnp.zeros((3, 3, cm, co), jnp.float32).at[:, :, :mid, :out_channels].set(w2)
    w2k = w2p.reshape(9 * cm, co).astype(jnp.bfloat16)
    s2k = jnp.zeros((1, co), jnp.float32).at[0, :out_channels].set(s2)
    b2k = jnp.zeros((1, co), jnp.float32).at[0, :out_channels].set(b2)

    kern = dict(w1=w1k, s1=s1k, b1=b1k, w2=w2k, s2=s2k, b2=b2k)
    return raw, kern


# ------------------------------ pure-JAX reference ------------------------------ #

def down_forward_ref(x_nchw, raw):
    """Reference with the same precision policy as the kernel (bf16 matmul in, f32 acc)."""
    x = jnp.transpose(x_nchw, (0, 2, 3, 1))
    x = lax.reduce_window(x, -jnp.inf, lax.max,
                          (1, 2, 2, 1), (1, 2, 2, 1), "VALID")

    def cbr(x, w, s, b):
        y = lax.conv_general_dilated(
            x.astype(jnp.bfloat16), w.astype(jnp.bfloat16), (1, 1), "SAME",
            dimension_numbers=("NHWC", "HWIO", "NHWC"),
            preferred_element_type=jnp.float32)
        return jnp.maximum(y * s + b, 0.0)

    x = cbr(x, raw["w1"], raw["s1"], raw["b1"])
    x = cbr(x, raw["w2"], raw["s2"], raw["b2"])
    return jnp.transpose(x, (0, 3, 1, 2))


# ------------------------------------- main ------------------------------------- #

if __name__ == "__main__":
    key = jax.random.PRNGKey(0)
    kx, kp = jax.random.split(key)

    N, C_in, H, W = 2, 4, 16, 16
    C_out = 8

    x = jax.random.normal(kx, (N, C_in, H, W), jnp.float32)    # NCHW, like PyTorch
    raw_params, kern_params = make_down_params(kp, C_in, C_out)

    out = jax.block_until_ready(down_forward(x, kern_params, out_channels=C_out))
    assert out.shape == (N, C_out, H // 2, W // 2), out.shape

    ref = jax.block_until_ready(down_forward_ref(x, raw_params))
    err = float(jnp.max(jnp.abs(out - ref)))
    assert err < 1e-2, err

    print("KERNEL_OK")
</pallas_src>

<mosaic_0001>
module attributes {stable_mosaic.version = 11 : i64} {
  func.func @_down_fused_kernel(%arg0: i32, %arg1: memref<1x16x64xf32, #tpu.memory_space<vmem>>, %arg2: memref<36x128xbf16, #tpu.memory_space<vmem>>, %arg3: memref<1x128xf32, #tpu.memory_space<vmem>>, %arg4: memref<1x128xf32, #tpu.memory_space<vmem>>, %arg5: memref<1152x128xbf16, #tpu.memory_space<vmem>>, %arg6: memref<1x128xf32, #tpu.memory_space<vmem>>, %arg7: memref<1x128xf32, #tpu.memory_space<vmem>>, %arg8: memref<1x8x8x128xf32, #tpu.memory_space<vmem>>, %arg9: memref<10x10x4xbf16, #tpu.memory_space<vmem>>, %arg10: memref<10x10x128xbf16, #tpu.memory_space<vmem>>) attributes {dimension_semantics = [#tpu.dimension_semantics<parallel>], iteration_bounds = array<i64: 2>, scalar_prefetch = 0 : i64, scratch_operands = 2 : i64, tpu.core_type = #tpu.core_type<tc>, window_params = [{transform_indices = @transform_0, window_bounds = array<i64: 1, 16, 64>}, {pipeline_mode = #tpu.pipeline_mode<synchronous>, transform_indices = @transform_1, window_bounds = array<i64: 36, 128>}, {pipeline_mode = #tpu.pipeline_mode<synchronous>, transform_indices = @transform_2, window_bounds = array<i64: 1, 128>}, {pipeline_mode = #tpu.pipeline_mode<synchronous>, transform_indices = @transform_3, window_bounds = array<i64: 1, 128>}, {pipeline_mode = #tpu.pipeline_mode<synchronous>, transform_indices = @transform_4, window_bounds = array<i64: 1152, 128>}, {pipeline_mode = #tpu.pipeline_mode<synchronous>, transform_indices = @transform_5, window_bounds = array<i64: 1, 128>}, {pipeline_mode = #tpu.pipeline_mode<synchronous>, transform_indices = @transform_6, window_bounds = array<i64: 1, 128>}, {transform_indices = @transform_7, window_bounds = array<i64: 1, 8, 8, 128>}]} {
    %c0 = arith.constant 0 : index
    %c0_0 = arith.constant 0 : index
    %c0_1 = arith.constant 0 : index
    %0 = vector.load %arg1[%c0, %c0_0, %c0_1] : memref<1x16x64xf32, #tpu.memory_space<vmem>>, vector<1x16x64xf32>
    %1 = vector.shape_cast %0 : vector<1x16x64xf32> to vector<16x64xf32>
    %2 = vector.shape_cast %1 : vector<16x64xf32> to vector<8x2x64xf32>
    %3 = vector.extract_strided_slice %2 {offsets = [0, 0, 0], sizes = [8, 1, 64], strides = [1, 1, 1]} : vector<8x2x64xf32> to vector<8x1x64xf32>
    %4 = vector.extract_strided_slice %2 {offsets = [0, 1, 0], sizes = [8, 1, 64], strides = [1, 1, 1]} : vector<8x2x64xf32> to vector<8x1x64xf32>
    %5 = arith.maximumf %3, %4 : vector<8x1x64xf32>
    %6 = vector.shape_cast %5 : vector<8x1x64xf32> to vector<8x8x8xf32>
    %7 = vector.extract_strided_slice %6 {offsets = [0, 0, 0], sizes = [8, 8, 4], strides = [1, 1, 1]} : vector<8x8x8xf32> to vector<8x8x4xf32>
    %8 = vector.extract_strided_slice %6 {offsets = [0, 0, 4], sizes = [8, 8, 4], strides = [1, 1, 1]} : vector<8x8x8xf32> to vector<8x8x4xf32>
    %9 = arith.maximumf %7, %8 : vector<8x8x4xf32>
    %cst = arith.constant 0.000000e+00 : bf16
    %10 = vector.broadcast %cst : bf16 to vector<1x10x4xbf16>
    %cst_2 = arith.constant 0.000000e+00 : bf16
    %11 = vector.broadcast %cst_2 : bf16 to vector<8x1x4xbf16>
    %c0_3 = arith.constant 0 : index
    %c0_4 = arith.constant 0 : index
    %c0_5 = arith.constant 0 : index
    %12 = vector.load %arg9[%c0_3, %c0_4, %c0_5] : memref<10x10x4xbf16, #tpu.memory_space<vmem>>, vector<1x10x4xbf16>
    tpu.vector_store %arg9[%c0_3, %c0_4, %c0_5], %10 {strides = array<i32>} : memref<10x10x4xbf16, #tpu.memory_space<vmem>>, vector<1x10x4xbf16>,
    %c9 = arith.constant 9 : index
    %c0_6 = arith.constant 0 : index
    %c0_7 = arith.constant 0 : index
    %13 = vector.load %arg9[%c9, %c0_6, %c0_7] : memref<10x10x4xbf16, #tpu.memory_space<vmem>>, vector<1x10x4xbf16>
    tpu.vector_store %arg9[%c9, %c0_6, %c0_7], %10 {strides = array<i32>} : memref<10x10x4xbf16, #tpu.memory_space<vmem>>, vector<1x10x4xbf16>,
    %c1 = arith.constant 1 : index
    %c0_8 = arith.constant 0 : index
    %c0_9 = arith.constant 0 : index
    %14 = vector.load %arg9[%c1, %c0_8, %c0_9] : memref<10x10x4xbf16, #tpu.memory_space<vmem>>, vector<8x1x4xbf16>
    tpu.vector_store %arg9[%c1, %c0_8, %c0_9], %11 {strides = array<i32>} : memref<10x10x4xbf16, #tpu.memory_space<vmem>>, vector<8x1x4xbf16>,
    %c1_10 = arith.constant 1 : index
    %c9_11 = arith.constant 9 : index
    %c0_12 = arith.constant 0 : index
    %15 = vector.load %arg9[%c1_10, %c9_11, %c0_12] : memref<10x10x4xbf16, #tpu.memory_space<vmem>>, vector<8x1x4xbf16>
    tpu.vector_store %arg9[%c1_10, %c9_11, %c0_12], %11 {strides = array<i32>} : memref<10x10x4xbf16, #tpu.memory_space<vmem>>, vector<8x1x4xbf16>,
    %16 = arith.truncf %9 : vector<8x8x4xf32> to vector<8x8x4xbf16>
    %c1_13 = arith.constant 1 : index
    %c1_14 = arith.constant 1 : index
    %c0_15 = arith.constant 0 : index
    %17 = vector.load %arg9[%c1_13, %c1_14, %c0_15] : memref<10x10x4xbf16, #tpu.memory_space<vmem>>, vector<8x8x4xbf16>
    tpu.vector_store %arg9[%c1_13, %c1_14, %c0_15], %16 {strides = array<i32>} : memref<10x10x4xbf16, #tpu.memory_space<vmem>>, vector<8x8x4xbf16>,
    %c0_16 = arith.constant 0 : index
    %c0_17 = arith.constant 0 : index
    %c0_18 = arith.constant 0 : index
    %18 = vector.load %arg9[%c0_16, %c0_17, %c0_18] : memref<10x10x4xbf16, #tpu.memory_space<vmem>>, vector<8x8x4xbf16>
    %c0_19 = arith.constant 0 : index
    %c1_20 = arith.constant 1 : index
    %c0_21 = arith.constant 0 : index
    %19 = vector.load %arg9[%c0_19, %c1_20, %c0_21] : memref<10x10x4xbf16, #tpu.memory_space<vmem>>, vector<8x8x4xbf16>
    %c0_22 = arith.constant 0 : index
    %c2 = arith.constant 2 : index
    %c0_23 = arith.constant 0 : index
    %20 = vector.load %arg9[%c0_22, %c2, %c0_23] : memref<10x10x4xbf16, #tpu.memory_space<vmem>>, vector<8x8x4xbf16>
    %c1_24 = arith.constant 1 : index
    %c0_25 = arith.constant 0 : index
    %c0_26 = arith.constant 0 : index
    %21 = vector.load %arg9[%c1_24, %c0_25, %c0_26] : memref<10x10x4xbf16, #tpu.memory_space<vmem>>, vector<8x8x4xbf16>
    %c1_27 = arith.constant 1 : index
    %c1_28 = arith.constant 1 : index
    %c0_29 = arith.constant 0 : index
    %22 = vector.load %arg9[%c1_27, %c1_28, %c0_29] : memref<10x10x4xbf16, #tpu.memory_space<vmem>>, vector<8x8x4xbf16>
    %c1_30 = arith.constant 1 : index
    %c2_31 = arith.constant 2 : index
    %c0_32 = arith.constant 0 : index
    %23 = vector.load %arg9[%c1_30, %c2_31, %c0_32] : memref<10x10x4xbf16, #tpu.memory_space<vmem>>, vector<8x8x4xbf16>
    %c2_33 = arith.constant 2 : index
    %c0_34 = arith.constant 0 : index
    %c0_35 = arith.constant 0 : index
    %24 = vector.load %arg9[%c2_33, %c0_34, %c0_35] : memref<10x10x4xbf16, #tpu.memory_space<vmem>>, vector<8x8x4xbf16>
    %c2_36 = arith.constant 2 : index
    %c1_37 = arith.constant 1 : index
    %c0_38 = arith.constant 0 : index
    %25 = vector.load %arg9[%c2_36, %c1_37, %c0_38] : memref<10x10x4xbf16, #tpu.memory_space<vmem>>, vector<8x8x4xbf16>
    %c2_39 = arith.constant 2 : index
    %c2_40 = arith.constant 2 : index
    %c0_41 = arith.constant 0 : index
    %26 = vector.load %arg9[%c2_39, %c2_40, %c0_41] : memref<10x10x4xbf16, #tpu.memory_space<vmem>>, vector<8x8x4xbf16>
    %27 = tpu.concatenate %18, %19, %20, %21, %22, %23, %24, %25, %26 in 2 : vector<8x8x4xbf16>, vector<8x8x4xbf16>, vector<8x8x4xbf16>, vector<8x8x4xbf16>, vector<8x8x4xbf16>, vector<8x8x4xbf16>, vector<8x8x4xbf16>, vector<8x8x4xbf16>, vector<8x8x4xbf16> -> vector<8x8x36xbf16>
    %28 = vector.shape_cast %27 : vector<8x8x36xbf16> to vector<64x36xbf16>
    %c0_42 = arith.constant 0 : index
    %c0_43 = arith.constant 0 : index
    %29 = vector.load %arg2[%c0_42, %c0_43] : memref<36x128xbf16, #tpu.memory_space<vmem>>, vector<36x128xbf16>
    %cst_44 = arith.constant dense<0.000000e+00> : vector<64x128xf32>
    %30 = tpu.matmul %28, %29, %cst_44 {dimension_numbers = #tpu.dot_dimension_numbers<[1], [0], [0], [1], [0, 0, 1, 1], [], []>} : vector<64x36xbf16>, vector<36x128xbf16>, vector<64x128xf32> -> vector<64x128xf32>
    %c0_45 = arith.constant 0 : index
    %c0_46 = arith.constant 0 : index
    %31 = vector.load %arg3[%c0_45, %c0_46] : memref<1x128xf32, #tpu.memory_space<vmem>>, vector<1x128xf32>
    %32 = vector.broadcast %31 : vector<1x128xf32> to vector<64x128xf32>
    %33 = arith.mulf %30, %32 : vector<64x128xf32>
    %c0_47 = arith.constant 0 : index
    %c0_48 = arith.constant 0 : index
    %34 = vector.load %arg4[%c0_47, %c0_48] : memref<1x128xf32, #tpu.memory_space<vmem>>, vector<1x128xf32>
    %35 = vector.broadcast %34 : vector<1x128xf32> to vector<64x128xf32>
    %36 = arith.addf %33, %35 : vector<64x128xf32>
    %cst_49 = arith.constant 0.000000e+00 : f32
    %37 = vector.broadcast %cst_49 : f32 to vector<64x128xf32>
    %38 = arith.maximumf %36, %37 : vector<64x128xf32>
    %39 = vector.shape_cast %38 : vector<64x128xf32> to vector<8x8x128xf32>
    %cst_50 = arith.constant 0.000000e+00 : bf16
    %40 = vector.broadcast %cst_50 : bf16 to vector<1x10x128xbf16>
    %cst_51 = arith.constant 0.000000e+00 : bf16
    %41 = vector.broadcast %cst_51 : bf16 to vector<8x1x128xbf16>
    %c0_52 = arith.constant 0 : index
    %c0_53 = arith.constant 0 : index
    %c0_54 = arith.constant 0 : index
    %42 = vector.load %arg10[%c0_52, %c0_53, %c0_54] : memref<10x10x128xbf16, #tpu.memory_space<vmem>>, vector<1x10x128xbf16>
    tpu.vector_store %arg10[%c0_52, %c0_53, %c0_54], %40 {strides = array<i32>} : memref<10x10x128xbf16, #tpu.memory_space<vmem>>, vector<1x10x128xbf16>,
    %c9_55 = arith.constant 9 : index
    %c0_56 = arith.constant 0 : index
    %c0_57 = arith.constant 0 : index
    %43 = vector.load %arg10[%c9_55, %c0_56, %c0_57] : memref<10x10x128xbf16, #tpu.memory_space<vmem>>, vector<1x10x128xbf16>
    tpu.vector_store %arg10[%c9_55, %c0_56, %c0_57], %40 {strides = array<i32>} : memref<10x10x128xbf16, #tpu.memory_space<vmem>>, vector<1x10x128xbf16>,
    %c1_58 = arith.constant 1 : index
    %c0_59 = arith.constant 0 : index
    %c0_60 = arith.constant 0 : index
    %44 = vector.load %arg10[%c1_58, %c0_59, %c0_60] : memref<10x10x128xbf16, #tpu.memory_space<vmem>>, vector<8x1x128xbf16>
    tpu.vector_store %arg10[%c1_58, %c0_59, %c0_60], %41 {strides = array<i32>} : memref<10x10x128xbf16, #tpu.memory_space<vmem>>, vector<8x1x128xbf16>,
    %c1_61 = arith.constant 1 : index
    %c9_62 = arith.constant 9 : index
    %c0_63 = arith.constant 0 : index
    %45 = vector.load %arg10[%c1_61, %c9_62, %c0_63] : memref<10x10x128xbf16, #tpu.memory_space<vmem>>, vector<8x1x128xbf16>
    tpu.vector_store %arg10[%c1_61, %c9_62, %c0_63], %41 {strides = array<i32>} : memref<10x10x128xbf16, #tpu.memory_space<vmem>>, vector<8x1x128xbf16>,
    %46 = arith.truncf %39 : vector<8x8x128xf32> to vector<8x8x128xbf16>
    %c1_64 = arith.constant 1 : index
    %c1_65 = arith.constant 1 : index
    %c0_66 = arith.constant 0 : index
    %47 = vector.load %arg10[%c1_64, %c1_65, %c0_66] : memref<10x10x128xbf16, #tpu.memory_space<vmem>>, vector<8x8x128xbf16>
    tpu.vector_store %arg10[%c1_64, %c1_65, %c0_66], %46 {strides = array<i32>} : memref<10x10x128xbf16, #tpu.memory_space<vmem>>, vector<8x8x128xbf16>,
    %c0_67 = arith.constant 0 : index
    %c0_68 = arith.constant 0 : index
    %c0_69 = arith.constant 0 : index
    %48 = vector.load %arg10[%c0_67, %c0_68, %c0_69] : memref<10x10x128xbf16, #tpu.memory_space<vmem>>, vector<8x8x128xbf16>
    %c0_70 = arith.constant 0 : index
    %c1_71 = arith.constant 1 : index
    %c0_72 = arith.constant 0 : index
    %49 = vector.load %arg10[%c0_70, %c1_71, %c0_72] : memref<10x10x128xbf16, #tpu.memory_space<vmem>>, vector<8x8x128xbf16>
    %c0_73 = arith.constant 0 : index
    %c2_74 = arith.constant 2 : index
    %c0_75 = arith.constant 0 : index
    %50 = vector.load %arg10[%c0_73, %c2_74, %c0_75] : memref<10x10x128xbf16, #tpu.memory_space<vmem>>, vector<8x8x128xbf16>
    %c1_76 = arith.constant 1 : index
    %c0_77 = arith.constant 0 : index
    %c0_78 = arith.constant 0 : index
    %51 = vector.load %arg10[%c1_76, %c0_77, %c0_78] : memref<10x10x128xbf16, #tpu.memory_space<vmem>>, vector<8x8x128xbf16>
    %c1_79 = arith.constant 1 : index
    %c1_80 = arith.constant 1 : index
    %c0_81 = arith.constant 0 : index
    %52 = vector.load %arg10[%c1_79, %c1_80, %c0_81] : memref<10x10x128xbf16, #tpu.memory_space<vmem>>, vector<8x8x128xbf16>
    %c1_82 = arith.constant 1 : index
    %c2_83 = arith.constant 2 : index
    %c0_84 = arith.constant 0 : index
    %53 = vector.load %arg10[%c1_82, %c2_83, %c0_84] : memref<10x10x128xbf16, #tpu.memory_space<vmem>>, vector<8x8x128xbf16>
    %c2_85 = arith.constant 2 : index
    %c0_86 = arith.constant 0 : index
    %c0_87 = arith.constant 0 : index
    %54 = vector.load %arg10[%c2_85, %c0_86, %c0_87] : memref<10x10x128xbf16, #tpu.memory_space<vmem>>, vector<8x8x128xbf16>
    %c2_88 = arith.constant 2 : index
    %c1_89 = arith.constant 1 : index
    %c0_90 = arith.constant 0 : index
    %55 = vector.load %arg10[%c2_88, %c1_89, %c0_90] : memref<10x10x128xbf16, #tpu.memory_space<vmem>>, vector<8x8x128xbf16>
    %c2_91 = arith.constant 2 : index
    %c2_92 = arith.constant 2 : index
    %c0_93 = arith.constant 0 : index
    %56 = vector.load %arg10[%c2_91, %c2_92, %c0_93] : memref<10x10x128xbf16, #tpu.memory_space<vmem>>, vector<8x8x128xbf16>
    %57 = tpu.concatenate %48, %49, %50, %51, %52, %53, %54, %55, %56 in 2 : vector<8x8x128xbf16>, vector<8x8x128xbf16>, vector<8x8x128xbf16>, vector<8x8x128xbf16>, vector<8x8x128xbf16>, vector<8x8x128xbf16>, vector<8x8x128xbf16>, vector<8x8x128xbf16>, vector<8x8x128xbf16> -> vector<8x8x1152xbf16>
    %58 = vector.shape_cast %57 : vector<8x8x1152xbf16> to vector<64x1152xbf16>
    %c0_94 = arith.constant 0 : index
    %c0_95 = arith.constant 0 : index
    %59 = vector.load %arg5[%c0_94, %c0_95] : memref<1152x128xbf16, #tpu.memory_space<vmem>>, vector<1152x128xbf16>
    %cst_96 = arith.constant dense<0.000000e+00> : vector<64x128xf32>
    %60 = tpu.matmul %58, %59, %cst_96 {dimension_numbers = #tpu.dot_dimension_numbers<[1], [0], [0], [1], [0, 0, 1, 1], [], []>} : vector<64x1152xbf16>, vector<1152x128xbf16>, vector<64x128xf32> -> vector<64x128xf32>
    %c0_97 = arith.constant 0 : index
    %c0_98 = arith.constant 0 : index
    %61 = vector.load %arg6[%c0_97, %c0_98] : memref<1x128xf32, #tpu.memory_space<vmem>>, vector<1x128xf32>
    %62 = vector.broadcast %61 : vector<1x128xf32> to vector<64x128xf32>
    %63 = arith.mulf %60, %62 : vector<64x128xf32>
    %c0_99 = arith.constant 0 : index
    %c0_100 = arith.constant 0 : index
    %64 = vector.load %arg7[%c0_99, %c0_100] : memref<1x128xf32, #tpu.memory_space<vmem>>, vector<1x128xf32>
    %65 = vector.broadcast %64 : vector<1x128xf32> to vector<64x128xf32>
    %66 = arith.addf %63, %65 : vector<64x128xf32>
    %cst_101 = arith.constant 0.000000e+00 : f32
    %67 = vector.broadcast %cst_101 : f32 to vector<64x128xf32>
    %68 = arith.maximumf %66, %67 : vector<64x128xf32>
    %69 = vector.shape_cast %68 : vector<64x128xf32> to vector<8x8x128xf32>
    %c0_102 = arith.constant 0 : index
    %c0_103 = arith.constant 0 : index
    %c0_104 = arith.constant 0 : index
    %c0_105 = arith.constant 0 : index
    %70 = vector.load %arg8[%c0_102, %c0_103, %c0_104, %c0_105] : memref<1x8x8x128xf32, #tpu.memory_space<vmem>>, vector<1x8x8x128xf32>
    %71 = vector.shape_cast %70 : vector<1x8x8x128xf32> to vector<8x8x128xf32>
    %72 = vector.shape_cast %69 : vector<8x8x128xf32> to vector<1x8x8x128xf32>
    tpu.vector_store %arg8[%c0_102, %c0_103, %c0_104, %c0_105], %72 {strides = array<i32>} : memref<1x8x8x128xf32, #tpu.memory_space<vmem>>, vector<1x8x8x128xf32>,
    return
  }
  func.func @transform_0(%arg0: i32) -> (i32, i32, i32) {
    %c0_i32 = arith.constant 0 : i32
    %c0_i32_0 = arith.constant 0 : i32
    %c0_i32_1 = arith.constant 0 : i32
    return %arg0, %c0_i32, %c0_i32_0 : i32, i32, i32
  }
  func.func @transform_1(%arg0: i32) -> (i32, i32) {
    %c0_i32 = arith.constant 0 : i32
    %c0_i32_0 = arith.constant 0 : i32
    %c0_i32_1 = arith.constant 0 : i32
    return %c0_i32, %c0_i32_0 : i32, i32
  }
  func.func @transform_2(%arg0: i32) -> (i32, i32) {
    %c0_i32 = arith.constant 0 : i32
    %c0_i32_0 = arith.constant 0 : i32
    %c0_i32_1 = arith.constant 0 : i32
    return %c0_i32, %c0_i32_0 : i32, i32
  }
  func.func @transform_3(%arg0: i32) -> (i32, i32) {
    %c0_i32 = arith.constant 0 : i32
    %c0_i32_0 = arith.constant 0 : i32
    %c0_i32_1 = arith.constant 0 : i32
    return %c0_i32, %c0_i32_0 : i32, i32
  }
  func.func @transform_4(%arg0: i32) -> (i32, i32) {
    %c0_i32 = arith.constant 0 : i32
    %c0_i32_0 = arith.constant 0 : i32
    %c0_i32_1 = arith.constant 0 : i32
    return %c0_i32, %c0_i32_0 : i32, i32
  }
  func.func @transform_5(%arg0: i32) -> (i32, i32) {
    %c0_i32 = arith.constant 0 : i32
    %c0_i32_0 = arith.constant 0 : i32
    %c0_i32_1 = arith.constant 0 : i32
    return %c0_i32, %c0_i32_0 : i32, i32
  }
  func.func @transform_6(%arg0: i32) -> (i32, i32) {
    %c0_i32 = arith.constant 0 : i32
    %c0_i32_0 = arith.constant 0 : i32
    %c0_i32_1 = arith.constant 0 : i32
    return %c0_i32, %c0_i32_0 : i32, i32
  }
  func.func @transform_7(%arg0: i32) -> (i32, i32, i32, i32) {
    %c0_i32 = arith.constant 0 : i32
    %c0_i32_0 = arith.constant 0 : i32
    %c0_i32_1 = arith.constant 0 : i32
    %c0_i32_2 = arith.constant 0 : i32
    return %arg0, %c0_i32, %c0_i32_0, %c0_i32_1 : i32, i32, i32, i32
  }
}

</mosaic_0001>

<bundles_post_ra>
// kernel: down_forward.1
= control target key start
LH: loop header
LB: loop body
LE: loop exit
PB: predicated region body
PF: predicated region fallthrough
CT: control target
= control target key end

     0   :  { %12 = vsyncpa [#allocation5], 0  ;;  %s4928_s24 = smov 0   ;;  %s6184_s0 = inlined_call_operand.vmem [shape: f32[2,16,64], index: 0, kind: input, shape index: {}]   ;;  %s6185_s1 = inlined_call_operand.vmem [shape: bf16[36,128], index: 1, kind: input, shape index: {}]   ;;  %s6186_s2 = inlined_call_operand.vmem [shape: f32[1,128], index: 2, kind: input, shape index: {}]   ;;  %s6187_s3 = inlined_call_operand.vmem [shape: f32[1,128], index: 3, kind: input, shape index: {}]   ;;  %s6188_s4 = inlined_call_operand.hbm [shape: bf16[1152,128], index: 4, kind: input, shape index: {}]   ;;  %s6189_s5 = inlined_call_operand.vmem [shape: f32[1,128], index: 5, kind: input, shape index: {}]   ;;  %s6190_s6 = inlined_call_operand.vmem [shape: f32[1,128], index: 6, kind: input, shape index: {}]   ;;  %s6191_s7 = inlined_call_operand.vmem [shape: f32[2,8,8,128], index: 7, kind: output, shape index: {}]  }
   0x1 LB: > { %s4934_s25 = sadd.s32 4294967295, %s4864_s24   ;;  %p4081_p0 = scmp.ge.s32.totalorder %s4864_s24, 1  ;;  %s4864_s24 = sphi %s4928_s24, %s18_s24  }
   0x2   : > { %p201_p1 = scmp.lt.s32.totalorder %s4864_s24, 3  ;;  %s4866_s26 = smov [#allocation4]  }
   0x3   : > { %s222_s27 = sshll.u32 %s4866_s26, 4  ;;  %p4595_p3 = scmp.eq.s32.totalorder %s4934_s25, 0  ;;  %s223_s27 = int_to_ptr.vmem [resolvable:$true] %s222_s27 }
   0x4   : > { %p4938_p2 = pnand %p4081_p0, %p201_p1  ;;  %s4839_s29 = scalar_lea.vmem %s223_s27, 9216 }
   0x5   : > { %p4840_p7 = scmp.ne.s32.totalorder %s223_s27, %s4839_s29  ;;  %p4847_p10 = scmp.lt.s32.totalorder %s223_s27, %s223_s27 }
   0x6   : > { %p4591_p4 = pneg %p4938_p2  ;;  %p4848_p11 = scmp.lt.s32.totalorder %s4839_s29, %s4839_s29 }
   0x8   : > { %p4592_p5 = pnand %p4595_p3, %p4591_p4  ;;  %p4849_p12 = por %p4848_p11, %p4847_p10 }
   0xa   : > { %p4830_p6 = pneg %p4592_p5 }
   0xc   : > { %p4842_p8 = pnand %p4840_p7, %p4830_p6 }
   0xe   : > { %p4843_p9 = pneg %p4842_p8 }
  0x10   : > { %p4850_p13 = pnand %p4849_p12, %p4843_p9 }
  0x12   : > { %4853 = shalt.err (!%p4850_p13)
}
  0x13   : > { %s4867_s30 = smov 64   ;;  %s4868_s8 = smov 4  }
  0x14   : > { %4594 = dma.hbm_to_vmem [thread:$0]  (!%p4592_p5), %s6188_s4, 9216, %s223_s27, [#allocation5], %s4867_s30, %s4867_s30, %s4868_s8  }
  0x15   : > { %252 = sbr.rel (%p4938_p2) target bundleno = 1117 (0x45d), region = 48 }
  0x1a   : > { %4859 = dma.done.wait (%p4595_p3), [#allocation5], 9216  }
  0x1b   : > { %4861 = vsyncadd (%p4595_p3), [#allocation5], 4294958080  ;;  %p284_p0 = scmp.lt.s32.totalorder %s4934_s25, 1  ;;  %v303_v0 = vlaneseq  ;;  %v4869_v1 = vmov 1983009808   ;;  %s4870_s15 = smov 104  }
  0x1c   : > { %v301_v2 = vunpack.c.l.s4 %v4869_v1  ;;  %s4871_s16 = smov 120   ;;  %s4872_s17 = smov 96   ;;  %v4877_v34 = vmov 1934713408   ;;  %vm965_vm0 = vcmask 27648   ;;  %vm967_vm1 = vcmask 24576  }
  0x1d   : > { %s6224_s25 = smov (!%p284_p0, %s4934_s25), 1  ;;  %v4960_v3 = vshrl.u32 %v303_v0, 7  ;;  %s4873_s18 = smov 112   ;;  %v551_v35 = vunpack.c.l.s4 %v4877_v34  ;;  %vm974_vm2 = vsmask.f32 256  ;;  %v4879_v45 = vmov 0  }
  0x1e   : > { %v302_v4 = vunpack.c.0.s8 %v301_v2  ;;  %s4351_s11 = sshll.u32 %s6224_s25, 4  ;;  %s4874_s19 = smov 80   ;;  %966 = vst.msk [vmem:[#allocation2] sm:$0xf] %vm965_vm0, %v4879_v45  ;;  %970 = vst.msk [vmem:[#allocation2 + $0x48] sm:$0xf] %vm965_vm0, %v4879_v45 }
  0x1f   : > { %s4966_s14 = scalar_lea.vmem %s6184_s0, %s4351_s11  ;;  %s4875_s20 = smov 88   ;;  %v552_v36 = vunpack.c.0.s8 %v551_v35  ;;  %vm5118_vm3 = vmand %vm967_vm1, %vm974_vm2  ;;  %v976_v47 = vld [vmem:[#allocation2 + $0x8] sm:$0x1]  ;;  %vm1000_vm4 = vsmask.f32 7938  ;;  %vm1965_vm7 = vcmask 31744  }
  0x20   : > { %v4969_v5 = vsub.s32 %v302_v4, %v4960_v3  ;;  %v295_v6 = vld [vmem:[%s4966_s14] sm:$0xff]  ;;  %s4876_s21 = smov 72   ;;  %v296_v20 = vld [vmem:[%s4966_s14 + $0x8] sm:$0xff]  ;;  %s4878_s22 = smov 124   ;;  %968 = vst.msk [vmem:[#allocation2 + $0x4] sm:$0x1] %vm967_vm1, %v4879_v45  ;;  %vm5128_vm5 = vmand %vm967_vm1, %vm1000_vm4 }
  0x21   : > { %v299_v8 = vcombine.high %v295_v6, %v295_v6  ;;  %v316_v25 = vcombine.high %v296_v20, %v296_v20  ;;  %v5106_v37 = vsub.s32 %v552_v36, %v4960_v3  ;;  %v1002_v48 = vld [vmem:[#allocation2 + $0xc] sm:$0x1]  ;;  %971 = vst.msk [vmem:[#allocation2 + $0x4c] sm:$0x1] %vm967_vm1, %v4879_v45  ;;  %2269 = vst [vmem:[#allocation3] sm:$0xf] %v4879_v45 }
  0x22   : > { %v306_v7 = vrot.slane %v295_v6, %v4969_v5  ;;  %v323_v21 = vrot.slane %v296_v20, %v4969_v5  ;;  %2270 = vst [vmem:[#allocation3 + $0x4] sm:$0x1] %v4879_v45  ;;  %2272 = vst [vmem:[#allocation3 + $0x48] sm:$0xf] %v4879_v45  ;;  %v977_v49 = vsel %vm5118_vm3, 0, %v976_v47  ;;  %v1003_v52 = vsel %vm5128_vm5, 0, %v1002_v48 }
  0x23   : > { %v313_v11 = vrot.slane %v299_v8, %v4969_v5  ;;  %v330_v27 = vrot.slane %v316_v25, %v4969_v5  ;;  %2273 = vst [vmem:[#allocation3 + $0x4c] sm:$0x1] %v4879_v45  ;;  %978 = vst [vmem:[#allocation2 + $0x8] sm:$0x1] %v977_v49  ;;  %v982_v36 = vld [vmem:[#allocation2 + $0x18] sm:$0x1] }
  0x24   : > { %v4090_v9 = vrot.slane %v306_v7, 9  ;;  %v314_v10 = vcombine.high %v306_v7, %v306_v7  ;;  %v4094_v22 = vrot.slane %v323_v21, 9  ;;  %v331_v24 = vcombine.high %v323_v21, %v323_v21  ;;  %1004 = vst [vmem:[#allocation2 + $0xc] sm:$0x1] %v1003_v52  ;;  %s4880_s23 = smov 4   ;;  %s4881_s26 = smov 8   ;;  %vm5342_vm6 = vmand %vm965_vm0, %vm1000_vm4 }
  0x25   : > { %v315_v13 = vcombine.high %v313_v11, %v313_v11  ;;  %v4092_v15 = vrot.slane %v313_v11, 9  ;;  %v4096_v29 = vrot.slane %v330_v27, 9  ;;  %v332_v31 = vcombine.high %v330_v27, %v330_v27  ;;  %s4882_s27 = smov 24   ;;  %s4883_s28 = smov 12  }
  0x26   : > { %v4974_v12 = vmax.f32 %v306_v7, %v4090_v9  ;;  %v4091_v14 = vrot.slane %v314_v10, 9  ;;  %v5040_v23 = vmax.f32 %v323_v21, %v4094_v22  ;;  %v4095_v26 = vrot.slane %v331_v24, 9  ;;  %s4884_s29 = smov 20   ;;  %s4885_s30 = smov 32  }
  0x27   : > { %v4093_v16 = vrot.slane %v315_v13, 9  ;;  %v4994_v18 = vmax.f32 %v313_v11, %v4092_v15  ;;  %v5061_v30 = vmax.f32 %v330_v27, %v4096_v29  ;;  %v4097_v32 = vrot.slane %v332_v31, 9  ;;  %v1005_v11 = vld [vmem:[#allocation2 + $0x14] sm:$0x1]  ;;  %s4886_s8 = smov 28   ;;  %s4887_s9 = smov 16  }
  0x28   : > { %429 = vrot.lane.b32.xlu1 %v4974_v12, %s4870_s15  ;;  %381 = vrot.lane.b32.xlu0 %v4974_v12, %s4871_s16  ;;  %v4988_v17 = vmax.f32 %v314_v10, %v4091_v14  ;;  %v5055_v28 = vmax.f32 %v331_v24, %v4095_v26  ;;  %v979_v10 = vld [vmem:[#allocation2 + $0x10] sm:$0x1]  ;;  %v1006_v14 = vsel %vm5128_vm5, 0, %v1005_v11  ;;  %v988_v11 = vld [vmem:[#allocation2 + $0x28] sm:$0x1]  ;;  %vm1990_vm8 = vcmask 64512  }
  0x29   : > { %v5020_v19 = vmax.f32 %v315_v13, %v4093_v16  ;;  %v5087_v33 = vmax.f32 %v332_v31, %v4097_v32  ;;  %v980_v13 = vsel %vm5118_vm3, 0, %v979_v10  ;;  %1007 = vst [vmem:[#allocation2 + $0x14] sm:$0x1] %v1006_v14  ;;  %vm2007_vm9 = vcmask 97280  }
  0x2a   : > { %981 = vst [vmem:[#allocation2 + $0x10] sm:$0x1] %v980_v13  ;;  %vm2162_vm10 = vcmask 1041408   ;;  %vm2024_vm11 = vcmask 130048   ;;  %vm2041_vm12 = vcmask 162816   ;;  %vm2058_vm13 = vcmask 195584  }
  0x2b   : > { %vm2075_vm14 = vcmask 228352   ;;  %vm2092_vm15 = vcmask 261120   ;;  %vm2149_vm0 = vcmask 293888   ;;  %vm2275_vm1 = vcmask 1040384  }
  0x2c   : > { %453 = vrot.lane.b32.xlu1 %v4974_v12, %s4872_s17  ;;  %405 = vrot.lane.b32.xlu0 %v4974_v12, %s4873_s18 }
  0x30   : > { %501 = vrot.lane.b32.xlu1 %v4974_v12, %s4874_s19  ;;  %477 = vrot.lane.b32.xlu0 %v4974_v12, %s4875_s20 }
  0x34   : > { %525 = vrot.lane.b32.xlu0 %v4974_v12, %s4876_s21  ;;  %383 = vrot.lane.b32.xlu1 %v4988_v17, %s4871_s16 }
  0x38   : > { %407 = vrot.lane.b32.xlu1 %v4988_v17, %s4873_s18  ;;  %385 = vrot.lane.b32.xlu0 %v4994_v18, %s4871_s16 }
  0x3c   : > { %431 = vrot.lane.b32.xlu1 %v4988_v17, %s4870_s15  ;;  %409 = vrot.lane.b32.xlu0 %v4994_v18, %s4873_s18 }
  0x40   : > { %455 = vrot.lane.b32.xlu1 %v4988_v17, %s4872_s17  ;;  %433 = vrot.lane.b32.xlu0 %v4994_v18, %s4870_s15 }
  0x44   : > { %479 = vrot.lane.b32.xlu1 %v4988_v17, %s4875_s20  ;;  %457 = vrot.lane.b32.xlu0 %v4994_v18, %s4872_s17 }
  0x48   : > { %503 = vrot.lane.b32.xlu1 %v4988_v17, %s4874_s19  ;;  %481 = vrot.lane.b32.xlu0 %v4994_v18, %s4875_s20 }
  0x4c   : > { %527 = vrot.lane.b32.xlu1 %v4988_v17, %s4876_s21  ;;  %505 = vrot.lane.b32.xlu0 %v4994_v18, %s4874_s19 }
  0x50   : > { %529 = vrot.lane.b32.xlu0 %v4994_v18, %s4876_s21  ;;  %387 = vrot.lane.b32.xlu1 %v5020_v19, %s4871_s16 }
  0x54   : > { %411 = vrot.lane.b32.xlu0 %v5020_v19, %s4873_s18  ;;  %435 = vrot.lane.b32.xlu1 %v5020_v19, %s4870_s15 }
  0x58   : > { %459 = vrot.lane.b32.xlu0 %v5020_v19, %s4872_s17  ;;  %483 = vrot.lane.b32.xlu1 %v5020_v19, %s4875_s20 }
  0x5c   : > { %507 = vrot.lane.b32.xlu0 %v5020_v19, %s4874_s19  ;;  %531 = vrot.lane.b32.xlu1 %v5020_v19, %s4876_s21 }
  0x60   : > { %389 = vrot.lane.b32.xlu0 %v5040_v23, %s4871_s16  ;;  %413 = vrot.lane.b32.xlu1 %v5040_v23, %s4873_s18 }
  0x64   : > { %437 = vrot.lane.b32.xlu0 %v5040_v23, %s4870_s15  ;;  %461 = vrot.lane.b32.xlu1 %v5040_v23, %s4872_s17 }
  0x68   : > { %485 = vrot.lane.b32.xlu0 %v5040_v23, %s4875_s20  ;;  %509 = vrot.lane.b32.xlu1 %v5040_v23, %s4874_s19 }
  0x6c   : > { %533 = vrot.lane.b32.xlu0 %v5040_v23, %s4876_s21  ;;  %391 = vrot.lane.b32.xlu1 %v5055_v28, %s4871_s16 }
  0x70   : > { %393 = vrot.lane.b32.xlu0 %v5061_v30, %s4871_s16  ;;  %415 = vrot.lane.b32.xlu1 %v5055_v28, %s4873_s18 }
  0x74   : > { %417 = vrot.lane.b32.xlu0 %v5061_v30, %s4873_s18  ;;  %439 = vrot.lane.b32.xlu1 %v5055_v28, %s4870_s15 }
  0x78   : > { %441 = vrot.lane.b32.xlu0 %v5061_v30, %s4870_s15  ;;  %463 = vrot.lane.b32.xlu1 %v5055_v28, %s4872_s17 }
  0x7c   : > { %465 = vrot.lane.b32.xlu0 %v5061_v30, %s4872_s17  ;;  %487 = vrot.lane.b32.xlu1 %v5055_v28, %s4875_s20 }
  0x80   : > { %489 = vrot.lane.b32.xlu0 %v5061_v30, %s4875_s20  ;;  %511 = vrot.lane.b32.xlu1 %v5055_v28, %s4874_s19 }
  0x84   : > { %513 = vrot.lane.b32.xlu0 %v5061_v30, %s4874_s19  ;;  %535 = vrot.lane.b32.xlu1 %v5055_v28, %s4876_s21 }
  0x88   : > { %537 = vrot.lane.b32.xlu0 %v5061_v30, %s4876_s21  ;;  %395 = vrot.lane.b32.xlu1 %v5087_v33, %s4871_s16 }
  0x8c   : > { %419 = vrot.lane.b32.xlu0 %v5087_v33, %s4873_s18  ;;  %443 = vrot.lane.b32.xlu1 %v5087_v33, %s4870_s15 }
  0x90   : > { %467 = vrot.lane.b32.xlu0 %v5087_v33, %s4872_s17  ;;  %491 = vrot.lane.b32.xlu1 %v5087_v33, %s4875_s20 }
  0x94   : > { %515 = vrot.lane.b32.xlu0 %v5087_v33, %s4874_s19  ;;  %539 = vrot.lane.b32.xlu1 %v5087_v33, %s4876_s21 }
  0x9a   : > { %v430_v38 = vpop.permute.xlu1 %429  ;;  %v382_v39 = vpop.permute.xlu0 %381 }
  0x9b   : > { %v549_v40 = vcombine.low %v4974_v12, %v382_v39 }
  0x9d   : > { %v5110_v41 = vrot.slane %v549_v40, %v5106_v37 }
  0x9e   : > { %v454_v42 = vpop.permute.xlu1 %453  ;;  %v406_v43 = vpop.permute.xlu0 %405 }
  0x9f   : > { %v557_v44 = vcombine.low %v406_v43, %v430_v38  ;;  %837 = vrot.lane.b32.xlu0 %v5110_v41, %s4878_s22  ;;  %v1008_v38 = vld [vmem:[#allocation2 + $0x1c] sm:$0x1] }
  0xa1   : > { %v5133_v51 = vrot.slane %v557_v44, %v5106_v37 }
  0xa2   : > { %v502_v53 = vpop.permute.xlu1 %501  ;;  %v478_v54 = vpop.permute.xlu0 %477 }
  0xa3   : > { %v565_v55 = vcombine.low %v454_v42, %v478_v54  ;;  %839 = vrot.lane.b32.xlu1 %v5133_v51, %s4878_s22  ;;  %v983_v42 = vsel %vm5118_vm3, 0, %v982_v36  ;;  %v1011_v54 = vld [vmem:[#allocation2 + $0x24] sm:$0x1] }
  0xa4   : > { %984 = vst [vmem:[#allocation2 + $0x18] sm:$0x1] %v983_v42 }
  0xa5   : > { %v5140_v56 = vrot.slane %v565_v55, %v5106_v37 }
  0xa6   : > { %v526_v57 = vpop.permute.xlu0 %525  ;;  %v384_v58 = vpop.permute.xlu1 %383 }
  0xa7   : > { %v573_v59 = vcombine.low %v502_v53, %v526_v57  ;;  %v581_v60 = vcombine.low %v4988_v17, %v384_v58  ;;  %841 = vrot.lane.b32.xlu0 %v5140_v56, %s4878_s22  ;;  %v985_v53 = vld [vmem:[#allocation2 + $0x20] sm:$0x1] }
  0xa8   : > { %v986_v58 = vsel %vm5118_vm3, 0, %v985_v53 }
  0xa9   : > { %v5146_v61 = vrot.slane %v573_v59, %v5106_v37  ;;  %v5149_v62 = vrot.slane %v581_v60, %v5106_v37  ;;  %v1012_v59 = vsel %vm5128_vm5, 0, %v1011_v54  ;;  %987 = vst [vmem:[#allocation2 + $0x20] sm:$0x1] %v986_v58 }
  0xaa   : > { %v408_v63 = vpop.permute.xlu1 %407  ;;  %v386_v0 = vpop.permute.xlu0 %385  ;;  %1013 = vst [vmem:[#allocation2 + $0x24] sm:$0x1] %v1012_v59 }
  0xab   : > { %845 = vrot.lane.b32.xlu0 %v5149_v62, %s4878_s22  ;;  %843 = vrot.lane.b32.xlu1 %v5146_v61, %s4878_s22  ;;  %v613_v15 = vcombine.low %v4994_v18, %v386_v0 }
  0xad   : > { %v5171_v21 = vrot.slane %v613_v15, %v5106_v37 }
  0xae   : > { %v432_v1 = vpop.permute.xlu1 %431  ;;  %v410_v2 = vpop.permute.xlu0 %409 }
  0xaf   : > { %v589_v3 = vcombine.low %v408_v63, %v432_v1 }
  0xb1   : > { %v5156_v4 = vrot.slane %v589_v3, %v5106_v37 }
  0xb2   : > { %v456_v6 = vpop.permute.xlu1 %455  ;;  %v434_v7 = vpop.permute.xlu0 %433 }
  0xb3   : > { %847 = vrot.lane.b32.xlu1 %v5156_v4, %s4878_s22  ;;  %v621_v27 = vcombine.low %v410_v2, %v434_v7 }
  0xb5   : > { %v5187_v35 = vrot.slane %v621_v27, %v5106_v37 }
  0xb6   : > { %v480_v8 = vpop.permute.xlu1 %479  ;;  %v458_v9 = vpop.permute.xlu0 %457 }
  0xb7   : > { %v597_v12 = vcombine.low %v456_v6, %v480_v8 }
  0xb9   : > { %v5166_v16 = vrot.slane %v597_v12, %v5106_v37  ;;  %v1014_v12 = vld [vmem:[#allocation2 + $0x2c] sm:$0x1] }
  0xba   : > { %v504_v17 = vpop.permute.xlu1 %503  ;;  %v482_v20 = vpop.permute.xlu0 %481  ;;  %v1015_v14 = vsel %vm5128_vm5, 0, %v1014_v12 }
  0xbb   : > { %849 = vrot.lane.b32.xlu0 %v5166_v16, %s4878_s22  ;;  %v629_v22 = vcombine.low %v458_v9, %v482_v20  ;;  %1016 = vst [vmem:[#allocation2 + $0x2c] sm:$0x1] %v1015_v14 }
  0xbd   : > { %v5176_v18 = vrot.slane %v629_v22, %v5106_v37 }
  0xbe   : > { %v528_v24 = vpop.permute.xlu1 %527  ;;  %v506_v25 = vpop.permute.xlu0 %505 }
  0xbf   : > { %v605_v26 = vcombine.low %v504_v17, %v528_v24  ;;  %853 = vrot.lane.b32.xlu0 %v5171_v21, %s4878_s22 }
  0xc1   : > { %v5179_v29 = vrot.slane %v605_v26, %v5106_v37 }
  0xc2   : > { %v530_v31 = vpop.permute.xlu0 %529  ;;  %v388_v32 = vpop.permute.xlu1 %387 }
  0xc3   : > { %v645_v34 = vcombine.low %v5020_v19, %v388_v32  ;;  %857 = vrot.lane.b32.xlu0 %v5176_v18, %s4878_s22  ;;  %851 = vrot.lane.b32.xlu1 %v5179_v29, %s4878_s22  ;;  %v637_v39 = vcombine.low %v506_v25, %v530_v31  ;;  %v1009_v19 = vsel %vm5128_vm5, 0, %v1008_v38 }
  0xc4   : > { %1010 = vst [vmem:[#allocation2 + $0x1c] sm:$0x1] %v1009_v19 }
  0xc5   : > { %v5190_v40 = vrot.slane %v645_v34, %v5106_v37  ;;  %v5201_v45 = vrot.slane %v637_v39, %v5106_v37 }
  0xc6   : > { %v412_v43 = vpop.permute.xlu0 %411  ;;  %v436_v44 = vpop.permute.xlu1 %435 }
  0xc7   : > { %855 = vrot.lane.b32.xlu1 %v5187_v35, %s4878_s22  ;;  %861 = vrot.lane.b32.xlu0 %v5190_v40, %s4878_s22  ;;  %v653_v47 = vcombine.low %v412_v43, %v436_v44 }
  0xc9   : > { %v5206_v55 = vrot.slane %v653_v47, %v5106_v37 }
  0xca   : > { %v460_v48 = vpop.permute.xlu0 %459  ;;  %v484_v49 = vpop.permute.xlu1 %483 }
  0xcb   : > { %v661_v52 = vcombine.low %v460_v48, %v484_v49  ;;  %859 = vrot.lane.b32.xlu1 %v5201_v45, %s4878_s22  ;;  %v991_v48 = vld [vmem:[#allocation2 + $0x30] sm:$0x1]  ;;  %v1017_v49 = vld [vmem:[#allocation2 + $0x34] sm:$0x1] }
  0xcc   : > { %v992_v53 = vsel %vm5118_vm3, 0, %v991_v48  ;;  %v1018_v54 = vsel %vm5128_vm5, 0, %v1017_v49 }
  0xcd   : > { %v5209_v57 = vrot.slane %v661_v52, %v5106_v37  ;;  %993 = vst [vmem:[#allocation2 + $0x30] sm:$0x1] %v992_v53  ;;  %1019 = vst [vmem:[#allocation2 + $0x34] sm:$0x1] %v1018_v54  ;;  %v1380_v53 = vld [vmem:[#allocation2] sm:$0xe] }
  0xce   : > { %v508_v60 = vpop.permute.xlu0 %507  ;;  %v532_v63 = vpop.permute.xlu1 %531 }
  0xcf   : > { %v669_v0 = vcombine.low %v508_v60, %v532_v63  ;;  %863 = vrot.lane.b32.xlu1 %v5206_v55, %s4878_s22  ;;  %865 = vrot.lane.b32.xlu0 %v5209_v57, %s4878_s22 }
  0xd1   : > { %v5220_v1 = vrot.slane %v669_v0, %v5106_v37 }
  0xd2   : > { %v390_v2 = vpop.permute.xlu0 %389  ;;  %v414_v3 = vpop.permute.xlu1 %413 }
  0xd3   : > { %v677_v6 = vcombine.low %v5040_v23, %v390_v2  ;;  %867 = vrot.lane.b32.xlu1 %v5220_v1, %s4878_s22  ;;  %v989_v23 = vsel %vm5118_vm3, 0, %v988_v11 }
  0xd4   : > { %990 = vst [vmem:[#allocation2 + $0x28] sm:$0x1] %v989_v23 }
  0xd5   : > { %v5226_v7 = vrot.slane %v677_v6, %v5106_v37 }
  0xd6   : > { %v438_v8 = vpop.permute.xlu0 %437  ;;  %v462_v9 = vpop.permute.xlu1 %461 }
  0xd7   : > { %v685_v10 = vcombine.low %v414_v3, %v438_v8  ;;  %869 = vrot.lane.b32.xlu0 %v5226_v7, %s4878_s22 }
  0xd9   : > { %v5231_v13 = vrot.slane %v685_v10, %v5106_v37 }
  0xda   : > { %v486_v15 = vpop.permute.xlu0 %485  ;;  %v510_v17 = vpop.permute.xlu1 %509 }
  0xdb   : > { %v693_v20 = vcombine.low %v462_v9, %v486_v15  ;;  %871 = vrot.lane.b32.xlu1 %v5231_v13, %s4878_s22  ;;  %v5275_v9 = vld [vmem:[#allocation2] sm:$0xf] }
  0xdd   : > { %v5240_v22 = vrot.slane %v693_v20, %v5106_v37 }
  0xde   : > { %v534_v24 = vpop.permute.xlu0 %533  ;;  %v392_v25 = vpop.permute.xlu1 %391 }
  0xdf   : > { %v701_v26 = vcombine.low %v510_v17, %v534_v24  ;;  %v709_v27 = vcombine.low %v5055_v28, %v392_v25  ;;  %873 = vrot.lane.b32.xlu0 %v5240_v22, %s4878_s22 }
  0xe1   : > { %v5246_v31 = vrot.slane %v701_v26, %v5106_v37  ;;  %v5249_v32 = vrot.slane %v709_v27, %v5106_v37 }
  0xe2   : > { %v394_v34 = vpop.permute.xlu0 %393  ;;  %v416_v36 = vpop.permute.xlu1 %415 }
  0xe3   : > { %875 = vrot.lane.b32.xlu1 %v5246_v31, %s4878_s22  ;;  %877 = vrot.lane.b32.xlu0 %v5249_v32, %s4878_s22  ;;  %v741_v58 = vcombine.low %v5061_v30, %v394_v34  ;;  %v1372_v30 = vld [vmem:[#allocation2 + $0x4] sm:$0x1] }
  0xe4   : > { %v4106_v15 = vcombine.low %v5275_v9, %v1372_v30 }
  0xe5   : > { %v5271_v0 = vrot.slane %v741_v58, %v5106_v37 }
  0xe6   : > { %v418_v38 = vpop.permute.xlu0 %417  ;;  %v440_v39 = vpop.permute.xlu1 %439  ;;  %v1480_v34 = vshll.u32 %v4106_v15, 16 }
  0xe7   : > { %v717_v28 = vcombine.low %v416_v36, %v440_v39  ;;  %v994_v36 = vld [vmem:[#allocation2 + $0x38] sm:$0x1] }
  0xe8   : > { %v1482_v48 = vrot.slane %v1480_v34, 1 }
  0xe9   : > { %v5256_v42 = vrot.slane %v717_v28, %v5106_v37 }
  0xea   : > { %v442_v19 = vpop.permute.xlu0 %441  ;;  %v464_v43 = vpop.permute.xlu1 %463 }
  0xeb   : > { %879 = vrot.lane.b32.xlu1 %v5256_v42, %s4878_s22  ;;  %v749_v10 = vcombine.low %v418_v38, %v442_v19  ;;  %v1020_v38 = vld [vmem:[#allocation2 + $0x3c] sm:$0x1] }
  0xec   : > { %v1021_v28 = vsel %vm5128_vm5, 0, %v1020_v38 }
  0xed   : > { %v5290_v20 = vrot.slane %v749_v10, %v5106_v37  ;;  %1022 = vst [vmem:[#allocation2 + $0x3c] sm:$0x1] %v1021_v28 }
  0xee   : > { %v466_v44 = vpop.permute.xlu0 %465  ;;  %v488_v47 = vpop.permute.xlu1 %487 }
  0xef   : > { %v725_v52 = vcombine.low %v464_v43, %v488_v47  ;;  %v1478_v47 = vshrl.u32 %v4106_v15, 16 }
  0xf1   : > { %v5266_v59 = vrot.slane %v725_v52, %v5106_v37 }
  0xf2   : > { %v490_v60 = vpop.permute.xlu0 %489  ;;  %v512_v63 = vpop.permute.xlu1 %511 }
  0xf3   : > { %881 = vrot.lane.b32.xlu0 %v5266_v59, %s4878_s22  ;;  %v757_v2 = vcombine.low %v466_v44, %v490_v60 }
  0xf5   : > { %v5278_v11 = vrot.slane %v757_v2, %v5106_v37  ;;  %v997_v2 = vld [vmem:[#allocation2 + $0x40] sm:$0x1] }
  0xf6   : > { %v514_v3 = vpop.permute.xlu0 %513  ;;  %v536_v6 = vpop.permute.xlu1 %535  ;;  %v998_v10 = vsel %vm5118_vm3, 0, %v997_v2 }
  0xf7   : > { %v733_v8 = vcombine.low %v512_v63, %v536_v6  ;;  %885 = vrot.lane.b32.xlu0 %v5271_v0, %s4878_s22  ;;  %v1483_v63 = vor.u32 %v1482_v48, %v1478_v47  ;;  %999 = vst [vmem:[#allocation2 + $0x40] sm:$0x1] %v998_v10 }
  0xf9   : > { %v5281_v12 = vrot.slane %v733_v8, %v5106_v37  ;;  %v4114_v8 = vcombine.low %v1380_v53, %v1372_v30 }
  0xfa   : > { %v538_v23 = vpop.permute.xlu0 %537  ;;  %v396_v14 = vpop.permute.xlu1 %395 }
  0xfb   : > { %v773_v17 = vcombine.low %v5087_v33, %v396_v14  ;;  %889 = vrot.lane.b32.xlu0 %v5278_v11, %s4878_s22  ;;  %883 = vrot.lane.b32.xlu1 %v5281_v12, %s4878_s22  ;;  %v765_v24 = vcombine.low %v514_v3, %v538_v23  ;;  %v995_v33 = vsel %vm5118_vm3, 0, %v994_v36  ;;  %v1023_v3 = vld [vmem:[#allocation2 + $0x44] sm:$0x1]  ;;  %v5322_v14 = vld [vmem:[#allocation2 + $0x48] sm:$0xf]  ;;  %v1573_v30 = vrot.slane %v4114_v8, 1 }
  0xfc   : > { %996 = vst [vmem:[#allocation2 + $0x38] sm:$0x1] %v995_v33  ;;  %v1024_v23 = vsel %vm5128_vm5, 0, %v1023_v3  ;;  %vm5813_vm5 = vmand %vm2275_vm1, %vm974_vm2  ;;  %vm2438_vm2 = vcmask 1043456  }
  0xfd   : > { %v5293_v25 = vrot.slane %v773_v17, %v5106_v37  ;;  %v5304_v19 = vrot.slane %v765_v24, %v5106_v37  ;;  %1025 = vst [vmem:[#allocation2 + $0x44] sm:$0x1] %v1024_v23  ;;  %v4153_v17 = vcombine.low %v5322_v14, %v5322_v14 }
  0xfe   : > { %v420_v26 = vpop.permute.xlu0 %419  ;;  %v444_v27 = vpop.permute.xlu1 %443 }
  0xff   : > { %v781_v39 = vcombine.low %v420_v26, %v444_v27  ;;  %887 = vrot.lane.b32.xlu1 %v5290_v20, %s4878_s22  ;;  %893 = vrot.lane.b32.xlu0 %v5293_v25, %s4878_s22 }
 0x101   : > { %v5307_v49 = vrot.slane %v781_v39, %v5106_v37 }
 0x102   : > { %v468_v43 = vpop.permute.xlu0 %467  ;;  %v492_v44 = vpop.permute.xlu1 %491 }
 0x103   : > { %v789_v52 = vcombine.low %v468_v43, %v492_v44  ;;  %891 = vrot.lane.b32.xlu1 %v5304_v19, %s4878_s22 }
 0x105   : > { %v5312_v54 = vrot.slane %v789_v52, %v5106_v37 }
 0x106   : > { %v516_v58 = vpop.permute.xlu0 %515  ;;  %v540_v60 = vpop.permute.xlu1 %539 }
 0x107   : > { %v797_v6 = vcombine.low %v516_v58, %v540_v60  ;;  %895 = vrot.lane.b32.xlu1 %v5307_v49, %s4878_s22  ;;  %897 = vrot.lane.b32.xlu0 %v5312_v54, %s4878_s22  ;;  %v1319_v58 = vld [vmem:[#allocation2 + $0xc] sm:$0x1] }
 0x109   : > { %v5325_v15 = vrot.slane %v797_v6, %v5106_v37 }
 0x10b   : > { %899 = vrot.lane.b32.xlu1 %v5325_v15, %s4878_s22  ;;  %1533 = vrot.lane.b32.xlu0 %v1483_v63, %s4880_s23 }
 0x10f   : > { %1581 = vrot.lane.b32.xlu0 %v1573_v30, %s4881_s26  ;;  %1819 = vrot.lane.b32.xlu1 %v4153_v17, %s4882_s27 }
 0x111   : > { %v838_v50 = vpop.permute.xlu0 %837 }
 0x112   : > { %v933_v27 = vmax.f32 %v5110_v41, %v838_v50 }
 0x115   : > { %v840_v24 = vpop.permute.xlu1 %839 }
 0x116   : > { %v934_v37 = vmax.f32 %v5133_v51, %v840_v24 }
 0x118   : > { %v1058_v36 = vcombine.low %v933_v27, %v934_v37 }
 0x119   : > { %v842_v26 = vpop.permute.xlu0 %841 }
 0x11a   : > { %v935_v38 = vmax.f32 %v5140_v56, %v842_v26  ;;  %v1066_v28 = vrot.slane %v1058_v36, %v4969_v5  ;;  %v1316_v56 = vld [vmem:[#allocation2 + $0x8] sm:$0xf] }
 0x11d   : > { %v844_v34 = vpop.permute.xlu1 %843  ;;  %v846_v52 = vpop.permute.xlu0 %845 }
 0x11e   : > { %v936_v39 = vmax.f32 %v5146_v61, %v844_v34  ;;  %v937_v10 = vmax.f32 %v5149_v62, %v846_v52 }
 0x120   : > { %v1059_v33 = vcombine.low %v935_v38, %v936_v39 }
 0x122   : > { %v1073_v43 = vrot.slane %v1059_v33, %v4969_v5 }
 0x124   : > { %v1074_v44 = vcombine.low %v1066_v28, %v1073_v43 }
 0x125   : > { %v848_v6 = vpop.permute.xlu1 %847 }
 0x126   : > { %v4353_v47 = vpack.c.bf16 %v1074_v44, %v1074_v44  ;;  %v938_v8 = vmax.f32 %v5156_v4, %v848_v6 }
 0x128   : > { %v1235_v48 = vshrl.u32 %v4353_v47, 16  ;;  %v1238_v51 = vshll.u32 %v4353_v47, 16  ;;  %v1075_v17 = vcombine.low %v937_v10, %v938_v8 }
 0x12a   : > { %v1237_v53 = vrot.slane %v1235_v48, 7  ;;  %v1083_v4 = vrot.slane %v1075_v17, %v4969_v5 }
 0x12c   : > { %v1240_v61 = vor.u32 %v1238_v51, %v1237_v53  ;;  %v1241_v60 = vrot.slane %v1237_v53, 4 }
 0x12d   : > { %v850_v3 = vpop.permute.xlu0 %849 }
 0x12e   : > { %v1317_v63 = vsel %vm5342_vm6, %v1240_v61, %v1316_v56  ;;  %v1320_v2 = vsel %vm5118_vm3, %v1241_v60, %v1319_v58  ;;  %v939_v50 = vmax.f32 %v5166_v16, %v850_v3  ;;  %v1322_v61 = vld [vmem:[#allocation2 + $0x10] sm:$0xf] }
 0x12f   : > { %1318 = vst [vmem:[#allocation2 + $0x8] sm:$0xf] %v1317_v63  ;;  %1321 = vst [vmem:[#allocation2 + $0xc] sm:$0x1] %v1320_v2 }
 0x131   : > { %v854_v23 = vpop.permute.xlu0 %853 }
 0x132   : > { %v941_v16 = vmax.f32 %v5171_v21, %v854_v23  ;;  %v1325_v21 = vld [vmem:[#allocation2 + $0x14] sm:$0x1] }
 0x135   : > { %v852_v30 = vpop.permute.xlu1 %851  ;;  %v858_v62 = vpop.permute.xlu0 %857 }
 0x136   : > { %v940_v24 = vmax.f32 %v5179_v29, %v852_v30  ;;  %v5354_v37 = vld [vmem:[#allocation2 + $0x8] sm:$0xf]  ;;  %v943_v33 = vmax.f32 %v5176_v18, %v858_v62 }
 0x137   : > { %v4122_v26 = vcombine.low %v5354_v37, %v5354_v37 }
 0x138   : > { %v1076_v27 = vcombine.low %v939_v50, %v940_v24 }
 0x139   : > { %1621 = vrot.lane.b32.xlu0 %v4122_v26, %s4883_s28  ;;  %v856_v34 = vpop.permute.xlu1 %855  ;;  %v862_v48 = vpop.permute.xlu0 %861 }
 0x13a   : > { %v1090_v36 = vrot.slane %v1076_v27, %v4969_v5  ;;  %v942_v38 = vmax.f32 %v5187_v35, %v856_v34  ;;  %v1331_v34 = vld [vmem:[#allocation2 + $0x1c] sm:$0x1] }
 0x13c   : > { %v1091_v29 = vcombine.low %v1083_v4, %v1090_v36  ;;  %v1092_v43 = vcombine.low %v941_v16, %v942_v38 }
 0x13d   : > { %v860_v39 = vpop.permute.xlu1 %859 }
 0x13e   : > { %v4354_v28 = vpack.c.bf16 %v1091_v29, %v1091_v29  ;;  %v944_v44 = vmax.f32 %v5201_v45, %v860_v39  ;;  %v1100_v58 = vrot.slane %v1092_v43, %v4969_v5  ;;  %v945_v45 = vmax.f32 %v5190_v40, %v862_v48  ;;  %v1328_v40 = vld [vmem:[#allocation2 + $0x18] sm:$0xf] }
 0x140   : > { %v1243_v47 = vshrl.u32 %v4354_v28, 16  ;;  %v1093_v52 = vcombine.low %v943_v33, %v944_v44  ;;  %v1246_v56 = vshll.u32 %v4354_v28, 16 }
 0x141   : > { %v864_v53 = vpop.permute.xlu1 %863  ;;  %v866_v3 = vpop.permute.xlu0 %865 }
 0x142   : > { %v1245_v51 = vrot.slane %v1243_v47, 7  ;;  %v1107_v35 = vrot.slane %v1093_v52, %v4969_v5  ;;  %v946_v60 = vmax.f32 %v5206_v55, %v864_v53  ;;  %v947_v30 = vmax.f32 %v5209_v57, %v866_v3  ;;  %v1334_v52 = vld [vmem:[#allocation2 + $0x20] sm:$0xf]  ;;  %v1337_v53 = vld [vmem:[#allocation2 + $0x24] sm:$0x1] }
 0x144   : > { %v1248_v63 = vor.u32 %v1246_v56, %v1245_v51  ;;  %v1249_v18 = vrot.slane %v1245_v51, 4  ;;  %v1108_v2 = vcombine.low %v1100_v58, %v1107_v35  ;;  %v1109_v17 = vcombine.low %v945_v45, %v946_v60 }
 0x145   : > { %v868_v6 = vpop.permute.xlu1 %867 }
 0x146   : > { %v1323_v8 = vsel %vm5342_vm6, %v1248_v63, %v1322_v61  ;;  %v1326_v10 = vsel %vm5118_vm3, %v1249_v18, %v1325_v21  ;;  %v4355_v23 = vpack.c.bf16 %v1108_v2, %v1108_v2  ;;  %v948_v55 = vmax.f32 %v5220_v1, %v868_v6 }
 0x147   : > { %1324 = vst [vmem:[#allocation2 + $0x10] sm:$0xf] %v1323_v8  ;;  %1327 = vst [vmem:[#allocation2 + $0x14] sm:$0x1] %v1326_v10  ;;  %v1117_v4 = vrot.slane %v1109_v17, %v4969_v5 }
 0x148   : > { %v1251_v50 = vshrl.u32 %v4355_v23, 16  ;;  %v1110_v24 = vcombine.low %v947_v30, %v948_v55  ;;  %v1254_v27 = vshll.u32 %v4355_v23, 16  ;;  %v1343_v23 = vld [vmem:[#allocation2 + $0x2c] sm:$0x1] }
 0x149   : > { %v870_v39 = vpop.permute.xlu0 %869 }
 0x14a   : > { %v1253_v26 = vrot.slane %v1251_v50, 7  ;;  %v1124_v62 = vrot.slane %v1110_v24, %v4969_v5  ;;  %v949_v51 = vmax.f32 %v5226_v7, %v870_v39 }
 0x14c   : > { %v1256_v36 = vor.u32 %v1254_v27, %v1253_v26  ;;  %v1257_v38 = vrot.slane %v1253_v26, 4  ;;  %v1125_v16 = vcombine.low %v1117_v4, %v1124_v62  ;;  %v5397_v4 = vld [vmem:[#allocation2 + $0xc] sm:$0x1]  ;;  %v1381_v62 = vld [vmem:[#allocation2 + $0x8] sm:$0xe] }
 0x14d   : > { %v872_v33 = vpop.permute.xlu1 %871 }
 0x14e   : > { %v1329_v29 = vsel %vm5342_vm6, %v1256_v36, %v1328_v40  ;;  %v1332_v57 = vsel %vm5118_vm3, %v1257_v38, %v1331_v34  ;;  %v4356_v1 = vpack.c.bf16 %v1125_v16, %v1125_v16  ;;  %v950_v43 = vmax.f32 %v5231_v13, %v872_v33  ;;  %v5497_v41 = vld [vmem:[#allocation2 + $0x14] sm:$0x1] }
 0x14f   : > { %1330 = vst [vmem:[#allocation2 + $0x18] sm:$0xf] %v1329_v29  ;;  %1333 = vst [vmem:[#allocation2 + $0x1c] sm:$0x1] %v1332_v57 }
 0x150   : > { %v1259_v28 = vshrl.u32 %v4356_v1, 16  ;;  %v1262_v47 = vshll.u32 %v4356_v1, 16  ;;  %v1126_v61 = vcombine.low %v949_v51, %v950_v43 }
 0x151   : > { %v874_v48 = vpop.permute.xlu0 %873 }
 0x152   : > { %v1261_v44 = vrot.slane %v1259_v28, 7  ;;  %v951_v21 = vmax.f32 %v5240_v22, %v874_v48  ;;  %v1134_v2 = vrot.slane %v1126_v61, %v4969_v5  ;;  %v5410_v28 = vld [vmem:[#allocation2 + $0xc] sm:$0x1]  ;;  %v5423_v61 = vld [vmem:[#allocation2 + $0x10] sm:$0xf] }
 0x154   : > { %v1264_v56 = vor.u32 %v1262_v47, %v1261_v44  ;;  %v1265_v58 = vrot.slane %v1261_v44, 4 }
 0x155   : > { %v876_v35 = vpop.permute.xlu1 %875  ;;  %v878_v8 = vpop.permute.xlu0 %877 }
 0x156   : > { %v952_v60 = vmax.f32 %v5246_v31, %v876_v35  ;;  %v1335_v63 = vsel %vm5342_vm6, %v1264_v56, %v1334_v52  ;;  %v1338_v13 = vsel %vm5118_vm3, %v1265_v58, %v1337_v53  ;;  %v1340_v31 = vld [vmem:[#allocation2 + $0x28] sm:$0xf]  ;;  %v953_v34 = vmax.f32 %v5249_v32, %v878_v8  ;;  %v5412_v44 = vld [vmem:[#allocation2 + $0x18] sm:$0xf] }
 0x157   : > { %1336 = vst [vmem:[#allocation2 + $0x20] sm:$0xf] %v1335_v63  ;;  %1339 = vst [vmem:[#allocation2 + $0x24] sm:$0x1] %v1338_v13  ;;  %v4124_v51 = vcombine.low %v5412_v44, %v5412_v44  ;;  %v5433_v8 = vld [vmem:[#allocation2 + $0x18] sm:$0xf] }
 0x158   : > { %v1127_v18 = vcombine.low %v951_v21, %v952_v60 }
 0x15a   : > { %v1141_v7 = vrot.slane %v1127_v18, %v4969_v5 }
 0x15c   : > { %v1142_v3 = vcombine.low %v1134_v2, %v1141_v7 }
 0x15d   : > { %v880_v26 = vpop.permute.xlu1 %879 }
 0x15e   : > { %v4357_v45 = vpack.c.bf16 %v1142_v3, %v1142_v3  ;;  %v954_v40 = vmax.f32 %v5256_v42, %v880_v26  ;;  %v4115_v42 = vcombine.low %v1381_v62, %v5397_v4  ;;  %v1349_v26 = vld [vmem:[#allocation2 + $0x34] sm:$0x1] }
 0x160   : > { %v1267_v6 = vshrl.u32 %v4357_v45, 16  ;;  %v1270_v10 = vshll.u32 %v4357_v45, 16  ;;  %v1143_v38 = vcombine.low %v953_v34, %v954_v40  ;;  %v1574_v53 = vrot.slane %v4115_v42, 1 }
 0x161   : > { %v4147_v40 = vcombine.low %v5433_v8, %v5433_v8 }
 0x162   : > { %v1269_v22 = vrot.slane %v1267_v6, 7  ;;  %v1151_v47 = vrot.slane %v1143_v38, %v4969_v5 }
 0x164   : > { %v1272_v30 = vor.u32 %v1270_v10, %v1269_v22  ;;  %v1273_v17 = vrot.slane %v1269_v22, 4  ;;  %v5435_v22 = vld [vmem:[#allocation2 + $0x10] sm:$0xf] }
 0x165   : > { %v882_v55 = vpop.permute.xlu0 %881  ;;  %v4146_v34 = vcombine.low %v5435_v22, %v5435_v22 }
 0x166   : > { %v1341_v50 = vsel %vm5342_vm6, %v1272_v30, %v1340_v31  ;;  %v1344_v24 = vsel %vm5118_vm3, %v1273_v17, %v1343_v23  ;;  %v955_v16 = vmax.f32 %v5266_v59, %v882_v55  ;;  %v1404_v59 = vld [vmem:[#allocation2 + $0x8] sm:$0xe] }
 0x167   : > { %1342 = vst [vmem:[#allocation2 + $0x28] sm:$0xf] %v1341_v50  ;;  %1345 = vst [vmem:[#allocation2 + $0x2c] sm:$0x1] %v1344_v24  ;;  %v4138_v56 = vcombine.low %v1404_v59, %v5410_v28  ;;  %v1346_v24 = vld [vmem:[#allocation2 + $0x30] sm:$0xf] }
 0x169   : > { %v886_v27 = vpop.permute.xlu0 %885  ;;  %v1757_v3 = vrot.slane %v4138_v56, 1 }
 0x16a   : > { %v957_v58 = vmax.f32 %v5271_v0, %v886_v27  ;;  %v4123_v0 = vcombine.low %v5423_v61, %v5423_v61 }
 0x16d   : > { %v884_v36 = vpop.permute.xlu1 %883  ;;  %v890_v39 = vpop.permute.xlu0 %889 }
 0x16e   : > { %v956_v29 = vmax.f32 %v5281_v12, %v884_v36  ;;  %v5401_v57 = vld [vmem:[#allocation2 + $0x28] sm:$0xf]  ;;  %v959_v63 = vmax.f32 %v5278_v11, %v890_v39  ;;  %v5428_v13 = vld [vmem:[#allocation2 + $0x2c] sm:$0x1] }
 0x16f   : > { %v5403_v1 = vld [vmem:[#allocation2 + $0x28] sm:$0xf]  ;;  %v4149_v33 = vcombine.low %v5401_v57, %v5401_v57  ;;  %v5442_v55 = vld [vmem:[#allocation2 + $0x2c] sm:$0x1] }
 0x170   : > { %v4126_v32 = vcombine.low %v5403_v1, %v5403_v1  ;;  %v1144_v43 = vcombine.low %v955_v16, %v956_v29  ;;  %v1432_v7 = vld [vmem:[#allocation2 + $0x28] sm:$0xe] }
 0x171   : > { %1811 = vrot.lane.b32.xlu1 %v4149_v33, %s4882_s27  ;;  %v888_v12 = vpop.permute.xlu1 %887  ;;  %v894_v21 = vpop.permute.xlu0 %893  ;;  %v1385_v50 = vld [vmem:[#allocation2 + $0x28] sm:$0xe] }
 0x172   : > { %1629 = vrot.lane.b32.xlu0 %v4126_v32, %s4883_s28  ;;  %v1158_v48 = vrot.slane %v1144_v43, %v4969_v5  ;;  %v958_v52 = vmax.f32 %v5290_v20, %v888_v12  ;;  %v961_v16 = vmax.f32 %v5293_v25, %v894_v21  ;;  %v4119_v39 = vcombine.low %v1385_v50, %v5442_v55  ;;  %v1355_v21 = vld [vmem:[#allocation2 + $0x3c] sm:$0x1]  ;;  %v1408_v50 = vld [vmem:[#allocation2 + $0x28] sm:$0xe] }
 0x174   : > { %v1159_v35 = vcombine.low %v1151_v47, %v1158_v48  ;;  %v1160_v18 = vcombine.low %v957_v58, %v958_v52 }
 0x175   : > { %1583 = vrot.lane.b32.xlu1 %v1574_v53, %s4881_s26  ;;  %v892_v60 = vpop.permute.xlu1 %891 }
 0x176   : > { %1625 = vrot.lane.b32.xlu0 %v4124_v51, %s4883_s28  ;;  %v4358_v20 = vpack.c.bf16 %v1159_v35, %v1159_v35  ;;  %v960_v2 = vmax.f32 %v5304_v19, %v892_v60  ;;  %v4165_v19 = vcombine.low %v1432_v7, %v5428_v13  ;;  %v1168_v30 = vrot.slane %v1160_v18, %v4969_v5  ;;  %v1352_v35 = vld [vmem:[#allocation2 + $0x38] sm:$0xf] }
 0x177   : > { %v1578_v60 = vrot.slane %v4119_v39, 1  ;;  %v1405_v39 = vld [vmem:[#allocation2 + $0x10] sm:$0xe] }
 0x178   : > { %v1275_v45 = vshrl.u32 %v4358_v20, 16  ;;  %v1161_v6 = vcombine.low %v959_v63, %v960_v2  ;;  %v1278_v23 = vshll.u32 %v4358_v20, 16  ;;  %v1944_v43 = vrot.slane %v4165_v19, 1  ;;  %v5477_v19 = vld [vmem:[#allocation2 + $0x1c] sm:$0x1] }
 0x179   : > { %v898_v10 = vpop.permute.xlu0 %897  ;;  %1623 = vrot.lane.b32.xlu1 %v4123_v0, %s4883_s28  ;;  %v896_v11 = vpop.permute.xlu1 %895 }
 0x17a   : > { %1765 = vrot.lane.b32.xlu0 %v1757_v3, %s4884_s29  ;;  %v1277_v31 = vrot.slane %v1275_v45, 7  ;;  %v1175_v17 = vrot.slane %v1161_v6, %v4969_v5  ;;  %v962_v27 = vmax.f32 %v5307_v49, %v896_v11  ;;  %v963_v25 = vmax.f32 %v5312_v54, %v898_v10  ;;  %v1358_v45 = vld [vmem:[#allocation2 + $0x40] sm:$0xf]  ;;  %v1361_v11 = vld [vmem:[#allocation2 + $0x44] sm:$0x1] }
 0x17c   : > { %v1280_v62 = vor.u32 %v1278_v23, %v1277_v31  ;;  %v1281_v36 = vrot.slane %v1277_v31, 4  ;;  %v1176_v38 = vcombine.low %v1168_v30, %v1175_v17  ;;  %v1177_v59 = vcombine.low %v961_v16, %v962_v27  ;;  %v1383_v31 = vld [vmem:[#allocation2 + $0x18] sm:$0xe]  ;;  %v5479_v23 = vld [vmem:[#allocation2 + $0x2c] sm:$0x1] }
 0x17d   : > { %1807 = vrot.lane.b32.xlu1 %v4147_v40, %s4882_s27  ;;  %v900_v29 = vpop.permute.xlu1 %899  ;;  %v1534_v49 = vpop.permute.xlu0 %1533 }
 0x17e   : > { %1805 = vrot.lane.b32.xlu0 %v4146_v34, %s4882_s27  ;;  %v1347_v33 = vsel %vm5342_vm6, %v1280_v62, %v1346_v24  ;;  %v1350_v32 = vsel %vm5118_vm3, %v1281_v36, %v1349_v26  ;;  %v4359_v42 = vpack.c.bf16 %v1176_v38, %v1176_v38  ;;  %v964_v12 = vmax.f32 %v5325_v15, %v900_v29  ;;  %v5499_v29 = vld [vmem:[#allocation2 + $0x20] sm:$0xf] }
 0x17f   : > { %1348 = vst [vmem:[#allocation2 + $0x30] sm:$0xf] %v1347_v33  ;;  %1351 = vst [vmem:[#allocation2 + $0x34] sm:$0x1] %v1350_v32  ;;  %v1968_v47 = vsel %vm1965_vm7, %v5275_v9, %v1534_v49  ;;  %v1185_v54 = vrot.slane %v1177_v59, %v4969_v5  ;;  %v4117_v62 = vcombine.low %v1383_v31, %v5477_v19  ;;  %v5504_v33 = vld [vmem:[#allocation2 + $0x14] sm:$0x1] }
 0x180   : > { %v1283_v48 = vshrl.u32 %v4359_v42, 16  ;;  %v1178_v52 = vcombine.low %v963_v25, %v964_v12  ;;  %v1286_v56 = vshll.u32 %v4359_v42, 16  ;;  %v4142_v38 = vcombine.low %v1408_v50, %v5479_v23  ;;  %v1382_v32 = vld [vmem:[#allocation2 + $0x10] sm:$0xe]  ;;  %v5510_v25 = vld [vmem:[#allocation2 + $0x1c] sm:$0x1] }
 0x181   : > { %1955 = vrot.lane.b32.xlu1 %v1944_v43, %s4885_s30  ;;  %v1582_v53 = vpop.permute.xlu0 %1581  ;;  %v1576_v46 = vrot.slane %v4117_v62, 1  ;;  %v4125_v42 = vcombine.low %v5499_v29, %v5499_v29  ;;  %v4139_v43 = vcombine.low %v1405_v39, %v5497_v41  ;;  %v4116_v12 = vcombine.low %v1382_v32, %v5504_v33  ;;  %v5557_v39 = vld [vmem:[#allocation2 + $0x24] sm:$0x1] }
 0x182   : > { %v1285_v51 = vrot.slane %v1283_v48, 7  ;;  %v5463_v58 = vsel %vm1990_vm8, %v1968_v47, %v1582_v53  ;;  %v1192_v15 = vrot.slane %v1178_v52, %v4969_v5  ;;  %v1761_v16 = vrot.slane %v4142_v38, 1  ;;  %v1430_v47 = vld [vmem:[#allocation2 + $0x18] sm:$0xe]  ;;  %v5515_v48 = vld [vmem:[#allocation2 + $0x1c] sm:$0x1] }
 0x183   : > { %v1406_v52 = vld [vmem:[#allocation2 + $0x18] sm:$0xe]  ;;  %v1758_v53 = vrot.slane %v4139_v43, 1  ;;  %v4130_v32 = vcombine.low %v5354_v37, %v5410_v28 }
 0x184   : > { %v1288_v63 = vor.u32 %v1286_v56, %v1285_v51  ;;  %v1289_v9 = vrot.slane %v1285_v51, 4  ;;  %v1193_v20 = vcombine.low %v1185_v54, %v1192_v15  ;;  %v4163_v51 = vcombine.low %v1430_v47, %v5510_v25  ;;  %v1407_v47 = vld [vmem:[#allocation2 + $0x20] sm:$0xe] }
 0x185   : > { %1591 = vrot.lane.b32.xlu1 %v1578_v60, %s4881_s26  ;;  %v1575_v56 = vrot.slane %v4116_v12, 1  ;;  %v4141_v28 = vcombine.low %v1407_v47, %v5557_v39  ;;  %v4132_v47 = vcombine.low %v5412_v44, %v5515_v48 }
 0x186   : > { %v1353_v18 = vsel %vm5342_vm6, %v1288_v63, %v1352_v35  ;;  %v1356_v2 = vsel %vm5118_vm3, %v1289_v9, %v1355_v21  ;;  %v5472_v7 = vld [vmem:[#allocation2 + $0x30] sm:$0xf]  ;;  %v4360_v0 = vpack.c.bf16 %v1193_v20, %v1193_v20  ;;  %v4140_v35 = vcombine.low %v1406_v52, %v5515_v48  ;;  %v5526_v63 = vld [vmem:[#allocation2 + $0x8] sm:$0xf]  ;;  %v5529_v20 = vld [vmem:[#allocation2 + $0x20] sm:$0xf] }
 0x187   : > { %1354 = vst [vmem:[#allocation2 + $0x38] sm:$0xf] %v1353_v18  ;;  %1357 = vst [vmem:[#allocation2 + $0x3c] sm:$0x1] %v1356_v2  ;;  %v4127_v5 = vcombine.low %v5472_v7, %v5472_v7  ;;  %v5502_v49 = vld [vmem:[#allocation2 + $0x30] sm:$0xf] }
 0x188   : > { %v1291_v3 = vshrl.u32 %v4360_v0, 16  ;;  %v1294_v10 = vshll.u32 %v4360_v0, 16  ;;  %v4150_v59 = vcombine.low %v5502_v49, %v5502_v49  ;;  %v1942_v15 = vrot.slane %v4163_v51, 1  ;;  %v5531_v18 = vld [vmem:[#allocation2 + $0x14] sm:$0x1] }
 0x189   : > { %1631 = vrot.lane.b32.xlu1 %v4127_v5, %s4883_s28  ;;  %v1759_v9 = vrot.slane %v4140_v35, 1  ;;  %v1429_v2 = vld [vmem:[#allocation2 + $0x10] sm:$0xe]  ;;  %v4107_v0 = vcombine.low %v5526_v63, %v5397_v4  ;;  %v5544_v31 = vld [vmem:[#allocation2 + $0x34] sm:$0x1]  ;;  %v1760_v35 = vrot.slane %v4141_v28, 1 }
 0x18a   : > { %v1293_v6 = vrot.slane %v1291_v3, 7  ;;  %v4148_v3 = vcombine.low %v5529_v20, %v5529_v20 }
 0x18b   : > { %v1485_v52 = vshrl.u32 %v4107_v0, 16 }
 0x18c   : > { %v1296_v30 = vor.u32 %v1294_v10, %v1293_v6  ;;  %v1297_v17 = vrot.slane %v1293_v6, 4  ;;  %v5541_v10 = vld [vmem:[#allocation2 + $0x34] sm:$0x1] }
 0x18e   : > { %v5481_v24 = vld [vmem:[#allocation2 + $0x38] sm:$0xf]  ;;  %v1359_v27 = vsel %vm5342_vm6, %v1296_v30, %v1358_v45  ;;  %v1362_v40 = vsel %vm5118_vm3, %v1297_v17, %v1361_v11  ;;  %v5521_v21 = vld [vmem:[#allocation2 + $0x3c] sm:$0x1]  ;;  %v4162_v45 = vcombine.low %v1429_v2, %v5531_v18  ;;  %v1409_v11 = vld [vmem:[#allocation2 + $0x30] sm:$0xe] }
 0x18f   : > { %v5483_v26 = vld [vmem:[#allocation2 + $0x38] sm:$0xf]  ;;  %v4151_v34 = vcombine.low %v5481_v24, %v5481_v24  ;;  %1360 = vst [vmem:[#allocation2 + $0x40] sm:$0xf] %v1359_v27  ;;  %1363 = vst [vmem:[#allocation2 + $0x44] sm:$0x1] %v1362_v40  ;;  %v4143_v50 = vcombine.low %v1409_v11, %v5541_v10 }
 0x190   : > { %v4128_v36 = vcombine.low %v5483_v26, %v5483_v26  ;;  %v1387_v54 = vld [vmem:[#allocation2 + $0x38] sm:$0xe]  ;;  %v1386_v30 = vld [vmem:[#allocation2 + $0x30] sm:$0xe]  ;;  %v1487_v17 = vshll.u32 %v4107_v0, 16  ;;  %v1941_v27 = vrot.slane %v4162_v45, 1  ;;  %vm5808_vm3 = vmand %vm2275_vm1, %vm1000_vm4 }
 0x191   : > { %1815 = vrot.lane.b32.xlu1 %v4151_v34, %s4882_s27  ;;  %v4121_v60 = vcombine.low %v1387_v54, %v5521_v21  ;;  %v4120_v40 = vcombine.low %v1386_v30, %v5544_v31  ;;  %v5552_v34 = vld [vmem:[#allocation2 + $0x3c] sm:$0x1]  ;;  %v1410_v62 = vld [vmem:[#allocation2 + $0x38] sm:$0xe]  ;;  %v5582_v2 = vld [vmem:[#allocation2 + $0x24] sm:$0x1]  ;;  %v4134_v30 = vcombine.low %v5403_v1, %v5479_v23  ;;  %v4131_v1 = vcombine.low %v5423_v61, %v5497_v41 }
 0x192   : > { %1633 = vrot.lane.b32.xlu0 %v4128_v36, %s4883_s28  ;;  %v4157_v36 = vcombine.low %v5401_v57, %v5428_v13  ;;  %v1489_v38 = vrot.slane %v1487_v17, 1  ;;  %v4144_v12 = vcombine.low %v1410_v62, %v5552_v34  ;;  %v1431_v0 = vld [vmem:[#allocation2 + $0x20] sm:$0xe]  ;;  %v5589_v17 = vld [vmem:[#allocation2 + $0x10] sm:$0xf]  ;;  %v4155_v61 = vcombine.low %v5433_v8, %v5510_v25  ;;  %vm5868_vm6 = vmand %vm2438_vm2, %vm1000_vm4 }
 0x193   : > { %v1580_v5 = vrot.slane %v4121_v60, 1  ;;  %v5577_v60 = vld [vmem:[#allocation2 + $0x18] sm:$0xf]  ;;  %v4154_v25 = vcombine.low %v5435_v22, %v5531_v18 }
 0x194   : > { %v1869_v57 = vshll.u32 %v4157_v36, 16  ;;  %v1490_v37 = vor.u32 %v1489_v38, %v1485_v52  ;;  %v1763_v51 = vrot.slane %v4144_v12, 1  ;;  %v1671_v52 = vshll.u32 %v4131_v1, 16 }
 0x195   : > { %1587 = vrot.lane.b32.xlu1 %v1576_v46, %s4881_s26  ;;  %v1855_v48 = vshll.u32 %v4155_v61, 16 }
 0x196   : > { %1773 = vrot.lane.b32.xlu0 %v1761_v16, %s4884_s29  ;;  %v5539_v6 = vld [vmem:[#allocation2 + $0x40] sm:$0xf]  ;;  %v1762_v16 = vrot.slane %v4143_v50, 1  ;;  %v4164_v50 = vcombine.low %v1431_v0, %v5582_v2  ;;  %v1673_v44 = vrot.slane %v1671_v52, 1 }
 0x197   : > { %v4129_v4 = vcombine.low %v5539_v6, %v5539_v6 }
 0x199   : > { %1627 = vrot.lane.b32.xlu1 %v4125_v42, %s4883_s28  ;;  %v5561_v42 = vld [vmem:[#allocation2 + $0x28] sm:$0xf] }
 0x19a   : > { %1813 = vrot.lane.b32.xlu0 %v4150_v59, %s4882_s27  ;;  %v1579_v59 = vrot.slane %v4120_v40, 1  ;;  %v4111_v13 = vcombine.low %v5561_v42, %v5442_v55  ;;  %v1411_v40 = vld [vmem:[#allocation2 + $0x40] sm:$0xe] }
 0x19c   : > { %v1515_v54 = vshll.u32 %v4111_v13, 16  ;;  %v1513_v62 = vshrl.u32 %v4111_v13, 16 }
 0x19d   : > { %1767 = vrot.lane.b32.xlu1 %v1758_v53, %s4884_s29  ;;  %v1664_v53 = vshll.u32 %v4130_v32, 16 }
 0x19e   : > { %1585 = vrot.lane.b32.xlu0 %v1575_v56, %s4881_s26  ;;  %v1871_v56 = vrot.slane %v1869_v57, 1  ;;  %v1517_v11 = vrot.slane %v1515_v54, 1 }
 0x1a0   : > { %v1518_v23 = vor.u32 %v1517_v11, %v1513_v62  ;;  %v4693_v62 = vld [vmem:[%s6185_s1 + $0x10] ss:$0 sps:$4 sm:$0x33]  }
 0x1a1   : > { %1951 = vrot.lane.b32.xlu1 %v1942_v15, %s4885_s30  ;;  %v1666_v15 = vrot.slane %v1664_v53, 1  ;;  %4586 = vmatprep.subr.msk.bf16.mxu0 %vm2162_vm10, %v4693_v62 }
 0x1a2   : > { %1769 = vrot.lane.b32.xlu0 %v1759_v9, %s4884_s29  ;;  %v1867_v9 = vshrl.u32 %v4157_v36, 16  ;;  %v5595_v36 = vld [vmem:[#allocation2 + $0x24] sm:$0x1] }
 0x1a4   : > { %v1872_v45 = vor.u32 %v1871_v56, %v1867_v9  ;;  %v1678_v56 = vshll.u32 %v4132_v47, 16  ;;  %v5618_v9 = vld [vmem:[#allocation2 + $0x30] sm:$0xf] }
 0x1a5   : > { %1595 = vrot.lane.b32.xlu1 %v1580_v5, %s4881_s26  ;;  %v1662_v5 = vshrl.u32 %v4130_v32, 16  ;;  %v4108_v32 = vcombine.low %v5589_v17, %v5504_v33  ;;  %v4112_v22 = vcombine.low %v5618_v9, %v5544_v31  ;;  %v4136_v31 = vcombine.low %v5483_v26, %v5552_v34 }
 0x1a6   : > { %1809 = vrot.lane.b32.xlu0 %v4148_v3, %s4882_s27  ;;  %v4109_v3 = vcombine.low %v5577_v60, %v5477_v19  ;;  %v1384_v19 = vld [vmem:[#allocation2 + $0x20] sm:$0xe]  ;;  %v1680_v0 = vrot.slane %v1678_v56, 1 }
 0x1a7   : > { %v4118_v12 = vcombine.low %v1384_v19, %v5595_v36  ;;  %v1494_v28 = vshll.u32 %v4108_v32, 16 }
 0x1a8   : > { %v1499_v53 = vshrl.u32 %v4109_v3, 16 }
 0x1a9   : > { %1635 = vrot.lane.b32.xlu1 %v4129_v4, %s4883_s28  ;;  %v1667_v4 = vor.u32 %v1666_v15, %v1662_v5  ;;  %v1577_v33 = vrot.slane %v4118_v12, 1  ;;  %v1496_v15 = vrot.slane %v1494_v28, 1  ;;  %v1492_v5 = vshrl.u32 %v4108_v32, 16  ;;  %v5642_v12 = vld [vmem:[#allocation2 + $0x3c] sm:$0x1] }
 0x1aa   : > { %1949 = vrot.lane.b32.xlu0 %v1941_v27, %s4885_s30  ;;  %v5592_v27 = vld [vmem:[#allocation2 + $0x44] sm:$0x1]  ;;  %v1846_v32 = vshrl.u32 %v4154_v25, 16 }
 0x1ab   : > { %v1622_v46 = vpop.permute.xlu0 %1621  ;;  %v4145_v38 = vcombine.low %v1411_v40, %v5592_v27  ;;  %v1497_v18 = vor.u32 %v1496_v15, %v1492_v5 }
 0x1ac   : > { %v5565_v43 = vsel %vm2007_vm9, %v5463_v58, %v1622_v46  ;;  %v5574_v58 = vld [vmem:[#allocation2 + $0x40] sm:$0xf]  ;;  %v1501_v46 = vshll.u32 %v4109_v3, 16  ;;  %v1857_v3 = vrot.slane %v1855_v48, 1 }
 0x1ad   : > { %1775 = vrot.lane.b32.xlu1 %v1762_v16, %s4884_s29  ;;  %v4152_v55 = vcombine.low %v5574_v58, %v5574_v58  ;;  %v1692_v16 = vshll.u32 %v4134_v30, 16  ;;  %v1764_v41 = vrot.slane %v4145_v38, 1  ;;  %v1522_v38 = vshll.u32 %v4112_v22, 16 }
 0x1ae   : > { %1593 = vrot.lane.b32.xlu0 %v1579_v59, %s4881_s26  ;;  %v1943_v59 = vrot.slane %v4164_v50, 1  ;;  %v1503_v57 = vrot.slane %v1501_v46, 1  ;;  %v1853_v50 = vshrl.u32 %v4155_v61, 16  ;;  %v2164_v46 = vsel %vm2162_vm10, %v4693_v62, 0 }
 0x1af   : > { %v1694_v13 = vrot.slane %v1692_v16, 1  ;;  %4549 = vmatpush3.bf16.msra.mxu0 %v2164_v46  ;;  %v1524_v61 = vrot.slane %v1522_v38, 1  ;;  %v1434_v46 = vld [vmem:[#allocation2 + $0x38] sm:$0xe] }
 0x1b0   : > { %v1504_v8 = vor.u32 %v1503_v57, %v1499_v53  ;;  %v5646_v57 = vld [vmem:[#allocation2 + $0x20] sm:$0xf] }
 0x1b1   : > { %1535 = vrot.lane.b32.xlu1 %v1490_v37, %s4880_s23  ;;  %v5610_v37 = vld [vmem:[#allocation2 + $0x38] sm:$0xf]  ;;  %v4695_v53 = vld [vmem:[%s6185_s1] sm:$0xff]  }
 0x1b2   : > { %1777 = vrot.lane.b32.xlu0 %v1763_v51, %s4884_s29  ;;  %v1690_v51 = vshrl.u32 %v4134_v30, 16  ;;  %v1676_v30 = vshrl.u32 %v4132_v47, 16  ;;  %v4156_v47 = vcombine.low %v5529_v20, %v5582_v2 }
 0x1b4   : > { %v1695_v54 = vor.u32 %v1694_v13, %v1690_v51  ;;  %v1681_v40 = vor.u32 %v1680_v0, %v1676_v30  ;;  %v4110_v51 = vcombine.low %v5646_v57, %v5595_v36  ;;  %v1862_v48 = vshll.u32 %v4156_v47, 16 }
 0x1b5   : > { %1771 = vrot.lane.b32.xlu1 %v1760_v35, %s4884_s29  ;;  %v4113_v35 = vcombine.low %v5610_v37, %v5521_v21 }
 0x1b6   : > { %1817 = vrot.lane.b32.xlu0 %v4152_v55, %s4882_s27  ;;  %v1669_v55 = vshrl.u32 %v4131_v1, 16  ;;  %v1864_v5 = vrot.slane %v1862_v48, 1 }
 0x1b7   : > { %v1529_v11 = vshll.u32 %v4113_v35, 16  ;;  %v1527_v16 = vshrl.u32 %v4113_v35, 16 }
 0x1b8   : > { %v1674_v21 = vor.u32 %v1673_v44, %v1669_v55 }
 0x1b9   : > { %1907 = vrot.lane.b32.xlu1 %v1872_v45, %s4886_s8  ;;  %v4135_v45 = vcombine.low %v5472_v7, %v5541_v10  ;;  %v4133_v7 = vcombine.low %v5499_v29, %v5557_v39  ;;  %v1858_v10 = vor.u32 %v1857_v3, %v1853_v50  ;;  %v1531_v19 = vrot.slane %v1529_v11, 1  ;;  %v4694_v29 = vld [vmem:[%s6185_s1 + $0x8] sm:$0xff]  }
 0x1ba   : > { %1717 = vrot.lane.b32.xlu0 %v1667_v4, %s4887_s9  ;;  %v1848_v4 = vshll.u32 %v4154_v25, 16  ;;  %v4137_v39 = vcombine.low %v5539_v6, %v5592_v27  ;;  %4550 = vmatprep.subr.bf16.mxu0 %v4694_v29  ;;  %v1520_v6 = vshrl.u32 %v4112_v22, 16  ;;  %v4159_v27 = vcombine.low %v5481_v24, %v5642_v12 }
 0x1bb   : > { %v1699_v1 = vshll.u32 %v4135_v45, 16  ;;  %v1685_v34 = vshll.u32 %v4133_v7, 16  ;;  %v1697_v13 = vshrl.u32 %v4135_v45, 16  ;;  %4551 = vmatpush3.bf16.msra.mxu0 %v4694_v29  ;;  %v1683_v24 = vshrl.u32 %v4133_v7, 16  ;;  %v5668_v7 = vpop.permute.xlu1 %1819 }
 0x1bc   : > { %v1713_v2 = vshll.u32 %v4137_v39, 16  ;;  %v1525_v56 = vor.u32 %v1524_v61, %v1520_v6  ;;  %4552 = vmatprep.subr.bf16.mxu0 %v4695_v53  ;;  %v1704_v25 = vshrl.u32 %v4136_v31, 16  ;;  %v1883_v55 = vshll.u32 %v4159_v27, 16 }
 0x1bd   : > { %1543 = vrot.lane.b32.xlu1 %v1518_v23, %s4880_s23  ;;  %v1850_v23 = vrot.slane %v1848_v4, 1  ;;  %v1701_v26 = vrot.slane %v1699_v1, 1  ;;  %v1687_v20 = vrot.slane %v1685_v34, 1  ;;  %v1508_v3 = vshll.u32 %v4110_v51, 16  ;;  %v1433_v34 = vld [vmem:[#allocation2 + $0x30] sm:$0xe] }
 0x1be   : > { %1953 = vrot.lane.b32.xlu0 %v1943_v59, %s4885_s30  ;;  %v1532_v59 = vor.u32 %v1531_v19, %v1527_v16  ;;  %v1715_v15 = vrot.slane %v1713_v2, 1  ;;  %v1860_v11 = vshrl.u32 %v4156_v47, 16  ;;  %v1885_v22 = vrot.slane %v1883_v55, 1 }
 0x1bf   : > { %v1851_v52 = vor.u32 %v1850_v23, %v1846_v32  ;;  %v1702_v28 = vor.u32 %v1701_v26, %v1697_v13  ;;  %4553 = vmatpush3.bf16.msra.mxu0 %v4695_v53  ;;  %v1510_v50 = vrot.slane %v1508_v3, 1  ;;  %v1506_v19 = vshrl.u32 %v4110_v51, 16  ;;  %v1436_v32 = vld [vmem:[#allocation2 + $0x48] sm:$0xe] }
 0x1c0   : > { %v1865_v4 = vor.u32 %v1864_v5, %v1860_v11 }
 0x1c1   : > { %1779 = vrot.lane.b32.xlu1 %v1764_v41, %s4884_s29  ;;  %v1706_v41 = vshll.u32 %v4136_v31, 16  ;;  %v1511_v31 = vor.u32 %v1510_v50, %v1506_v19 }
 0x1c2   : > { %1589 = vrot.lane.b32.xlu0 %v1577_v33, %s4881_s26  ;;  %v5649_v33 = vld [vmem:[#allocation2 + $0x4c] sm:$0x1]  ;;  %s4352_s26 = sshll.u32 %s6224_s25, 6 }
 0x1c3   : > { %v1708_v44 = vrot.slane %v1706_v41, 1  ;;  %v4161_v35 = vcombine.low %v5322_v14, %v5649_v33  ;;  %v1711_v14 = vshrl.u32 %v4137_v39, 16  ;;  %v4167_v39 = vcombine.low %v1434_v46, %v5642_v12  ;;  %s6156_s28 = scalar_lea.vmem %s6191_s7, %s4352_s26 }
 0x1c4   : > { %v4169_v47 = vcombine.low %v1436_v32, %v5649_v33 }
 0x1c5   : > { %1539 = vrot.lane.b32.xlu1 %v1504_v8, %s4880_s23  ;;  %v1425_v8 = vld [vmem:[#allocation2 + $0x34] sm:$0x1]  ;;  %v1709_v0 = vor.u32 %v1708_v44, %v1704_v25  ;;  %v1897_v45 = vshll.u32 %v4161_v35, 16  ;;  %v1716_v30 = vor.u32 %v1715_v15, %v1711_v14  ;;  %v1895_v62 = vshrl.u32 %v4161_v35, 16 }
 0x1c6   : > { %1725 = vrot.lane.b32.xlu0 %v1695_v54, %s4887_s9  ;;  %v1688_v54 = vor.u32 %v1687_v20, %v1683_v24  ;;  %v4158_v36 = vcombine.low %v5502_v49, %v1425_v8  ;;  %v1946_v41 = vrot.slane %v4167_v39, 1  ;;  %v4166_v6 = vcombine.low %v1433_v34, %v1425_v8 }
 0x1c7   : > { %v1899_v49 = vrot.slane %v1897_v45, 1 }
 0x1c8   : > { %v1874_v16 = vshrl.u32 %v4158_v36, 16  ;;  %v1945_v20 = vrot.slane %v4166_v6, 1 }
 0x1c9   : > { %1719 = vrot.lane.b32.xlu1 %v1674_v21, %s4887_s9  ;;  %v1427_v21 = vld [vmem:[#allocation2 + $0x44] sm:$0x1] }
 0x1ca   : > { %1537 = vrot.lane.b32.xlu0 %v1497_v18, %s4880_s23  ;;  %v4160_v18 = vcombine.low %v5574_v58, %v1427_v21  ;;  %v1900_v58 = vor.u32 %v1899_v49, %v1895_v62 }
 0x1cc   : > { %v1890_v38 = vshll.u32 %v4160_v18, 16 }
 0x1cd   : > { %1903 = vrot.lane.b32.xlu1 %v1858_v10, %s4886_s8  ;;  %v1881_v10 = vshrl.u32 %v4159_v27, 16  ;;  %v1948_v27 = vrot.slane %v4169_v47, 1 }
 0x1ce   : > { %1721 = vrot.lane.b32.xlu0 %v1681_v40, %s4887_s9  ;;  %v1876_v40 = vshll.u32 %v4158_v36, 16  ;;  %v1892_v26 = vrot.slane %v1890_v38, 1 }
 0x1cf   : > { %v1886_v1 = vor.u32 %v1885_v22, %v1881_v10 }
 0x1d0   : > { %v1878_v23 = vrot.slane %v1876_v40, 1 }
 0x1d1   : > { %1547 = vrot.lane.b32.xlu1 %v1532_v59, %s4880_s23 }
 0x1d2   : > { %1901 = vrot.lane.b32.xlu0 %v1851_v52, %s4886_s8  ;;  %v1879_v59 = vor.u32 %v1878_v23, %v1874_v16  ;;  %v1888_v52 = vshrl.u32 %v4160_v18, 16 }
 0x1d4   : > { %v1893_v13 = vor.u32 %v1892_v26, %v1888_v52 }
 0x1d5   : > { %1727 = vrot.lane.b32.xlu1 %v1702_v28, %s4887_s9  ;;  %v1435_v28 = vld [vmem:[#allocation2 + $0x40] sm:$0xe] }
 0x1d6   : > { %1545 = vrot.lane.b32.xlu0 %v1525_v56, %s4880_s23  ;;  %v4168_v2 = vcombine.low %v1435_v28, %v1427_v21 }
 0x1d8   : > { %v1947_v51 = vrot.slane %v4168_v2, 1 }
 0x1d9   : > { %1723 = vrot.lane.b32.xlu1 %v1688_v54, %s4887_s9 }
 0x1da   : > { %1729 = vrot.lane.b32.xlu0 %v1709_v0, %s4887_s9 }
 0x1dd   : > { %1731 = vrot.lane.b32.xlu1 %v1716_v30, %s4887_s9 }
 0x1de   : > { %1905 = vrot.lane.b32.xlu0 %v1865_v4, %s4886_s8 }
 0x1e1   : > { %1911 = vrot.lane.b32.xlu1 %v1886_v1, %s4886_s8 }
 0x1e2   : > { %1541 = vrot.lane.b32.xlu0 %v1511_v31, %s4880_s23 }
 0x1e3   : > { %v5673_v29 = vpop.permute.xlu1 %1811 }
 0x1e4   : > { %v5682_v53 = vpop.permute.xlu0 %1629 }
 0x1e5   : > { %1915 = vrot.lane.b32.xlu1 %v1900_v58, %s4886_s8 }
 0x1e6   : > { %1909 = vrot.lane.b32.xlu0 %v1879_v59, %s4886_s8 }
 0x1e7   : > { %v1584_v61 = vpop.permute.xlu1 %1583 }
 0x1e8   : > { %v5688_v44 = vpop.permute.xlu0 %1625 }
 0x1e9   : > { %1959 = vrot.lane.b32.xlu1 %v1946_v41, %s4885_s30 }
 0x1ea   : > { %1913 = vrot.lane.b32.xlu0 %v1893_v13, %s4886_s8 }
 0x1eb   : > { %v1624_v12 = vpop.permute.xlu1 %1623 }
 0x1ec   : > { %v1766_v35 = vpop.permute.xlu0 %1765 }
 0x1ed   : > { %1963 = vrot.lane.b32.xlu1 %v1948_v27, %s4885_s30 }
 0x1ee   : > { %1957 = vrot.lane.b32.xlu0 %v1945_v20, %s4885_s30 }
 0x1ef   : > { %v1808_v33 = vpop.permute.xlu1 %1807 }
 0x1f0   : > { %v1806_v24 = vpop.permute.xlu0 %1805 }
 0x1f2   : > { %1961 = vrot.lane.b32.xlu0 %v1947_v51, %s4885_s30 }
 0x1f3   : > { %v5686_v56 = vpop.permute.xlu1 %1955 }
 0x1f7   : > { %v1592_v48 = vpop.permute.xlu1 %1591 }
 0x1fb   : > { %v1632_v8 = vpop.permute.xlu1 %1631 }
 0x203   : > { %v5690_v25 = vpop.permute.xlu1 %1815 }
 0x204   : > { %v5692_v54 = vpop.permute.xlu0 %1633 }
 0x207   : > { %v5694_v15 = vpop.permute.xlu1 %1587 }
 0x208   : > { %v5696_v55 = vpop.permute.xlu0 %1773 }
 0x20b   : > { %v5698_v36 = vpop.permute.xlu1 %1627 }
 0x20c   : > { %v5700_v0 = vpop.permute.xlu0 %1813 }
 0x20f   : > { %v1768_v5 = vpop.permute.xlu1 %1767 }
 0x210   : > { %v1586_v3 = vpop.permute.xlu0 %1585 }
 0x213   : > { %v1952_v45 = vpop.permute.xlu1 %1951 }
 0x214   : > { %v5702_v21 = vpop.permute.xlu0 %1769 }
 0x217   : > { %v1596_v14 = vpop.permute.xlu1 %1595 }
 0x218   : > { %v5704_v11 = vpop.permute.xlu0 %1809 }
 0x21b   : > { %v1636_v30 = vpop.permute.xlu1 %1635 }
 0x21c   : > { %v1950_v22 = vpop.permute.xlu0 %1949 }
 0x21f   : > { %v5706_v18 = vpop.permute.xlu1 %1775 }
 0x220   : > { %v5708_v4 = vpop.permute.xlu0 %1593 }
 0x223   : > { %v1536_v50 = vpop.permute.xlu1 %1535 }
 0x224   : > { %v5710_v40 = vpop.permute.xlu0 %1777  ;;  %v1971_v62 = vsel %vm1965_vm7, %v5526_v63, %v1536_v50 }
 0x225   : > { %v1994_v49 = vsel %vm1990_vm8, %v1971_v62, %v1584_v61 }
 0x226   : > { %v2011_v10 = vsel %vm2007_vm9, %v1994_v49, %v1624_v12 }
 0x227   : > { %v1772_v19 = vpop.permute.xlu1 %1771 }
 0x228   : > { %v5716_v1 = vpop.permute.xlu0 %1817 }
 0x22b   : > { %v1908_v31 = vpop.permute.xlu1 %1907 }
 0x22c   : > { %v1718_v23 = vpop.permute.xlu0 %1717 }
 0x22d   : > { %v2026_v38 = vsel %vm2024_vm11, %v5565_v43, %v1718_v23 }
 0x22e   : > { %v2043_v46 = vsel %vm2041_vm12, %v2026_v38, %v1766_v35 }
 0x22f   : > { %v1544_v58 = vpop.permute.xlu1 %1543  ;;  %v2060_v63 = vsel %vm2058_vm13, %v2043_v46, %v1806_v24 }
 0x230   : > { %v1954_v16 = vpop.permute.xlu0 %1953  ;;  %v1983_v32 = vsel %vm1965_vm7, %v5561_v42, %v1544_v58 }
 0x231   : > { %v2002_v39 = vsel %vm1990_vm8, %v1983_v32, %v1592_v48 }
 0x232   : > { %v2019_v59 = vsel %vm2007_vm9, %v2002_v39, %v1632_v8 }
 0x233   : > { %v5726_v26 = vpop.permute.xlu1 %1779 }
 0x234   : > { %v1590_v34 = vpop.permute.xlu0 %1589 }
 0x237   : > { %v1540_v47 = vpop.permute.xlu1 %1539 }
 0x238   : > { %v1726_v52 = vpop.permute.xlu0 %1725  ;;  %v1977_v35 = vsel %vm1965_vm7, %v5577_v60, %v1540_v47 }
 0x23b   : > { %v1720_v61 = vpop.permute.xlu1 %1719 }
 0x23c   : > { %v1538_v43 = vpop.permute.xlu0 %1537  ;;  %v2028_v41 = vsel %vm2024_vm11, %v2011_v10, %v1720_v61 }
 0x23d   : > { %v2045_v13 = vsel %vm2041_vm12, %v2028_v41, %v1768_v5  ;;  %v1974_v42 = vsel %vm1965_vm7, %v5589_v17, %v1538_v43 }
 0x23e   : > { %v2062_v28 = vsel %vm2058_vm13, %v2045_v13, %v1808_v33  ;;  %v1996_v2 = vsel %vm1990_vm8, %v1974_v42, %v1586_v3 }
 0x23f   : > { %v1904_v6 = vpop.permute.xlu1 %1903  ;;  %v2013_v3 = vsel %vm2007_vm9, %v1996_v2, %v5688_v44 }
 0x240   : > { %v1722_v27 = vpop.permute.xlu0 %1721  ;;  %v2079_v12 = vsel %vm2075_vm14, %v2062_v28, %v1904_v6 }
 0x241   : > { %v2096_v17 = vsel %vm2092_vm15, %v2079_v12, %v1952_v45 }
 0x243   : > { %v1548_v20 = vpop.permute.xlu1 %1547 }
 0x244   : > { %v1902_v51 = vpop.permute.xlu0 %1901  ;;  %v1989_v48 = vsel %vm1965_vm7, %v5610_v37, %v1548_v20  ;;  %v1998_v37 = vsel %vm1990_vm8, %v1977_v35, %v5694_v15 }
 0x245   : > { %v2077_v8 = vsel %vm2075_vm14, %v2060_v63, %v1902_v51  ;;  %v2006_v33 = vsel %vm1990_vm8, %v1989_v48, %v1596_v14  ;;  %v2030_v14 = vsel %vm2024_vm11, %v2013_v3, %v1722_v27  ;;  %v4696_v3 = vld [vmem:[#allocation4 + $0xf8] sm:$0xff]  }
 0x246   : > { %v2094_v24 = vsel %vm2092_vm15, %v2077_v8, %v1950_v22  ;;  %v2023_v5 = vsel %vm2007_vm9, %v2006_v33, %v1636_v30  ;;  %v2015_v22 = vsel %vm2007_vm9, %v1998_v37, %v5698_v36  ;;  %v2047_v44 = vsel %vm2041_vm12, %v2030_v14, %v5702_v21  ;;  %v2283_v33 = vld [vmem:[#allocation3 + $0x18] sm:$0x1]  ;;  %4416 = vmatprep.subr.bf16.mxu0 %v4696_v3  ;;  %v2302_v37 = vld [vmem:[#allocation3 + $0xc] sm:$0x1] }
 0x247   : > { %v1728_v50 = vpop.permute.xlu1 %1727  ;;  %v4170_v62 = vcombine.low %v2094_v24, %v2096_v17  ;;  %v2064_v46 = vsel %vm2058_vm13, %v2047_v44, %v5704_v11  ;;  %v2308_v24 = vld [vmem:[#allocation3 + $0x1c] sm:$0x1]  ;;  %v2284_v17 = vsel %vm5813_vm5, 0, %v2283_v33  ;;  %v2303_v14 = vsel %vm5808_vm3, 0, %v2302_v37  ;;  %v4729_v33 = vld [vmem:[#allocation4 + $0x40] sm:$0xff]  }
 0x248   : > { %v1546_v60 = vpop.permute.xlu0 %1545  ;;  %2285 = vst [vmem:[#allocation3 + $0x18] sm:$0x1] %v2284_v17  ;;  %2304 = vst [vmem:[#allocation3 + $0xc] sm:$0x1] %v2303_v14  ;;  %v4741_v17 = vld [vmem:[#allocation4 + $0x178] sm:$0xff]  }
 0x249   : > { %4554 = vmatprep.mubr.msk.bf16.mxu0 %vm2149_vm0, %v4170_v62  ;;  %v2277_v62 = vld [vmem:[#allocation3 + $0x8] sm:$0x1] }
 0x24b   : > { %v1724_v45 = vpop.permute.xlu1 %1723 }
 0x24c   : > { %v1730_v49 = vpop.permute.xlu0 %1729  ;;  %v2032_v30 = vsel %vm2024_vm11, %v2015_v22, %v1724_v45  ;;  %v2286_v22 = vld [vmem:[#allocation3 + $0x20] sm:$0x1]  ;;  %v2311_v45 = vld [vmem:[#allocation3 + $0x24] sm:$0x1] }
 0x24d   : > { %v2049_v10 = vsel %vm2041_vm12, %v2032_v30, %v1772_v19  ;;  %v1986_v19 = vsel %vm1965_vm7, %v5618_v9, %v1546_v60  ;;  %v2036_v9 = vsel %vm2024_vm11, %v2019_v59, %v1728_v50  ;;  %v4697_v50 = vld [vmem:[#allocation4 + $0xb8] sm:$0xff]   ;;  %v2278_v60 = vsel %vm5813_vm5, 0, %v2277_v62 }
 0x24e   : > { %v2066_v15 = vsel %vm2058_vm13, %v2049_v10, %v5673_v29  ;;  %2279 = vst [vmem:[#allocation3 + $0x8] sm:$0x1] %v2278_v60  ;;  %v2287_v30 = vsel %vm5813_vm5, 0, %v2286_v22  ;;  %v2312_v44 = vsel %vm5808_vm3, 0, %v2311_v45  ;;  %v4699_v10 = vld [vmem:[#allocation4 + $0xf0] sm:$0xff]  }
 0x24f   : > { %v2083_v23 = vsel %vm2075_vm14, %v2066_v15, %v1908_v31  ;;  %v1732_v38 = vpop.permute.xlu1 %1731  ;;  %v4700_v15 = vld [vmem:[#allocation4 + $0x38] sm:$0xff]   ;;  %2288 = vst [vmem:[#allocation3 + $0x20] sm:$0x1] %v2287_v30  ;;  %2313 = vst [vmem:[#allocation3 + $0x24] sm:$0x1] %v2312_v44 }
 0x250   : > { %v1906_v58 = vpop.permute.xlu0 %1905  ;;  %v2100_v36 = vsel %vm2092_vm15, %v2083_v23, %v5686_v56  ;;  %v2004_v56 = vsel %vm1990_vm8, %v1986_v19, %v5708_v4  ;;  %v4701_v23 = vld [vmem:[#allocation4 + $0xb0] sm:$0xff]   ;;  %v4706_v19 = vld [vmem:[#allocation4 + $0x68] sm:$0xff]  }
 0x251   : > { %v2081_v63 = vsel %vm2075_vm14, %v2064_v46, %v1906_v58  ;;  %v2021_v41 = vsel %vm2007_vm9, %v2004_v56, %v5692_v54  ;;  %v2305_v46 = vld [vmem:[#allocation3 + $0x14] sm:$0x1] }
 0x252   : > { %v2098_v32 = vsel %vm2092_vm15, %v2081_v63, %v1954_v16  ;;  %v2038_v6 = vsel %vm2024_vm11, %v2021_v41, %v1730_v49  ;;  %v4698_v49 = vld [vmem:[#allocation4 + $0x78] sm:$0xff]   ;;  %v4702_v63 = vld [vmem:[#allocation4 + $0x70] sm:$0xff]   ;;  %v4710_v56 = vld [vmem:[#allocation4 + $0x60] sm:$0xff]  }
 0x253   : > { %v4171_v21 = vcombine.low %v2098_v32, %v2100_v36  ;;  %v1912_v39 = vpop.permute.xlu1 %1911  ;;  %v2055_v54 = vsel %vm2041_vm12, %v2038_v6, %v5710_v40  ;;  %4376 = vmatprep.subr.bf16.mxu1 %v4698_v49  ;;  %v2306_v36 = vsel %vm5808_vm3, 0, %v2305_v46  ;;  %v4703_v32 = vld [vmem:[#allocation4 + $0xe8] sm:$0xff]   ;;  %v4717_v6 = vld [vmem:[#allocation4 + $0x90] sm:$0xff]  }
 0x254   : > { %v1542_v29 = vpop.permute.xlu0 %1541  ;;  %v2072_v40 = vsel %vm2058_vm13, %v2055_v54, %v5716_v1  ;;  %4377 = vmatpush3.bf16.msra.mxu1 %v4700_v15  ;;  %2307 = vst [vmem:[#allocation3 + $0x14] sm:$0x1] %v2306_v36 }
 0x255   : > { %v1980_v31 = vsel %vm1965_vm7, %v5646_v57, %v1542_v29  ;;  %4555 = vmatmul.mubr.msk.bf16.vlgmr.msra.gmra.mxu0 %vm2149_vm0, %v4171_v21  ;;  %v4704_v21 = vld [vmem:[#allocation4 + $0x30] sm:$0xff]   ;;  %4378 = vmatprep.subr.bf16.mxu1 %v4702_v63  ;;  %v4707_v29 = vld [vmem:[#allocation4 + $0xe0] sm:$0xff]  }
 0x256   : > { %v2000_v11 = vsel %vm1990_vm8, %v1980_v31, %v1590_v34  ;;  %v2053_v34 = vsel %vm2041_vm12, %v2036_v9, %v5706_v18  ;;  %4417 = vmatpush3.bf16.msra.mxu0 %v4697_v50  ;;  %v4708_v31 = vld [vmem:[#allocation4 + $0x28] sm:$0xff]   ;;  %v4712_v9 = vld [vmem:[#allocation4 + $0x20] sm:$0xff]  }
 0x257   : > { %v2017_v47 = vsel %vm2007_vm9, %v2000_v11, %v5682_v53  ;;  %v1916_v16 = vpop.permute.xlu1 %1915  ;;  %v2040_v53 = vsel %vm2024_vm11, %v2023_v5, %v1732_v38  ;;  %v2070_v59 = vsel %vm2058_vm13, %v2053_v34, %v5690_v25  ;;  %v2309_v5 = vsel %vm5808_vm3, 0, %v2308_v24  ;;  %4418 = vmatprep.subr.bf16.mxu0 %v4699_v10  ;;  %v2280_v38 = vld [vmem:[#allocation3 + $0x10] sm:$0x1]  ;;  %v4714_v34 = vld [vmem:[#allocation4 + $0x58] sm:$0xff]  }
 0x258   : > { %v2034_v61 = vsel %vm2024_vm11, %v2017_v47, %v1726_v52  ;;  %v1910_v43 = vpop.permute.xlu0 %1909  ;;  %v2087_v18 = vsel %vm2075_vm14, %v2070_v59, %v1912_v39  ;;  %2310 = vst [vmem:[#allocation3 + $0x1c] sm:$0x1] %v2309_v5  ;;  %v2281_v58 = vsel %vm5813_vm5, 0, %v2280_v38  ;;  %v4705_v39 = vld [vmem:[#allocation4 + $0xa8] sm:$0xff]   ;;  %4379 = vmatpush3.bf16.msra.mxu1 %v4704_v21  ;;  %v4709_v11 = vld [vmem:[#allocation4 + $0xa0] sm:$0xff]   ;;  %v4711_v47 = vld [vmem:[#allocation4 + $0xd8] sm:$0xff]  }
 0x259   : > { %v2051_v57 = vsel %vm2041_vm12, %v2034_v61, %v5696_v55  ;;  %v2057_v55 = vsel %vm2041_vm12, %v2040_v53, %v5726_v26  ;;  %2282 = vst [vmem:[#allocation3 + $0x10] sm:$0x1] %v2281_v58  ;;  %4380 = vmatprep.subr.bf16.mxu1 %v4706_v19  ;;  %v2289_v53 = vld [vmem:[#allocation3 + $0x28] sm:$0x1]  ;;  %v4732_v24 = vld [vmem:[#allocation4] sm:$0xff]  }
 0x25a   : > { %v2068_v52 = vsel %vm2058_vm13, %v2051_v57, %v5700_v0  ;;  %v2074_v25 = vsel %vm2058_vm13, %v2057_v55, %v5668_v7  ;;  %4419 = vmatpush3.bf16.msra.mxu0 %v4701_v23  ;;  %v4713_v57 = vld [vmem:[#allocation4 + $0x98] sm:$0xff]   ;;  %v2290_v59 = vsel %vm5813_vm5, 0, %v2289_v53  ;;  %v2298_v55 = vld [vmem:[#allocation3 + $0x40] sm:$0x1]  ;;  %v5852_v5 = vld [vmem:[%s6186_s2] ss:$0 sm:$0xff] }
 0x25b   : > { %v1960_v4 = vpop.permute.xlu1 %1959  ;;  %v2085_v27 = vsel %vm2075_vm14, %v2068_v52, %v1910_v43  ;;  %v2091_v2 = vsel %vm2075_vm14, %v2074_v25, %v1916_v16  ;;  %4420 = vmatprep.subr.bf16.mxu0 %v4703_v32  ;;  %v2295_v16 = vld [vmem:[#allocation3 + $0x38] sm:$0x1]  ;;  %v2320_v43 = vld [vmem:[#allocation3 + $0x3c] sm:$0x1]  ;;  %v2314_v52 = vld [vmem:[#allocation3 + $0x2c] sm:$0x1] }
 0x25c   : > { %v1914_v13 = vpop.permute.xlu0 %1913  ;;  %v2104_v42 = vsel %vm2092_vm15, %v2087_v18, %v1960_v4  ;;  %v2296_v61 = vsel %vm5813_vm5, 0, %v2295_v16  ;;  %4381 = vmatpush3.bf16.msra.mxu1 %v4708_v31  ;;  %v2321_v41 = vsel %vm5808_vm3, 0, %v2320_v43  ;;  %v4716_v4 = vld [vmem:[#allocation4 + $0x18] sm:$0xff]   ;;  %v2315_v54 = vsel %vm5808_vm3, 0, %v2314_v52  ;;  %2291 = vst [vmem:[#allocation3 + $0x28] sm:$0x1] %v2290_v59 }
 0x25d   : > { %v2089_v26 = vsel %vm2075_vm14, %v2072_v40, %v1914_v13  ;;  %2297 = vst [vmem:[#allocation3 + $0x38] sm:$0x1] %v2296_v61  ;;  %4382 = vmatprep.subr.bf16.mxu1 %v4710_v56  ;;  %2322 = vst [vmem:[#allocation3 + $0x3c] sm:$0x1] %v2321_v41  ;;  %v4715_v13 = vld [vmem:[#allocation4 + $0xd0] sm:$0xff]   ;;  %v2299_v18 = vsel %vm5813_vm5, 0, %v2298_v55 }
 0x25e   : > { %4421 = vmatpush3.bf16.msra.mxu0 %v4705_v39  ;;  %2316 = vst [vmem:[#allocation3 + $0x2c] sm:$0x1] %v2315_v54  ;;  %2300 = vst [vmem:[#allocation3 + $0x40] sm:$0x1] %v2299_v18  ;;  %v4720_v25 = vld [vmem:[#allocation4 + $0x10] sm:$0xff]   ;;  %v4738_v7 = vld [vmem:[#allocation4 + $0x1f8] sm:$0xff]  }
 0x25f   : > { %v1964_v0 = vpop.permute.xlu1 %1963  ;;  %4422 = vmatprep.subr.bf16.mxu0 %v4707_v29  ;;  %v5857_v50 = vld [vmem:[%s6187_s3] ss:$0 sm:$0xff]  ;;  %v2452_v31 = vld [vmem:[#allocation3 + $0x18] sm:$0xf]  ;;  %v2440_v41 = vld [vmem:[#allocation3 + $0x8] sm:$0xf] }
 0x260   : > { %v1958_v28 = vpop.permute.xlu0 %1957  ;;  %v2108_v48 = vsel %vm2092_vm15, %v2091_v2, %v1964_v0  ;;  %4383 = vmatpush3.bf16.msra.mxu1 %v4712_v9  ;;  %v2317_v0 = vld [vmem:[#allocation3 + $0x34] sm:$0x1] }
 0x261   : > { %v2102_v12 = vsel %vm2092_vm15, %v2085_v27, %v1958_v28  ;;  %4384 = vmatprep.subr.bf16.mxu1 %v4714_v34  ;;  %v2323_v27 = vld [vmem:[#allocation3 + $0x44] sm:$0x1]  ;;  %v2318_v2 = vsel %vm5808_vm3, 0, %v2317_v0 }
 0x262   : > { %v4172_v20 = vcombine.low %v2102_v12, %v2104_v42  ;;  %4423 = vmatpush3.bf16.msra.mxu0 %v4709_v11  ;;  %v4718_v28 = vld [vmem:[#allocation4 + $0x50] sm:$0xff]   ;;  %v4719_v42 = vld [vmem:[#allocation4 + $0xc8] sm:$0xff]   ;;  %v2324_v12 = vsel %vm5808_vm3, 0, %v2323_v27  ;;  %2319 = vst [vmem:[#allocation3 + $0x34] sm:$0x1] %v2318_v2 }
 0x263   : > { %4424 = vmatprep.subr.bf16.mxu0 %v4711_v47  ;;  %2325 = vst [vmem:[#allocation3 + $0x44] sm:$0x1] %v2324_v12  ;;  %v2455_v11 = vld [vmem:[#allocation3 + $0x1c] sm:$0x1]  ;;  %v2458_v27 = vld [vmem:[#allocation3 + $0x20] sm:$0xf] }
 0x264   : > { %v1962_v51 = vpop.permute.xlu0 %1961  ;;  %4558 = vmatprep.mubr.msk.bf16.mxu0 %vm2149_vm0, %v4172_v20  ;;  %4385 = vmatpush3.bf16.msra.mxu1 %v4716_v4  ;;  %v2292_v20 = vld [vmem:[#allocation3 + $0x30] sm:$0x1] }
 0x265   : > { %v2106_v35 = vsel %vm2092_vm15, %v2089_v26, %v1962_v51  ;;  %v2293_v40 = vsel %vm5813_vm5, 0, %v2292_v20  ;;  %4386 = vmatprep.subr.bf16.mxu1 %v4718_v28  ;;  %v4721_v26 = vld [vmem:[#allocation4 + $0x88] sm:$0xff]   ;;  %v2461_v28 = vld [vmem:[#allocation3 + $0x24] sm:$0x1] }
 0x266   : > { %v4173_v8 = vcombine.low %v2106_v35, %v2108_v48  ;;  %4425 = vmatpush3.bf16.msra.mxu0 %v4713_v57  ;;  %2294 = vst [vmem:[#allocation3 + $0x30] sm:$0x1] %v2293_v40  ;;  %v4722_v51 = vld [vmem:[#allocation4 + $0x48] sm:$0xff]   ;;  %v4723_v48 = vld [vmem:[#allocation4 + $0xc0] sm:$0xff]   ;;  %v2443_v57 = vld [vmem:[#allocation3 + $0xc] sm:$0x1] }
 0x267   : > { %4426 = vmatprep.subr.bf16.mxu0 %v4715_v13  ;;  %v4724_v35 = vld [vmem:[#allocation4 + $0x8] sm:$0xff]   ;;  %v2449_v40 = vld [vmem:[#allocation3 + $0x14] sm:$0x1] }
 0x268   : > { %4559 = vmatmul.mubr.msk.bf16.gmra.mxu0 %vm2149_vm0, %v4173_v8  ;;  %4387 = vmatpush3.bf16.msra.mxu1 %v4720_v25  ;;  %v4725_v8 = vld [vmem:[#allocation4 + $0x80] sm:$0xff]  }
 0x269   : > { %4388 = vmatprep.subr.bf16.mxu1 %v4722_v51  ;;  %v2446_v25 = vld [vmem:[#allocation3 + $0x10] sm:$0xf] }
 0x26a   : > { %4427 = vmatpush3.bf16.msra.mxu0 %v4717_v6 }
 0x26b   : > { %4428 = vmatprep.subr.bf16.mxu0 %v4719_v42 }
 0x26c   : > { %4389 = vmatpush3.bf16.msra.mxu1 %v4724_v35 }
 0x26d   : > { %4390 = vmatprep.subr.bf16.mxu1 %v4729_v33  ;;  %v2504_v33 = vld [vmem:[#allocation3] sm:$0xe] }
 0x26e   : > { %4429 = vmatpush3.bf16.msra.mxu0 %v4721_v26 }
 0x26f   : > { %4430 = vmatprep.subr.bf16.mxu0 %v4723_v48 }
 0x270   : > { %4391 = vmatpush3.bf16.msra.mxu1 %v4732_v24 }
 0x271   : > { %4456 = vmatprep.subr.bf16.mxu1 %v4741_v17 }
 0x272   : > { %4431 = vmatpush3.bf16.msra.mxu0 %v4725_v8  ;;  %v2496_v8 = vld [vmem:[#allocation3 + $0x4] sm:$0x1] }
 0x273   : > { %4496 = vmatprep.subr.bf16.mxu0 %v4738_v7 }
 0x315   : > { %v4556_v3 = vpop.f32.mrf.mxu0 }
 0x316   : > { %v2240_v62 = vmul.f32 %v4556_v3, %v5852_v5 }
 0x317   : > { %v2200_v37 = vpop.f32.mrf.mxu0 }
 0x318   : > { %v2255_v60 = vadd.f32 %v5857_v50, %v2240_v62  ;;  %v2238_v14 = vmul.f32 %v5852_v5, %v2200_v37  ;;  %v5890_v37 = vld [vmem:[#allocation3] sm:$0xf] }
 0x319   : > { %v4557_v22 = vpop.f32.mrf.mxu0 }
 0x31a   : > { %v2263_v45 = vmax.f32 %v2255_v60, 0.0  ;;  %v2253_v49 = vadd.f32 %v5857_v50, %v2238_v14  ;;  %v2241_v30 = vmul.f32 %v4557_v22, %v5852_v5  ;;  %v4199_v22 = vcombine.low %v2504_v33, %v2496_v8  ;;  %v2485_v33 = vld [vmem:[#allocation3 + $0x44] sm:$0x1] }
 0x31b   : > { %v2203_v44 = vpop.f32.mrf.mxu0 }
 0x31c   : > { %v4363_v10 = vpack.c.bf16 %v2263_v45, %v2263_v45  ;;  %v2261_v15 = vmax.f32 %v2253_v49, 0.0  ;;  %v2256_v23 = vadd.f32 %v5857_v50, %v2241_v30  ;;  %v2239_v38 = vmul.f32 %v5852_v5, %v2203_v44 }
 0x31e   : > { %v2375_v46 = vshrl.u32 %v4363_v10, 16  ;;  %v4361_v58 = vpack.c.bf16 %v2261_v15, %v2261_v15  ;;  %v2264_v36 = vmax.f32 %v2256_v23, 0.0  ;;  %v2254_v63 = vadd.f32 %v5857_v50, %v2239_v38 }
 0x31f   : > { %v2378_v21 = vshll.u32 %v4363_v10, 16  ;;  %v5896_v10 = vcombine.low %v5890_v37, %v2496_v8 }
 0x320   : > { %v2377_v32 = vrot.slane %v2375_v46, 7  ;;  %v2359_v39 = vshrl.u32 %v4361_v58, 16  ;;  %v4364_v19 = vpack.c.bf16 %v2264_v36, %v2264_v36  ;;  %v2362_v56 = vshll.u32 %v4361_v58, 16 }
 0x321   : > { %v2262_v47 = vmax.f32 %v2254_v63, 0.0 }
 0x322   : > { %v2380_v16 = vor.u32 %v2378_v21, %v2377_v32  ;;  %v2381_v61 = vrot.slane %v2377_v32, 4  ;;  %v2361_v43 = vrot.slane %v2359_v39, 7  ;;  %v2383_v9 = vshrl.u32 %v4364_v19, 16 }
 0x323   : > { %v4362_v34 = vpack.c.bf16 %v2262_v47, %v2262_v47  ;;  %v2386_v59 = vshll.u32 %v4364_v19, 16  ;;  %v2681_v32 = vrot.slane %v4199_v22, 1  ;;  %v2604_v47 = vshll.u32 %v5896_v10, 16 }
 0x324   : > { %v2453_v13 = vsel %vm5868_vm6, %v2380_v16, %v2452_v31  ;;  %v2456_v4 = vsel %vm5813_vm5, %v2381_v61, %v2455_v11  ;;  %v2364_v6 = vor.u32 %v2362_v56, %v2361_v43  ;;  %v2365_v53 = vrot.slane %v2361_v43, 4  ;;  %v2476_v16 = vld [vmem:[#allocation3 + $0x38] sm:$0xf]  ;;  %v2479_v61 = vld [vmem:[#allocation3 + $0x3c] sm:$0x1] }
 0x325   : > { %2454 = vst [vmem:[#allocation3 + $0x18] sm:$0xf] %v2453_v13  ;;  %2457 = vst [vmem:[#allocation3 + $0x1c] sm:$0x1] %v2456_v4  ;;  %v2385_v52 = vrot.slane %v2383_v9, 7  ;;  %v2367_v54 = vshrl.u32 %v4362_v34, 16 }
 0x326   : > { %v2441_v55 = vsel %vm5868_vm6, %v2364_v6, %v2440_v41  ;;  %v2444_v18 = vsel %vm5813_vm5, %v2365_v53, %v2443_v57  ;;  %v2370_v0 = vshll.u32 %v4362_v34, 16  ;;  %v2602_v56 = vshrl.u32 %v5896_v10, 16  ;;  %v2464_v4 = vld [vmem:[#allocation3 + $0x28] sm:$0xf] }
 0x327   : > { %2442 = vst [vmem:[#allocation3 + $0x8] sm:$0xf] %v2441_v55  ;;  %2445 = vst [vmem:[#allocation3 + $0xc] sm:$0x1] %v2444_v18  ;;  %v2388_v42 = vor.u32 %v2386_v59, %v2385_v52  ;;  %v2389_v12 = vrot.slane %v2385_v52, 4  ;;  %v2369_v20 = vrot.slane %v2367_v54, 7 }
 0x328   : > { %v4560_v2 = vpop.f32.mrf.mxu0  ;;  %v4740_v53 = vld [vmem:[#allocation4 + $0x1b8] sm:$0xff]  }
 0x329   : > { %v2459_v26 = vsel %vm5868_vm6, %v2388_v42, %v2458_v27  ;;  %v2462_v51 = vsel %vm5813_vm5, %v2389_v12, %v2461_v28  ;;  %v2372_v48 = vor.u32 %v2370_v0, %v2369_v20  ;;  %v2373_v35 = vrot.slane %v2369_v20, 4  ;;  %v4745_v28 = vld [vmem:[#allocation4 + $0x1f0] sm:$0xff]   ;;  %v2467_v20 = vld [vmem:[#allocation3 + $0x2c] sm:$0x1] }
 0x32a   : > { %2460 = vst [vmem:[#allocation3 + $0x20] sm:$0xf] %v2459_v26  ;;  %2463 = vst [vmem:[#allocation3 + $0x24] sm:$0x1] %v2462_v51  ;;  %v2244_v24 = vmul.f32 %v4560_v2, %v5852_v5  ;;  %v2216_v7 = vpop.f32.mrf.mxu0 }
 0x32b   : > { %v2447_v17 = vsel %vm5868_vm6, %v2372_v48, %v2446_v25  ;;  %v2450_v3 = vsel %vm5813_vm5, %v2373_v35, %v2449_v40  ;;  %v2242_v62 = vmul.f32 %v5852_v5, %v2216_v7  ;;  %v2482_v25 = vld [vmem:[#allocation3 + $0x40] sm:$0xf]  ;;  %v2606_v7 = vrot.slane %v2604_v47, 1 }
 0x32c   : > { %2448 = vst [vmem:[#allocation3 + $0x10] sm:$0xf] %v2447_v17  ;;  %2451 = vst [vmem:[#allocation3 + $0x14] sm:$0x1] %v2450_v3  ;;  %v2259_v60 = vadd.f32 %v5857_v50, %v2244_v24  ;;  %v4561_v14 = vpop.f32.mrf.mxu0  ;;  %v5912_v52 = vld [vmem:[#allocation3 + $0x18] sm:$0xf] }
 0x32d   : > { %v2257_v45 = vadd.f32 %v5857_v50, %v2242_v62  ;;  %v2245_v49 = vmul.f32 %v4561_v14, %v5852_v5  ;;  %v5914_v27 = vld [vmem:[#allocation3 + $0x1c] sm:$0x1]  ;;  %v4748_v3 = vld [vmem:[#allocation4 + $0x1b0] sm:$0xff]  }
 0x32e   : > { %v2267_v30 = vmax.f32 %v2259_v60, 0.0  ;;  %v2219_v44 = vpop.f32.mrf.mxu0  ;;  %v5900_v46 = vld [vmem:[#allocation3 + $0xc] sm:$0x1]  ;;  %v2505_v58 = vld [vmem:[#allocation3 + $0x8] sm:$0xe]  ;;  %v5926_v17 = vcombine.low %v5912_v52, %v5914_v27 }
 0x32f   : > { %v2265_v15 = vmax.f32 %v2257_v45, 0.0  ;;  %v2260_v23 = vadd.f32 %v5857_v50, %v2245_v49  ;;  %v2243_v38 = vmul.f32 %v5852_v5, %v2219_v44  ;;  %v4200_v63 = vcombine.low %v2505_v58, %v5900_v46  ;;  %v5906_v41 = vld [vmem:[#allocation3 + $0x8] sm:$0xf]  ;;  %v5932_v45 = vld [vmem:[#allocation3 + $0x18] sm:$0xf] }
 0x330   : > { %v4367_v36 = vpack.c.bf16 %v2267_v30, %v2267_v30  ;;  %v5922_v24 = vld [vmem:[#allocation3 + $0x8] sm:$0xf]  ;;  %v2507_v49 = vld [vmem:[#allocation3 + $0x18] sm:$0xe]  ;;  %v2623_v10 = vshrl.u32 %v5926_v17, 16 }
 0x331   : > { %v4365_v21 = vpack.c.bf16 %v2265_v15, %v2265_v15  ;;  %v2268_v39 = vmax.f32 %v2260_v23, 0.0  ;;  %v2258_v19 = vadd.f32 %v5857_v50, %v2243_v38  ;;  %v2682_v11 = vrot.slane %v4200_v63, 1  ;;  %v5916_v48 = vld [vmem:[#allocation3 + $0x20] sm:$0xf]  ;;  %v4751_v30 = vld [vmem:[#allocation4 + $0x1e8] sm:$0xff]  }
 0x332   : > { %v2407_v31 = vshrl.u32 %v4367_v36, 16  ;;  %v2410_v13 = vshll.u32 %v4367_v36, 16  ;;  %v4251_v23 = vcombine.low %v5932_v45, %v5916_v48  ;;  %v4202_v47 = vcombine.low %v2507_v49, %v5914_v27 }
 0x333   : > { %v2391_v5 = vshrl.u32 %v4365_v21, 16  ;;  %v4368_v43 = vpack.c.bf16 %v2268_v39, %v2268_v39  ;;  %v2266_v9 = vmax.f32 %v2258_v19, 0.0  ;;  %v5908_v57 = vld [vmem:[#allocation3 + $0x10] sm:$0xf]  ;;  %v4241_v6 = vcombine.low %v2681_v32, %v2682_v11  ;;  %v2498_v58 = vld [vmem:[#allocation3 + $0x14] sm:$0x1] }
 0x334   : > { %v2409_v34 = vrot.slane %v2407_v31, 7  ;;  %v4242_v50 = vcombine.low %v5906_v41, %v5908_v57  ;;  %v2394_v54 = vshll.u32 %v4365_v21, 16  ;;  %v5936_v38 = vld [vmem:[#allocation3 + $0x10] sm:$0xf]  ;;  %v2473_v21 = vld [vmem:[#allocation3 + $0x34] sm:$0x1]  ;;  %v4192_v39 = vcombine.low %v5922_v24, %v5900_v46 }
 0x335   : > { %v2393_v59 = vrot.slane %v2391_v5, 7  ;;  %v2415_v55 = vshrl.u32 %v4368_v43, 16  ;;  %v4366_v18 = vpack.c.bf16 %v2266_v9, %v2266_v9  ;;  %v2418_v0 = vshll.u32 %v4368_v43, 16  ;;  %v2470_v32 = vld [vmem:[#allocation3 + $0x30] sm:$0xf] }
 0x336   : > { %v2412_v42 = vor.u32 %v2410_v13, %v2409_v34  ;;  %v2413_v12 = vrot.slane %v2409_v34, 4  ;;  %3738 = vmatprep.mubr.bf16.mxu0 %v4242_v50  ;;  %v2506_v19 = vld [vmem:[#allocation3 + $0x10] sm:$0xe]  ;;  %v4193_v5 = vcombine.low %v5936_v38, %v2498_v58  ;;  %v2625_v43 = vshll.u32 %v5926_v17, 16  ;;  %v5953_v50 = vld [vmem:[#allocation3 + $0x20] sm:$0xf] }
 0x337   : > { %v2396_v40 = vor.u32 %v2394_v54, %v2393_v59  ;;  %v2397_v2 = vrot.slane %v2393_v59, 4  ;;  %v2417_v26 = vrot.slane %v2415_v55, 7  ;;  %v2399_v51 = vshrl.u32 %v4366_v18, 16  ;;  %3739 = vmatmul.mubr.bf16.vlgmr.msra.gmra.mxu0 %v4241_v6  ;;  %v4756_v9 = vld [vmem:[#allocation4 + $0x1e0] sm:$0xff]   ;;  %v2500_v6 = vld [vmem:[#allocation3 + $0x24] sm:$0x1] }
 0x338   : > { %v2477_v35 = vsel %vm5868_vm6, %v2412_v42, %v2476_v16  ;;  %v2480_v8 = vsel %vm5813_vm5, %v2413_v12, %v2479_v61  ;;  %4497 = vmatpush3.bf16.msra.mxu0 %v4740_v53  ;;  %v2402_v15 = vshll.u32 %v4366_v18, 16  ;;  %3746 = vmatprep.mubr.bf16.mxu0 %v4251_v23  ;;  %v4753_v16 = vld [vmem:[#allocation4 + $0x1a8] sm:$0xff]   ;;  %v2611_v61 = vshll.u32 %v4192_v39, 16  ;;  %v2508_v18 = vld [vmem:[#allocation3 + $0x20] sm:$0xe]  ;;  %v4767_v12 = vld [vmem:[#allocation4 + $0x1d8] sm:$0xff]  }
 0x339   : > { %2478 = vst [vmem:[#allocation3 + $0x38] sm:$0xf] %v2477_v35  ;;  %2481 = vst [vmem:[#allocation3 + $0x3c] sm:$0x1] %v2480_v8  ;;  %v2465_v62 = vsel %vm5868_vm6, %v2396_v40, %v2464_v4  ;;  %v2468_v60 = vsel %vm5813_vm5, %v2397_v2, %v2467_v20  ;;  %v2420_v14 = vor.u32 %v2418_v0, %v2417_v26  ;;  %v2421_v22 = vrot.slane %v2417_v26, 4  ;;  %v4771_v23 = vld [vmem:[#allocation4 + $0x198] sm:$0xff]  }
 0x33a   : > { %4498 = vmatprep.subr.bf16.mxu0 %v4745_v28  ;;  %2466 = vst [vmem:[#allocation3 + $0x28] sm:$0xf] %v2465_v62  ;;  %2469 = vst [vmem:[#allocation3 + $0x2c] sm:$0x1] %v2468_v60  ;;  %v2401_v44 = vrot.slane %v2399_v51, 7  ;;  %v2607_v13 = vor.u32 %v2606_v7, %v2602_v56  ;;  %v4201_v4 = vcombine.low %v2506_v19, %v2498_v58  ;;  %v2609_v53 = vshrl.u32 %v4192_v39, 16 }
 0x33b   : > { %v2483_v36 = vsel %vm5868_vm6, %v2420_v14, %v2482_v25  ;;  %v2486_v63 = vsel %vm5813_vm5, %v2421_v22, %v2485_v33  ;;  %v2613_v59 = vrot.slane %v2611_v61, 1  ;;  %v2618_v54 = vshll.u32 %v4193_v5, 16  ;;  %v4757_v56 = vld [vmem:[#allocation4 + $0x1a0] sm:$0xff]   ;;  %v4744_v33 = vld [vmem:[#allocation4 + $0x138] sm:$0xff]   ;;  %v4749_v7 = vld [vmem:[#allocation4 + $0x170] sm:$0xff]  }
 0x33c   : > { %2484 = vst [vmem:[#allocation3 + $0x40] sm:$0xf] %v2483_v36  ;;  %2487 = vst [vmem:[#allocation3 + $0x44] sm:$0x1] %v2486_v63  ;;  %v2404_v31 = vor.u32 %v2402_v15, %v2401_v44  ;;  %v2405_v11 = vrot.slane %v2401_v44, 4  ;;  %4499 = vmatpush3.bf16.msra.mxu0 %v4748_v3  ;;  %v2627_v55 = vrot.slane %v2625_v43, 1  ;;  %v5959_v2 = vcombine.low %v5953_v50, %v2500_v6 }
 0x33d   : > { %4500 = vmatprep.subr.bf16.mxu0 %v4751_v30  ;;  %v2683_v27 = vrot.slane %v4201_v4, 1  ;;  %v2684_v29 = vrot.slane %v4202_v47, 1  ;;  %v2614_v28 = vor.u32 %v2613_v59, %v2609_v53  ;;  %v2616_v1 = vshrl.u32 %v4193_v5, 16  ;;  %v5968_v22 = vld [vmem:[#allocation3 + $0x10] sm:$0xf]  ;;  %v4750_v44 = vld [vmem:[#allocation4 + $0x130] sm:$0xff]  }
 0x33e   : > { %v2471_v46 = vsel %vm5868_vm6, %v2404_v31, %v2470_v32  ;;  %v2474_v34 = vsel %vm5813_vm5, %v2405_v11, %v2473_v21  ;;  %v2620_v42 = vrot.slane %v2618_v54, 1  ;;  %v4203_v26 = vcombine.low %v2508_v18, %v2500_v6  ;;  %v5970_v49 = vld [vmem:[#allocation3 + $0x14] sm:$0x1]  ;;  %v4775_v58 = vld [vmem:[#allocation4 + $0x1d0] sm:$0xff]   ;;  %v4754_v36 = vld [vmem:[#allocation4 + $0x168] sm:$0xff]  }
 0x33f   : > { %2472 = vst [vmem:[#allocation3 + $0x30] sm:$0xf] %v2471_v46  ;;  %2475 = vst [vmem:[#allocation3 + $0x34] sm:$0x1] %v2474_v34  ;;  %v4250_v20 = vcombine.low %v2683_v27, %v2684_v29  ;;  %v4240_v51 = vcombine.low %v2607_v13, %v2614_v28  ;;  %v2628_v8 = vor.u32 %v2627_v55, %v2623_v10  ;;  %v2632_v32 = vshll.u32 %v5959_v2, 16  ;;  %v4776_v6 = vld [vmem:[#allocation4 + $0x190] sm:$0xff]  }
 0x340   : > { %4501 = vmatpush3.bf16.msra.mxu0 %v4753_v16  ;;  %v2621_v35 = vor.u32 %v2620_v42, %v2616_v1  ;;  %v5961_v62 = vld [vmem:[#allocation3 + $0x38] sm:$0xf]  ;;  %v4239_v17 = vcombine.low %v5890_v37, %v5922_v24  ;;  %v5966_v14 = vld [vmem:[#allocation3 + $0x3c] sm:$0x1]  ;;  %v2685_v24 = vrot.slane %v4203_v26, 1  ;;  %v4223_v61 = vcombine.low %v5968_v22, %v5970_v49  ;;  %v4761_v42 = vld [vmem:[#allocation4 + $0x160] sm:$0xff]  }
 0x341   : > { %4502 = vmatprep.subr.bf16.mxu0 %v4756_v9  ;;  %v5956_v0 = vld [vmem:[#allocation3 + $0x28] sm:$0xf]  ;;  %v2501_v25 = vld [vmem:[#allocation3 + $0x2c] sm:$0x1]  ;;  %3747 = vmatmul.mubr.bf16.gmra.mxu0 %v4250_v20  ;;  %v5979_v21 = vcombine.low %v5961_v62, %v5966_v14  ;;  %v5981_v39 = vld [vmem:[#allocation3 + $0x18] sm:$0xf]  ;;  %v4248_v28 = vcombine.low %v5936_v38, %v5912_v52 }
 0x342   : > { %v2509_v40 = vld [vmem:[#allocation3 + $0x28] sm:$0xe]  ;;  %v4196_v60 = vcombine.low %v5956_v0, %v2501_v25  ;;  %3673 = vmatprep.mubr.bf16.mxu1 %v4240_v51  ;;  %v4249_v30 = vcombine.low %v2621_v35, %v2628_v8  ;;  %v5983_v19 = vld [vmem:[#allocation3 + $0x1c] sm:$0x1]  ;;  %v2634_v43 = vrot.slane %v2632_v32, 1  ;;  %v2630_v4 = vshrl.u32 %v5959_v2, 16 }
 0x343   : > { %v4204_v3 = vcombine.low %v2509_v40, %v2501_v25  ;;  %3674 = vmatmul.mubr.bf16.vlgmr.msra.gmra.mxu1 %v4239_v17  ;;  %v5972_v63 = vld [vmem:[#allocation3 + $0x28] sm:$0xf]  ;;  %v5987_v11 = vld [vmem:[#allocation3 + $0x40] sm:$0xf]  ;;  %v2511_v13 = vld [vmem:[#allocation3 + $0x38] sm:$0xe] }
 0x344   : > { %4503 = vmatpush3.bf16.msra.mxu0 %v4757_v56  ;;  %3681 = vmatprep.mubr.bf16.mxu1 %v4249_v30  ;;  %v2639_v9 = vshll.u32 %v4196_v60, 16  ;;  %v2653_v53 = vshll.u32 %v5979_v21, 16  ;;  %v5996_v59 = vld [vmem:[#allocation3 + $0x38] sm:$0xf]  ;;  %v2637_v54 = vshrl.u32 %v4196_v60, 16  ;;  %v4206_v56 = vcombine.low %v2511_v13, %v5966_v14  ;;  %v4790_v14 = vld [vmem:[#allocation4 + $0x1c0] sm:$0xff]  }
 0x345   : > { %v2686_v15 = vrot.slane %v4204_v3, 1  ;;  %4504 = vmatprep.subr.bf16.mxu0 %v4767_v12  ;;  %4457 = vmatpush3.bf16.msra.mxu1 %v4744_v33  ;;  %v4783_v29 = vld [vmem:[#allocation4 + $0x1c8] sm:$0xff]   ;;  %v4269_v10 = vcombine.low %v5996_v59, %v5987_v11  ;;  %v4224_v12 = vcombine.low %v5981_v39, %v5983_v19  ;;  %v2635_v20 = vor.u32 %v2634_v43, %v2630_v4  ;;  %v6005_v26 = vld [vmem:[#allocation3 + $0x20] sm:$0xf]  ;;  %v6007_v51 = vld [vmem:[#allocation3 + $0x24] sm:$0x1] }
 0x346   : > { %v5974_v37 = vld [vmem:[#allocation3 + $0x30] sm:$0xf]  ;;  %v2502_v16 = vld [vmem:[#allocation3 + $0x34] sm:$0x1]  ;;  %4458 = vmatprep.subr.bf16.mxu1 %v4749_v7  ;;  %v2641_v55 = vrot.slane %v2639_v9, 1  ;;  %v4755_v1 = vld [vmem:[#allocation4 + $0x128] sm:$0xff]  }
 0x347   : > { %v4260_v31 = vcombine.low %v5972_v63, %v5974_v37  ;;  %v5989_v47 = vld [vmem:[#allocation3 + $0x30] sm:$0xf]  ;;  %v4259_v5 = vcombine.low %v2685_v24, %v2686_v15  ;;  %v2860_v2 = vshll.u32 %v4223_v61, 16  ;;  %v2655_v38 = vrot.slane %v2653_v53, 1  ;;  %v4784_v35 = vld [vmem:[#allocation4 + $0x188] sm:$0xff]   ;;  %v4772_v24 = vld [vmem:[#allocation4 + $0x158] sm:$0xff]  }
 0x348   : > { %v4197_v46 = vcombine.low %v5989_v47, %v2502_v16  ;;  %v2510_v34 = vld [vmem:[#allocation3 + $0x30] sm:$0xe]  ;;  %4505 = vmatpush3.bf16.msra.mxu0 %v4771_v23  ;;  %v2642_v25 = vor.u32 %v2641_v55, %v2637_v54  ;;  %v2867_v8 = vshll.u32 %v4224_v12, 16  ;;  %v6009_v33 = vld [vmem:[#allocation3 + $0x28] sm:$0xf]  ;;  %v2858_v17 = vshrl.u32 %v4223_v61, 16 }
 0x349   : > { %3754 = vmatprep.mubr.bf16.mxu0 %v4260_v31  ;;  %4506 = vmatprep.subr.bf16.mxu0 %v4775_v58  ;;  %v4205_v27 = vcombine.low %v2510_v34, %v2502_v16  ;;  %v2862_v60 = vrot.slane %v2860_v2, 1  ;;  %v6011_v30 = vld [vmem:[#allocation3 + $0x2c] sm:$0x1]  ;;  %v2651_v23 = vshrl.u32 %v5979_v21, 16  ;;  %v2865_v58 = vshrl.u32 %v4224_v12, 16  ;;  %v4793_v16 = vld [vmem:[#allocation4 + $0x180] sm:$0xff]  }
 0x34a   : > { %v2646_v18 = vshll.u32 %v4197_v46, 16  ;;  %4459 = vmatpush3.bf16.msra.mxu1 %v4750_v44  ;;  %3755 = vmatmul.mubr.bf16.gmra.mxu0 %v4259_v5  ;;  %v2644_v52 = vshrl.u32 %v4197_v46, 16  ;;  %v4258_v7 = vcombine.low %v2635_v20, %v2642_v25  ;;  %v4766_v44 = vld [vmem:[#allocation4 + $0x120] sm:$0xff]   ;;  %v2688_v32 = vrot.slane %v4206_v56, 1  ;;  %v2520_v5 = vld [vmem:[#allocation3 + $0xc] sm:$0x1] }
 0x34b   : > { %4460 = vmatprep.subr.bf16.mxu1 %v4754_v36  ;;  %3762 = vmatprep.mubr.bf16.mxu0 %v4269_v10  ;;  %v2687_v3 = vrot.slane %v4205_v27, 1  ;;  %v2869_v36 = vrot.slane %v2867_v8, 1  ;;  %v2863_v31 = vor.u32 %v2862_v60, %v2858_v17  ;;  %v4225_v61 = vcombine.low %v6005_v26, %v6007_v51  ;;  %v2521_v43 = vld [vmem:[#allocation3 + $0x14] sm:$0x1]  ;;  %v2529_v34 = vld [vmem:[#allocation3 + $0x10] sm:$0xe] }
 0x34c   : > { %v2648_v40 = vrot.slane %v2646_v18, 1  ;;  %4507 = vmatpush3.bf16.msra.mxu0 %v4776_v6  ;;  %3682 = vmatmul.mubr.bf16.gmra.mxu1 %v4248_v28  ;;  %v2656_v9 = vor.u32 %v2655_v38, %v2651_v23  ;;  %v4226_v21 = vcombine.low %v6009_v33, %v6011_v30  ;;  %v6018_v6 = vld [vmem:[#allocation3 + $0x30] sm:$0xf]  ;;  %v6020_v53 = vld [vmem:[#allocation3 + $0x38] sm:$0xf]  ;;  %v4774_v54 = vld [vmem:[#allocation4 + $0x118] sm:$0xff]   ;;  %v4216_v12 = vcombine.low %v2529_v34, %v2521_v43 }
 0x34d   : > { %4508 = vmatprep.subr.bf16.mxu0 %v4783_v29  ;;  %3689 = vmatprep.mubr.bf16.mxu1 %v4258_v7  ;;  %v2870_v46 = vor.u32 %v2869_v36, %v2865_v58  ;;  %v4268_v13 = vcombine.low %v2687_v3, %v2688_v32  ;;  %v2874_v4 = vshll.u32 %v4225_v61, 16  ;;  %v6022_v29 = vld [vmem:[#allocation3 + $0x34] sm:$0x1]  ;;  %v6024_v28 = vld [vmem:[#allocation3 + $0x3c] sm:$0x1]  ;;  %v4779_v10 = vld [vmem:[#allocation4 + $0x150] sm:$0xff]   ;;  %v6032_v2 = vcombine.low %v5906_v41, %v2520_v5 }
 0x34e   : > { %4461 = vmatpush3.bf16.msra.mxu1 %v4755_v1  ;;  %v2649_v15 = vor.u32 %v2648_v40, %v2644_v52  ;;  %v2881_v27 = vshll.u32 %v4226_v21, 16  ;;  %v6027_v1 = vcombine.low %v5908_v57, %v2521_v43  ;;  %v2528_v56 = vld [vmem:[#allocation3 + $0x8] sm:$0xe]  ;;  %v2879_v25 = vshrl.u32 %v4226_v21, 16  ;;  %v4782_v52 = vld [vmem:[#allocation4 + $0x110] sm:$0xff]  }
 0x34f   : > { %4462 = vmatprep.subr.bf16.mxu1 %v4761_v42  ;;  %v4246_v18 = vcombine.low %v2863_v31, %v2870_v46  ;;  %v4257_v42 = vcombine.low %v5953_v50, %v5956_v0  ;;  %v2876_v20 = vrot.slane %v2874_v4, 1  ;;  %v4227_v57 = vcombine.low %v6018_v6, %v6022_v29  ;;  %v4787_v0 = vld [vmem:[#allocation4 + $0x148] sm:$0xff]   ;;  %v6038_v7 = vld [vmem:[#allocation3 + $0x48] sm:$0xf]  ;;  %v6040_v3 = vld [vmem:[#allocation3 + $0x4c] sm:$0x1] }
 0x350   : > { %4509 = vmatpush3.bf16.msra.mxu0 %v4784_v35  ;;  %v4267_v55 = vcombine.low %v2649_v15, %v2656_v9  ;;  %v2883_v40 = vrot.slane %v2881_v27, 1  ;;  %v4228_v50 = vcombine.low %v6020_v53, %v6024_v28  ;;  %v4215_v38 = vcombine.low %v2528_v56, %v2520_v5  ;;  %v6043_v60 = vld [vmem:[#allocation3 + $0x40] sm:$0xf]  ;;  %v4795_v56 = vld [vmem:[#allocation4 + $0x100] sm:$0xff]  }
 0x351   : > { %4510 = vmatprep.subr.bf16.mxu0 %v4790_v14  ;;  %v2872_v35 = vshrl.u32 %v4225_v61, 16  ;;  %v2739_v41 = vshll.u32 %v6027_v1, 16  ;;  %v2888_v17 = vshll.u32 %v4227_v57, 16  ;;  %v6045_v14 = vld [vmem:[#allocation3 + $0x44] sm:$0x1]  ;;  %v2810_v15 = vrot.slane %v4216_v12, 1 }
 0x352   : > { %4463 = vmatpush3.bf16.msra.mxu1 %v4766_v44  ;;  %3763 = vmatmul.mubr.bf16.gmra.mxu0 %v4268_v13  ;;  %v2884_v8 = vor.u32 %v2883_v40, %v2879_v25  ;;  %v2523_v44 = vld [vmem:[#allocation3 + $0x24] sm:$0x1]  ;;  %v2895_v58 = vshll.u32 %v4228_v50, 16  ;;  %v2732_v36 = vshll.u32 %v6032_v2, 16  ;;  %v2531_v32 = vld [vmem:[#allocation3 + $0x20] sm:$0xe]  ;;  %v6052_v31 = vcombine.low %v6038_v7, %v6040_v3 }
 0x353   : > { %4464 = vmatprep.subr.bf16.mxu1 %v4772_v24  ;;  %3868 = vmatprep.mubr.bf16.mxu0 %v4246_v18  ;;  %v2877_v23 = vor.u32 %v2876_v20, %v2872_v35  ;;  %v4245_v24 = vcombine.low %v5968_v22, %v5981_v39  ;;  %v4789_v61 = vld [vmem:[#allocation4 + $0x108] sm:$0xff]   ;;  %v2809_v5 = vrot.slane %v4215_v38, 1  ;;  %v2890_v9 = vrot.slane %v2888_v17, 1  ;;  %v4794_v39 = vld [vmem:[#allocation4 + $0x140] sm:$0xff]   ;;  %v2524_v17 = vld [vmem:[#allocation3 + $0x2c] sm:$0x1] }
 0x354   : > { %4511 = vmatpush3.bf16.msra.mxu0 %v4793_v16  ;;  %3690 = vmatmul.mubr.bf16.gmra.mxu1 %v4257_v42  ;;  %v2522_v16 = vld [vmem:[#allocation3 + $0x1c] sm:$0x1]  ;;  %v6056_v46 = vcombine.low %v6043_v60, %v6045_v14  ;;  %v2741_v34 = vrot.slane %v2739_v41, 1  ;;  %v6059_v21 = vcombine.low %v5916_v48, %v2523_v44  ;;  %v4266_v22 = vcombine.low %v5989_v47, %v5961_v62  ;;  %v2530_v13 = vld [vmem:[#allocation3 + $0x18] sm:$0xe] }
 0x355   : > { %3697 = vmatprep.mubr.bf16.mxu1 %v4267_v55  ;;  %v4255_v43 = vcombine.low %v2877_v23, %v2884_v8  ;;  %v4244_v4 = vcombine.low %v2809_v5, %v2810_v15  ;;  %v2886_v55 = vshrl.u32 %v4227_v57, 16  ;;  %v2897_v18 = vrot.slane %v2895_v58, 1  ;;  %v2525_v57 = vld [vmem:[#allocation3 + $0x34] sm:$0x1]  ;;  %v2533_v41 = vld [vmem:[#allocation3 + $0x30] sm:$0xe] }
 0x356   : > { %4465 = vmatpush3.bf16.msra.mxu1 %v4774_v54  ;;  %v4218_v54 = vcombine.low %v2531_v32, %v2523_v44  ;;  %v2734_v27 = vrot.slane %v2732_v36, 1  ;;  %v2737_v42 = vshrl.u32 %v6027_v1, 16  ;;  %v2909_v48 = vshll.u32 %v6052_v31, 16  ;;  %v4801_v1 = vld [vmem:[#allocation4 + $0x238] sm:$0xff]  }
 0x357   : > { %4466 = vmatprep.subr.bf16.mxu1 %v4779_v10  ;;  %v4209_v10 = vcombine.low %v5932_v45, %v2522_v16  ;;  %v4217_v62 = vcombine.low %v2530_v13, %v2522_v16  ;;  %v2891_v47 = vor.u32 %v2890_v9, %v2886_v55  ;;  %v2893_v12 = vshrl.u32 %v4228_v50, 16  ;;  %v2532_v16 = vld [vmem:[#allocation3 + $0x28] sm:$0xe] }
 0x358   : > { %v2902_v20 = vshll.u32 %v6056_v46, 16  ;;  %v2730_v25 = vshrl.u32 %v6032_v2, 16  ;;  %v2742_v40 = vor.u32 %v2741_v34, %v2737_v42  ;;  %v2812_v45 = vrot.slane %v4218_v54, 1  ;;  %v2527_v54 = vld [vmem:[#allocation3 + $0x44] sm:$0x1] }
 0x359   : > { %v2746_v35 = vshll.u32 %v4209_v10, 16  ;;  %v4254_v8 = vcombine.low %v6005_v26, %v6009_v33  ;;  %v2907_v50 = vshrl.u32 %v6052_v31, 16  ;;  %v2811_v44 = vrot.slane %v4217_v62, 1  ;;  %v2526_v42 = vld [vmem:[#allocation3 + $0x3c] sm:$0x1] }
 0x35a   : > { %4467 = vmatpush3.bf16.msra.mxu1 %v4782_v52  ;;  %3869 = vmatmul.mubr.bf16.vlgmr.msra.gmra.mxu0 %v4245_v24  ;;  %v2753_v52 = vshll.u32 %v6059_v21, 16  ;;  %v2735_v38 = vor.u32 %v2734_v27, %v2730_v25  ;;  %v2904_v15 = vrot.slane %v2902_v20, 1  ;;  %v2911_v23 = vrot.slane %v2909_v48, 1  ;;  %v4804_v24 = vld [vmem:[#allocation4 + $0x230] sm:$0xff]  }
 0x35b   : > { %4468 = vmatprep.subr.bf16.mxu1 %v4787_v0  ;;  %3876 = vmatprep.mubr.bf16.mxu0 %v4255_v43  ;;  %v2898_v0 = vor.u32 %v2897_v18, %v2893_v12  ;;  %v4212_v58 = vcombine.low %v5974_v37, %v2525_v57  ;;  %v4220_v26 = vcombine.low %v2533_v41, %v2525_v57  ;;  %v2900_v33 = vshrl.u32 %v6056_v46, 16  ;;  %v2535_v27 = vld [vmem:[#allocation3 + $0x40] sm:$0xe]  ;;  %v2534_v12 = vld [vmem:[#allocation3 + $0x38] sm:$0xe] }
 0x35c   : > { %3698 = vmatmul.mubr.bf16.gmra.mxu1 %v4266_v22  ;;  %v4243_v36 = vcombine.low %v2735_v38, %v2742_v40  ;;  %v2755_v32 = vrot.slane %v2753_v52, 1  ;;  %v4211_v31 = vcombine.low %v5972_v63, %v2524_v17  ;;  %v2748_v5 = vrot.slane %v2746_v35, 1  ;;  %v2553_v41 = vld [vmem:[#allocation3 + $0x10] sm:$0xe] }
 0x35d   : > { %3803 = vmatprep.mubr.bf16.mxu1 %v4244_v4  ;;  %v4264_v2 = vcombine.low %v2891_v47, %v2898_v0  ;;  %v2751_v43 = vshrl.u32 %v6059_v21, 16  ;;  %v4219_v37 = vcombine.low %v2532_v16, %v2524_v17  ;;  %v2905_v9 = vor.u32 %v2904_v15, %v2900_v33  ;;  %v4811_v47 = vld [vmem:[#allocation4 + $0x220] sm:$0xff]   ;;  %v4818_v17 = vld [vmem:[#allocation4 + $0x210] sm:$0xff]   ;;  %v2556_v16 = vld [vmem:[#allocation3 + $0x28] sm:$0xe] }
 0x35e   : > { %4469 = vmatpush3.bf16.msra.mxu1 %v4789_v61  ;;  %v4253_v61 = vcombine.low %v2811_v44, %v2812_v45  ;;  %v2912_v34 = vor.u32 %v2911_v23, %v2907_v50  ;;  %v2767_v22 = vshll.u32 %v4212_v58, 16  ;;  %v2744_v13 = vshrl.u32 %v4209_v10, 16  ;;  %v2557_v33 = vld [vmem:[#allocation3 + $0x30] sm:$0xe] }
 0x35f   : > { %4470 = vmatprep.subr.bf16.mxu1 %v4794_v39  ;;  %v4808_v39 = vld [vmem:[#allocation4 + $0x228] sm:$0xff]   ;;  %v2756_v4 = vor.u32 %v2755_v32, %v2751_v43  ;;  %v2814_v55 = vrot.slane %v4220_v26, 1  ;;  %v2760_v18 = vshll.u32 %v4211_v31, 16  ;;  %v4263_v63 = vcombine.low %v6018_v6, %v6020_v53 }
 0x360   : > { %v2749_v46 = vor.u32 %v2748_v5, %v2744_v13  ;;  %v2813_v21 = vrot.slane %v4219_v37, 1  ;;  %v4273_v48 = vcombine.low %v2905_v9, %v2912_v34  ;;  %v2769_v10 = vrot.slane %v2767_v22, 1  ;;  %v4823_v37 = vld [vmem:[#allocation4 + $0x200] sm:$0xff]   ;;  %v2558_v9 = vld [vmem:[#allocation3 + $0x38] sm:$0xe] }
 0x361   : > { %v4222_v25 = vcombine.low %v2535_v27, %v2527_v54  ;;  %v4213_v40 = vcombine.low %v5996_v59, %v2526_v42  ;;  %v2762_v6 = vrot.slane %v2760_v18, 1  ;;  %v2765_v53 = vshrl.u32 %v4212_v58, 16 }
 0x362   : > { %4471 = vmatpush3.bf16.msra.mxu1 %v4795_v56  ;;  %3877 = vmatmul.mubr.bf16.gmra.mxu0 %v4254_v8  ;;  %v4214_v56 = vcombine.low %v5987_v11, %v2527_v54  ;;  %v4252_v62 = vcombine.low %v2749_v46, %v2756_v4  ;;  %v4262_v20 = vcombine.low %v2813_v21, %v2814_v55  ;;  %v4815_v11 = vld [vmem:[#allocation4 + $0x218] sm:$0xff]   ;;  %v2758_v57 = vshrl.u32 %v4211_v31, 16  ;;  %v2555_v31 = vld [vmem:[#allocation3 + $0x20] sm:$0xe] }
 0x363   : > { %4562 = vmatprep.subr.bf16.mxu1 %v4801_v1  ;;  %3884 = vmatprep.mubr.bf16.mxu0 %v4264_v2  ;;  %v4221_v52 = vcombine.low %v2534_v12, %v2526_v42  ;;  %v2770_v45 = vor.u32 %v2769_v10, %v2765_v53  ;;  %v2816_v0 = vrot.slane %v4222_v25, 1  ;;  %v2774_v38 = vshll.u32 %v4213_v40, 16  ;;  %v2554_v2 = vld [vmem:[#allocation3 + $0x18] sm:$0xe]  ;;  %v2559_v54 = vld [vmem:[#allocation3 + $0x40] sm:$0xe] }
 0x364   : > { %v2763_v35 = vor.u32 %v2762_v6, %v2758_v57  ;;  %v4272_v8 = vcombine.low %v6043_v60, %v6038_v7  ;;  %v4231_v23 = vcombine.low %v2553_v41, %v5970_v49  ;;  %v4820_v7 = vld [vmem:[#allocation4 + $0x208] sm:$0xff]   ;;  %v2772_v60 = vshrl.u32 %v4213_v40, 16  ;;  %v2560_v55 = vld [vmem:[#allocation3 + $0x48] sm:$0xe] }
 0x365   : > { %3804 = vmatmul.mubr.bf16.vlgmr.msra.gmra.mxu1 %v4243_v36  ;;  %v2815_v59 = vrot.slane %v4221_v52, 1  ;;  %v2776_v58 = vrot.slane %v2774_v38, 1  ;;  %v2779_v36 = vshrl.u32 %v4214_v56, 16  ;;  %v4234_v49 = vcombine.low %v2556_v16, %v6011_v30 }
 0x366   : > { %4563 = vmatpush3.bf16.msra.mxu1 %v4801_v1  ;;  %3811 = vmatprep.mubr.bf16.mxu1 %v4253_v61  ;;  %v2781_v1 = vshll.u32 %v4214_v56, 16  ;;  %v4261_v50 = vcombine.low %v2763_v35, %v2770_v45  ;;  %v2937_v61 = vrot.slane %v4231_v23, 1  ;;  %v4233_v22 = vcombine.low %v2555_v31, %v6007_v51 }
 0x367   : > { %4564 = vmatprep.subr.bf16.mxu1 %v4804_v24  ;;  %v4271_v15 = vcombine.low %v2815_v59, %v2816_v0  ;;  %v2777_v26 = vor.u32 %v2776_v58, %v2772_v60  ;;  %v2940_v13 = vrot.slane %v4234_v49, 1 }
 0x368   : > { %v2783_v44 = vrot.slane %v2781_v1, 1  ;;  %v2939_v30 = vrot.slane %v4233_v22, 1 }
 0x36a   : > { %4565 = vmatpush3.bf16.msra.mxu1 %v4804_v24  ;;  %3885 = vmatmul.mubr.bf16.gmra.mxu0 %v4263_v63  ;;  %v4232_v24 = vcombine.low %v2554_v2, %v5983_v19  ;;  %v2784_v32 = vor.u32 %v2783_v44, %v2779_v36  ;;  %v4235_v19 = vcombine.low %v2557_v33, %v6022_v29 }
 0x36b   : > { %4566 = vmatprep.subr.bf16.mxu1 %v4808_v39  ;;  %3892 = vmatprep.mubr.bf16.mxu0 %v4273_v48  ;;  %v4256_v46 = vcombine.low %v2939_v30, %v2940_v13  ;;  %v4237_v63 = vcombine.low %v2559_v54, %v6045_v14  ;;  %v4238_v29 = vcombine.low %v2560_v55, %v6040_v3 }
 0x36c   : > { %v2938_v5 = vrot.slane %v4232_v24, 1  ;;  %v4270_v43 = vcombine.low %v2777_v26, %v2784_v32  ;;  %v2941_v4 = vrot.slane %v4235_v19, 1 }
 0x36d   : > { %3812 = vmatmul.mubr.bf16.gmra.mxu1 %v4252_v62  ;;  %v2943_v51 = vrot.slane %v4237_v63, 1  ;;  %v2944_v42 = vrot.slane %v4238_v29, 1 }
 0x36e   : > { %4567 = vmatpush3.bf16.msra.mxu1 %v4808_v39  ;;  %3819 = vmatprep.mubr.bf16.mxu1 %v4262_v20  ;;  %v4247_v34 = vcombine.low %v2937_v61, %v2938_v5  ;;  %v4236_v39 = vcombine.low %v2558_v9, %v6024_v28 }
 0x36f   : > { %4568 = vmatprep.subr.bf16.mxu1 %v4811_v47  ;;  %v4274_v21 = vcombine.low %v2943_v51, %v2944_v42 }
 0x370   : > { %v2942_v18 = vrot.slane %v4236_v39, 1 }
 0x372   : > { %4569 = vmatpush3.bf16.msra.mxu1 %v4811_v47  ;;  %3893 = vmatmul.mubr.bf16.gmra.mxu0 %v4272_v8  ;;  %v4265_v27 = vcombine.low %v2941_v4, %v2942_v18 }
 0x373   : > { %4570 = vmatprep.subr.bf16.mxu1 %v4815_v11 }
 0x375   : > { %3820 = vmatmul.mubr.bf16.gmra.mxu1 %v4261_v50 }
 0x376   : > { %4571 = vmatpush3.bf16.msra.mxu1 %v4815_v11  ;;  %3827 = vmatprep.mubr.bf16.mxu1 %v4271_v15 }
 0x377   : > { %4572 = vmatprep.subr.bf16.mxu1 %v4818_v17 }
 0x37a   : > { %4573 = vmatpush3.bf16.msra.mxu1 %v4818_v17 }
 0x37b   : > { %4574 = vmatprep.subr.bf16.mxu1 %v4820_v7 }
 0x37d   : > { %3828 = vmatmul.mubr.bf16.gmra.mxu1 %v4270_v43 }
 0x37e   : > { %4575 = vmatpush3.bf16.msra.mxu1 %v4820_v7  ;;  %4578 = vmatprep.mubr.bf16.mxu1 %v4247_v34 }
 0x37f   : > { %4576 = vmatprep.subr.bf16.mxu1 %v4823_v37 }
 0x382   : > { %4577 = vmatpush3.bf16.msra.mxu1 %v4823_v37 }
 0x385   : > { %4579 = vmatmul.mubr.bf16.vlgmr.msra.gmra.mxu1 %v4256_v46 }
 0x386   : > { %4582 = vmatprep.mubr.bf16.mxu1 %v4265_v27 }
 0x38d   : > { %4583 = vmatmul.mubr.bf16.gmra.mxu1 %v4274_v21 }
 0x3f7   : > { %v4432_v28 = vpop.f32.mrf.mxu0 }
 0x3f9   : > { %v4433_v48 = vpop.f32.mrf.mxu0 }
 0x3fa   : > { %v4434_v51 = vadd.f32 %v4433_v48, %v4432_v28 }
 0x3fb   : > { %v6090_v56 = vpop.f32.mrf.mxu0 }
 0x3fd   : > { %v6092_v62 = vpop.f32.mrf.mxu0 }
 0x401   : > { %v4438_v47 = vpop.f32.mrf.mxu0 }
 0x403   : > { %v4392_v10 = vpop.f32.mrf.mxu1  ;;  %v4439_v12 = vpop.f32.mrf.mxu0 }
 0x404   : > { %v4440_v63 = vadd.f32 %v4439_v12, %v4438_v47 }
 0x405   : > { %v4393_v20 = vpop.f32.mrf.mxu1  ;;  %v4441_v14 = vpop.f32.mrf.mxu0 }
 0x406   : > { %v4394_v46 = vadd.f32 %v4393_v20, %v4392_v10 }
 0x407   : > { %v4395_v25 = vpop.f32.mrf.mxu1  ;;  %v4442_v3 = vpop.f32.mrf.mxu0 }
 0x409   : > { %v4396_v40 = vpop.f32.mrf.mxu1 }
 0x40a   : > { %v6094_v6 = vpop.f32.mrf.mxu0 }
 0x40c   : > { %v4398_v53 = vpop.f32.mrf.mxu1  ;;  %v6096_v52 = vpop.f32.mrf.mxu0 }
 0x40e   : > { %v4399_v1 = vpop.f32.mrf.mxu1  ;;  %v6098_v11 = vpop.f32.mrf.mxu0 }
 0x40f   : > { %v4400_v55 = vadd.f32 %v4399_v1, %v4398_v53  ;;  %v4437_v53 = vadd.f32 %v6092_v62, %v6090_v56 }
 0x410   : > { %v4401_v57 = vpop.f32.mrf.mxu1  ;;  %v6100_v45 = vpop.f32.mrf.mxu0 }
 0x411   : > { %v3749_v42 = vadd.f32 %v4440_v63, %v4400_v55 }
 0x412   : > { %v4402_v0 = vpop.f32.mrf.mxu1  ;;  %v6102_v38 = vpop.f32.mrf.mxu0 }
 0x413   : > { %v4403_v21 = vadd.f32 %v4402_v0, %v4401_v57  ;;  %v4449_v0 = vadd.f32 %v6100_v45, %v6098_v11 }
 0x414   : > { %v4404_v35 = vpop.f32.mrf.mxu1  ;;  %v4451_v8 = vpop.f32.mrf.mxu0 }
 0x416   : > { %v4405_v41 = vpop.f32.mrf.mxu1  ;;  %v6104_v59 = vpop.f32.mrf.mxu0 }
 0x417   : > { %6205 = vst [vmem:[#allocation7_spill] sm:$0xff] %v6104_v59  ;;  %v4443_v59 = vadd.f32 %v4442_v3, %v4441_v14  ;;  %v4406_v1 = vadd.f32 %v4405_v41, %v4404_v35 }
 0x418   : > { %v6106_v50 = vpop.f32.mrf.mxu1  ;;  %v6108_v17 = vpop.f32.mrf.mxu0 }
 0x419   : > { %6206 = vst [vmem:[#allocation8_spill] sm:$0xff] %v6108_v17  ;;  %v3741_v17 = vadd.f32 %v4434_v51, %v4394_v46  ;;  %v3752_v47 = vadd.f32 %v4443_v59, %v4403_v21 }
 0x41a   : > { %v6110_v44 = vpop.f32.mrf.mxu1  ;;  %v4512_v2 = vpop.f32.mrf.mxu0 }
 0x41b   : > { %6207 = vst [vmem:[#allocation9_spill] sm:$0xff] %v6110_v44 }
 0x41c   : > { %v4410_v15 = vpop.f32.mrf.mxu1  ;;  %v4513_v23 = vpop.f32.mrf.mxu0 }
 0x41d   : > { %v4514_v56 = vadd.f32 %v4513_v23, %v4512_v2 }
 0x41e   : > { %v4411_v58 = vpop.f32.mrf.mxu1  ;;  %v6112_v36 = vpop.f32.mrf.mxu0 }
 0x41f   : > { %6208 = vst [vmem:[#allocation10_spill] sm:$0xff] %v6112_v36 }
 0x420   : > { %v4413_v24 = vpop.f32.mrf.mxu1  ;;  %v6114_v7 = vpop.f32.mrf.mxu0  ;;  %v6216_v2 = vld [vmem:[#allocation8_spill] sm:$0xff] }
 0x421   : > { %6209 = vst [vmem:[#allocation11_spill] sm:$0xff] %v6114_v7 }
 0x422   : > { %v4414_v60 = vpop.f32.mrf.mxu1  ;;  %v4518_v32 = vpop.f32.mrf.mxu0  ;;  %v6214_v11 = vld [vmem:[#allocation9_spill] sm:$0xff] }
 0x423   : > { %v4409_v45 = vadd.f32 %v6214_v11, %v6106_v50 }
 0x424   : > { %v4519_v61 = vpop.f32.mrf.mxu0 }
 0x425   : > { %v4472_v16 = vpop.f32.mrf.mxu1  ;;  %v4520_v28 = vadd.f32 %v4519_v61, %v4518_v32 }
 0x426   : > { %v4521_v33 = vpop.f32.mrf.mxu0 }
 0x427   : > { %v4473_v26 = vpop.f32.mrf.mxu1 }
 0x428   : > { %v4522_v5 = vpop.f32.mrf.mxu0 }
 0x429   : > { %v4475_v31 = vpop.f32.mrf.mxu1 }
 0x42a   : > { %v6116_v37 = vpop.f32.mrf.mxu0 }
 0x42b   : > { %v4476_v49 = vpop.f32.mrf.mxu1  ;;  %6210 = vst [vmem:[#allocation12_spill] sm:$0xff] %v6116_v37  ;;  %v4474_v37 = vadd.f32 %v4473_v26, %v4472_v16  ;;  %v6143_v16 = vld [vmem:[%s6190_s6] ss:$0 sm:$0xff]  ;;  %v6217_v26 = vld [vmem:[#allocation10_spill] sm:$0xff] }
 0x42c   : > { %v6118_v19 = vpop.f32.mrf.mxu0  ;;  %v4477_v20 = vadd.f32 %v4476_v49, %v4475_v31  ;;  %v6218_v31 = vld [vmem:[#allocation11_spill] sm:$0xff] }
 0x42d   : > { %v4478_v43 = vpop.f32.mrf.mxu1  ;;  %6211 = vst [vmem:[#allocation13_spill] sm:$0xff] %v6118_v19  ;;  %v4397_v19 = vadd.f32 %v4396_v40, %v4395_v25  ;;  %v3806_v12 = vadd.f32 %v4474_v37, %v3741_v17  ;;  %v4446_v25 = vadd.f32 %v6096_v52, %v6094_v6  ;;  %v4452_v40 = vadd.f32 %v4451_v8, %v6102_v38  ;;  %v6134_v6 = vld [vmem:[%s6189_s5] ss:$0 sm:$0xff] }
 0x42e   : > { %v6120_v13 = vpop.f32.mrf.mxu0  ;;  %v4415_v17 = vadd.f32 %v4414_v60, %v4413_v24  ;;  %v4523_v38 = vadd.f32 %v4522_v5, %v4521_v33  ;;  %v4517_v33 = vadd.f32 %v6218_v31, %v6217_v26 }
 0x42f   : > { %v4479_v9 = vpop.f32.mrf.mxu1  ;;  %6212 = vst [vmem:[#allocation14_spill] sm:$0xff] %v6120_v13  ;;  %v3744_v57 = vadd.f32 %v4437_v53, %v4397_v19  ;;  %v3757_v41 = vadd.f32 %v4446_v25, %v4406_v1  ;;  %v3871_v32 = vadd.f32 %v4514_v56, %v3806_v12 }
 0x430   : > { %v6122_v30 = vpop.f32.mrf.mxu0  ;;  %v4480_v29 = vadd.f32 %v4479_v9, %v4478_v43 }
 0x431   : > { %v4481_v34 = vpop.f32.mrf.mxu1  ;;  %6213 = vst [vmem:[#allocation15_spill] sm:$0xff] %v6122_v30  ;;  %v4412_v30 = vadd.f32 %v4411_v58, %v4410_v15  ;;  %v3809_v52 = vadd.f32 %v4477_v20, %v3744_v57 }
 0x432   : > { %v4530_v7 = vpop.f32.mrf.mxu0  ;;  %v3814_v13 = vadd.f32 %v4480_v29, %v3749_v42  ;;  %v6219_v46 = vld [vmem:[#allocation12_spill] sm:$0xff] }
 0x433   : > { %v4482_v22 = vpop.f32.mrf.mxu1  ;;  %v3765_v59 = vadd.f32 %v4452_v40, %v4412_v30  ;;  %v3874_v55 = vadd.f32 %v4517_v33, %v3809_v52  ;;  %v3760_v30 = vadd.f32 %v4449_v0, %v4409_v45 }
 0x434   : > { %v4483_v44 = vadd.f32 %v4482_v22, %v4481_v34  ;;  %v4531_v48 = vpop.f32.mrf.mxu0  ;;  %v3879_v35 = vadd.f32 %v4520_v28, %v3814_v13  ;;  %v6220_v63 = vld [vmem:[#allocation13_spill] sm:$0xff] }
 0x435   : > { %v4484_v39 = vpop.f32.mrf.mxu1  ;;  %v4532_v34 = vadd.f32 %v4531_v48, %v4530_v7  ;;  %v4526_v29 = vadd.f32 %v6220_v63, %v6219_v46 }
 0x436   : > { %v3817_v62 = vadd.f32 %v4483_v44, %v3752_v47  ;;  %v4533_v8 = vpop.f32.mrf.mxu0  ;;  %v6215_v44 = vld [vmem:[#allocation7_spill] sm:$0xff]  ;;  %v6221_v57 = vld [vmem:[#allocation14_spill] sm:$0xff] }
 0x437   : > { %v4485_v4 = vpop.f32.mrf.mxu1  ;;  %v4455_v23 = vadd.f32 %v6216_v2, %v6215_v44 }
 0x438   : > { %v4486_v15 = vadd.f32 %v4485_v4, %v4484_v39  ;;  %v3882_v43 = vadd.f32 %v4523_v38, %v3817_v62  ;;  %v4534_v22 = vpop.f32.mrf.mxu0  ;;  %v6222_v25 = vld [vmem:[#allocation15_spill] sm:$0xff] }
 0x439   : > { %v4487_v54 = vpop.f32.mrf.mxu1  ;;  %v3768_v50 = vadd.f32 %v4455_v23, %v4415_v17  ;;  %v4535_v1 = vadd.f32 %v4534_v22, %v4533_v8  ;;  %v4529_v40 = vadd.f32 %v6222_v25, %v6221_v57 }
 0x43a   : > { %v3822_v37 = vadd.f32 %v4486_v15, %v3757_v41 }
 0x43b   : > { %v4488_v18 = vpop.f32.mrf.mxu1 }
 0x43c   : > { %v4489_v9 = vadd.f32 %v4488_v18, %v4487_v54  ;;  %v3887_v47 = vadd.f32 %v4526_v29, %v3822_v37 }
 0x43d   : > { %v4490_v27 = vpop.f32.mrf.mxu1 }
 0x43e   : > { %v3825_v53 = vadd.f32 %v4489_v9, %v3760_v30 }
 0x43f   : > { %v4491_v36 = vpop.f32.mrf.mxu1 }
 0x440   : > { %v4492_v14 = vadd.f32 %v4491_v36, %v4490_v27 }
 0x441   : > { %v4493_v10 = vpop.f32.mrf.mxu1 }
 0x442   : > { %v3830_v24 = vadd.f32 %v4492_v14, %v3765_v59  ;;  %v3890_v59 = vadd.f32 %v4529_v40, %v3825_v53 }
 0x443   : > { %v4494_v3 = vpop.f32.mrf.mxu1 }
 0x444   : > { %v4495_v60 = vadd.f32 %v4494_v3, %v4493_v10  ;;  %v3895_v54 = vadd.f32 %v4532_v34, %v3830_v24 }
 0x445   : > { %v4580_v58 = vpop.f32.mrf.mxu1 }
 0x446   : > { %v3944_v36 = vadd.f32 %v4580_v58, %v3879_v35  ;;  %v3833_v27 = vadd.f32 %v4495_v60, %v3768_v50 }
 0x447   : > { %v3935_v61 = vpop.f32.mrf.mxu1 }
 0x448   : > { %v3975_v5 = vmul.f32 %v6134_v6, %v3944_v36  ;;  %v3936_v49 = vadd.f32 %v3935_v61, %v3871_v32  ;;  %v3898_v3 = vadd.f32 %v4535_v1, %v3833_v27 }
 0x449   : > { %v4581_v19 = vpop.f32.mrf.mxu1 }
 0x44a   : > { %v3990_v39 = vadd.f32 %v6143_v16, %v3975_v5  ;;  %v3973_v13 = vmul.f32 %v6134_v6, %v3936_v49  ;;  %v3947_v4 = vadd.f32 %v4581_v19, %v3882_v43 }
 0x44b   : > { %v3938_v7 = vpop.f32.mrf.mxu1 }
 0x44c   : > { %v3998_v18 = vmax.f32 %v3990_v39, 0.0  ;;  %v3988_v51 = vadd.f32 %v6143_v16, %v3973_v13  ;;  %v3976_v42 = vmul.f32 %v6134_v6, %v3947_v4  ;;  %v3939_v21 = vadd.f32 %v3938_v7, %v3874_v55 }
 0x44d   : > { %v4584_v10 = vpop.f32.mrf.mxu1 }
 0x44e   : > { %4006 = vst [vmem:[%s6156_s28 + $0x10] sm:$0xff] %v3998_v18  ;;  %v3996_v12 = vmax.f32 %v3988_v51, 0.0  ;;  %v3991_v20 = vadd.f32 %v6143_v16, %v3976_v42  ;;  %v3974_v28 = vmul.f32 %v6134_v6, %v3939_v21  ;;  %v3960_v48 = vadd.f32 %v4584_v10, %v3895_v54 }
 0x44f   : > { %v3951_v14 = vpop.f32.mrf.mxu1 }
 0x450   : > { %4004 = vst [vmem:[%s6156_s28] sm:$0xff] %v3996_v12  ;;  %v3999_v0 = vmax.f32 %v3991_v20, 0.0  ;;  %v3989_v56 = vadd.f32 %v6143_v16, %v3974_v28  ;;  %v3979_v62 = vmul.f32 %v6134_v6, %v3960_v48  ;;  %v3952_v35 = vadd.f32 %v3951_v14, %v3887_v47 }
 0x451   : > { %v4585_v41 = vpop.f32.mrf.mxu1 }
 0x452   : > { %4007 = vst [vmem:[%s6156_s28 + $0x18] sm:$0xff] %v3999_v0  ;;  %v3997_v17 = vmax.f32 %v3989_v56, 0.0  ;;  %v3994_v15 = vadd.f32 %v6143_v16, %v3979_v62  ;;  %v3977_v58 = vmul.f32 %v6134_v6, %v3952_v35  ;;  %v3963_v52 = vadd.f32 %v4585_v41, %v3898_v3 }
 0x453   : > { %v3954_v38 = vpop.f32.mrf.mxu1 }
 0x454   : > { %4005 = vst [vmem:[%s6156_s28 + $0x8] sm:$0xff] %v3997_v17  ;;  %v4002_v8 = vmax.f32 %v3994_v15, 0.0  ;;  %v3992_v36 = vadd.f32 %v6143_v16, %v3977_v58  ;;  %v3980_v32 = vmul.f32 %v6134_v6, %v3963_v52  ;;  %v3955_v11 = vadd.f32 %v3954_v38, %v3890_v59 }
 0x456   : > { %4010 = vst [vmem:[%s6156_s28 + $0x30] sm:$0xff] %v4002_v8  ;;  %v4000_v45 = vmax.f32 %v3992_v36, 0.0  ;;  %v3995_v44 = vadd.f32 %v6143_v16, %v3980_v32  ;;  %v3978_v2 = vmul.f32 %v6134_v6, %v3955_v11 }
 0x458   : > { %4008 = vst [vmem:[%s6156_s28 + $0x20] sm:$0xff] %v4000_v45  ;;  %v4003_v23 = vmax.f32 %v3995_v44, 0.0  ;;  %v3993_v24 = vadd.f32 %v6143_v16, %v3978_v2 }
 0x45a   : > { %4011 = vst [vmem:[%s6156_s28 + $0x38] sm:$0xff] %v4003_v23  ;;  %v4001_v60 = vmax.f32 %v3993_v24, 0.0 }
 0x45c   : > { %4009 = vst [vmem:[%s6156_s28 + $0x28] sm:$0xff] %v4001_v60 }
 0x45d PF: > { %s18_s24 = sadd.s32 1, %s4864_s24  }
 0x45e   : > { %p15_p1 = scmp.ge.s32.totalorder %s18_s24, 4  }
 0x460   :  { %17 = sbr.rel (!%p15_p1) target bundleno = 1 (0x1), region = 89 }
 0x465   :  { %4033 = vsyncpa [#allocation5], 1 }
 0x466   :  { %4035 = vsyncpa [#allocation5 + $0x1], 1 }

</bundles_post_ra>
